<compile_context>
chip_gen: v5e
topology: v5e:2x2
jax: 0.10.0
libtpu: 0.0.40
codegen_flags: <defaults>
</compile_context>

<pallas_src>
import jax
import jax.numpy as jnp
from jax.experimental import pallas as pl
from jax.experimental.pallas import tpu as pltpu


def _repconv_kernel(x_ref, w1x1_ref, padb_ref, wtap_ref, fbcat_ref, rwcat_ref,
                    bout_ref, o_ref, pad_ref):
    H, W, C = x_ref.shape[1], x_ref.shape[2], x_ref.shape[3]
    Cpad = pad_ref.shape[2]                      # C + 2*C2
    mm_dtype = w1x1_ref.dtype                    # bf16 by default

    x = x_ref[0]                                 # (H, W, C) f32
    x2d = x.reshape(H * W, C)                    # W % 8 == 0 keeps this layout-cheap

    # ---- fused 1x1 convs: [res_conv1x1 | identity(x) | expand | expand1] ----
    y = jnp.dot(x2d.astype(mm_dtype), w1x1_ref[...],
                preferred_element_type=jnp.float32)          # (H*W, C + Cpad)
    res1 = y[:, :C]                                          # b1 folded into bout
    interior = y[:, C:] + padb_ref[0]            # [x | exp1+eb1 | exp2+eb2]

    # ---- padded scratch: border-only writes (pad_tensor semantics) ----------
    bvec = padb_ref[0].reshape(1, 1, Cpad)
    row_border = jnp.broadcast_to(bvec, (1, W + 2, Cpad))
    col_border = jnp.broadcast_to(bvec, (H + 2, 1, Cpad))
    pad_ref[0:1, :, :] = row_border
    pad_ref[H + 1:H + 2, :, :] = row_border
    pad_ref[:, 0:1, :] = col_border
    pad_ref[:, W + 1:W + 2, :] = col_border
    pad_ref[1:H + 1, 1:W + 1, :] = interior.reshape(H, W, Cpad)

    # ---- fused 3x3 convs: 9 taps, block-diag(w3, fw, f2w) weights ------------
    acc = None
    for t in range(9):                           # short static loop (9 taps)
        dh, dw = divmod(t, 3)
        win = pad_ref[dh:dh + H, dw:dw + W, :]   # (H, W, Cpad), read once per tap
        part = jnp.dot(win.reshape(H * W, Cpad).astype(mm_dtype),
                       wtap_ref[t], preferred_element_type=jnp.float32)
        acc = part if acc is None else acc + part

    res3 = acc[:, :C]                                        # b3 folded into bout
    fea = (acc[:, C:] + fbcat_ref[0]).astype(mm_dtype)       # [fea1 | fea2]

    # ---- fused reduce convs: concat([fea1|fea2]) @ concat([rw; r2w]) ---------
    branches = jnp.dot(fea, rwcat_ref[...], preferred_element_type=jnp.float32)

    out = x2d + res1 + res3 + branches + bout_ref[0]
    o_ref[0] = out.reshape(H, W, C).astype(o_ref.dtype)


def _tile_bytes(shape, dtype):
    """Rough VMEM footprint of one buffer after (sublane, lane) padding."""
    itemsize = jnp.dtype(dtype).itemsize
    s = list(shape)
    if len(s) < 2:
        s = [1] * (2 - len(s)) + s
    pack = max(1, 4 // itemsize)                 # sublane packing for sub-32-bit
    s[-1] = pl.cdiv(s[-1], 128) * 128
    s[-2] = pl.cdiv(s[-2], 8 * pack) * (8 * pack)
    n = 1
    for d in s:
        n *= d
    return n * itemsize


def repconv_pallas(x_nchw, params, *, matmul_dtype=jnp.bfloat16):
    N, C, H, W = x_nchw.shape
    C2 = params['ew'].shape[1]
    Cpad = C + 2 * C2
    f32 = jnp.float32

    x = jnp.transpose(x_nchw, (0, 2, 3, 1)).astype(f32)      # NHWC

    # ---- host-side weight fusion ---------------------------------------------
    # fused 1x1 weight: [res_conv1x1 | identity (x passthrough) | expand | expand1]
    w1x1 = jnp.concatenate(
        [params['w1'], jnp.eye(C, dtype=f32), params['ew'], params['e2w']],
        axis=1).astype(matmul_dtype)                          # (C, C + Cpad)
    # bias of padded-buffer channels [x | e1 | e2]; also the pad_tensor border value.
    pad_bias = jnp.concatenate(
        [jnp.zeros((1, C), f32), params['eb'], params['e2b']], axis=1)   # (1, Cpad)
    # fused 3x3 tap weights: block-diag(res_conv3x3, fea_conv, fea1_conv) per tap.
    w_tap = jnp.zeros((9, Cpad, Cpad), f32)
    w_tap = w_tap.at[:, :C, :C].set(params['w3'])
    w_tap = w_tap.at[:, C:C + C2, C:C + C2].set(params['fw'])
    w_tap = w_tap.at[:, C + C2:, C + C2:].set(params['f2w'])
    w_tap = w_tap.astype(matmul_dtype)                        # (9, Cpad, Cpad)
    fb_cat = jnp.concatenate([params['fb'], params['f2b']], axis=1)      # (1, 2*C2)
    rw_cat = jnp.concatenate([params['rw'], params['r2w']], axis=0
                             ).astype(matmul_dtype)           # (2*C2, C)
    b_out = params['b1'] + params['b3'] + params['rb'] + params['r2b']   # (1, C)

    weights = [w1x1, pad_bias, w_tap, fb_cat, rw_cat, b_out]

    # ---- explicit VMEM budget (double-buffered blocks + weights + scratch) ----
    est = 2 * 2 * _tile_bytes((H, W, C), f32)                 # in + out, 2 bufs each
    est += sum(_tile_bytes(w.shape, w.dtype) for w in weights)
    est += _tile_bytes((H + 2, W + 2, Cpad), f32)             # pad scratch
    vmem_limit = int(min(48 * 1024 * 1024, max(16 * 1024 * 1024, 2 * est)))

    def full_spec(arr):
        nd = arr.ndim
        return pl.BlockSpec(arr.shape, lambda n, _nd=nd: (0,) * _nd)

    # TODO(synk): for large H*W*C (e.g. 256x256x64 on v7x's 64 MiB VMEM) add
    # row-block spatial tiling with a 1-row halo and a lane-dense (packed) output
    # layout instead of whole-image blocks.
    out_nhwc = pl.pallas_call(
        _repconv_kernel,
        out_shape=jax.ShapeDtypeStruct((N, H, W, C), f32),
        grid_spec=pltpu.PrefetchScalarGridSpec(
            num_scalar_prefetch=0,
            grid=(N,),
            in_specs=[pl.BlockSpec((1, H, W, C), lambda n: (n, 0, 0, 0))]
                     + [full_spec(w) for w in weights],
            out_specs=pl.BlockSpec((1, H, W, C), lambda n: (n, 0, 0, 0)),
            scratch_shapes=[pltpu.VMEM((H + 2, W + 2, Cpad), f32)]),
        compiler_params=pltpu.CompilerParams(
            dimension_semantics=("parallel",),
            vmem_limit_bytes=vmem_limit),
    )(x, *weights)

    return jnp.transpose(out_nhwc, (0, 3, 1, 2))


# ---------------- pure-JAX reference (for verification only) ----------------
def _conv3x3_nhwc(xp, w9):
    N, Hp, Wp, Cin = xp.shape
    H, W = Hp - 2, Wp - 2
    Cout = w9.shape[-1]
    out = jnp.zeros((N, H, W, Cout), jnp.float32)
    for dh in range(3):
        for dw in range(3):
            out = out + jnp.einsum('nhwc,cd->nhwd',
                                   xp[:, dh:dh + H, dw:dw + W, :],
                                   w9[dh * 3 + dw],
                                   precision=jax.lax.Precision.HIGHEST)
    return out


def repconv_ref(x_nchw, p):
    x = jnp.transpose(x_nchw, (0, 2, 3, 1)).astype(jnp.float32)
    N, H, W, C = x.shape
    C2 = p['ew'].shape[1]
    hi = jax.lax.Precision.HIGHEST
    res3 = _conv3x3_nhwc(jnp.pad(x, ((0, 0), (1, 1), (1, 1), (0, 0))), p['w3']) + p['b3'][0]
    res1 = jnp.einsum('nhwc,cd->nhwd', x, p['w1'], precision=hi) + p['b1'][0]

    def branch(ew, eb, fw, fb, rw, rb):
        exp = jnp.einsum('nhwc,cd->nhwd', x, ew, precision=hi) + eb[0]
        xp = jnp.broadcast_to(eb[0].reshape(1, 1, 1, C2), (N, H + 2, W + 2, C2))
        xp = xp.at[:, 1:H + 1, 1:W + 1, :].set(exp)
        fea = _conv3x3_nhwc(xp, fw) + fb[0]
        return jnp.einsum('nhwc,cd->nhwd', fea, rw, precision=hi) + rb[0]

    br1 = branch(p['ew'], p['eb'], p['fw'], p['fb'], p['rw'], p['rb'])
    br2 = branch(p['e2w'], p['e2b'], p['f2w'], p['f2b'], p['r2w'], p['r2b'])
    out = br1 + br2 + x + res1 + res3
    return jnp.transpose(out, (0, 3, 1, 2))


if __name__ == "__main__":
    N, C, H, W, ratio = 2, 4, 16, 16, 2
    C2 = C * ratio
    key = jax.random.PRNGKey(0)
    ks = jax.random.split(key, 17)

    def rnd(k, shape, scale=0.1):
        return jax.random.normal(k, shape, jnp.float32) * scale

    params = {
        'w3':  rnd(ks[0],  (9, C, C)),   'b3':  rnd(ks[1],  (1, C)),
        'w1':  rnd(ks[2],  (C, C)),      'b1':  rnd(ks[3],  (1, C)),
        'ew':  rnd(ks[4],  (C, C2)),     'eb':  rnd(ks[5],  (1, C2)),
        'fw':  rnd(ks[6],  (9, C2, C2)), 'fb':  rnd(ks[7],  (1, C2)),
        'rw':  rnd(ks[8],  (C2, C)),     'rb':  rnd(ks[9],  (1, C)),
        'e2w': rnd(ks[10], (C, C2)),     'e2b': rnd(ks[11], (1, C2)),
        'f2w': rnd(ks[12], (9, C2, C2)), 'f2b': rnd(ks[13], (1, C2)),
        'r2w': rnd(ks[14], (C2, C)),     'r2b': rnd(ks[15], (1, C)),
    }
    x = jax.random.normal(ks[16], (N, C, H, W), jnp.float32)

    out = jax.block_until_ready(jax.jit(repconv_pallas)(x, params))
    ref = repconv_ref(x, params)
    assert out.shape == (N, C, H, W)
    max_err = float(jnp.max(jnp.abs(out - ref)))
    # bf16 MXU operands (f32 accumulation) against an f32-HIGHEST reference:
    # expected ~1e-2-class absolute error; 2.5e-2 still catches any structural bug.
    if not (max_err < 2.5e-2):
        raise AssertionError(f"kernel/reference mismatch: max abs err = {max_err}")
    print("KERNEL_OK")
</pallas_src>

<mosaic_0001>
module attributes {stable_mosaic.version = 11 : i64} {
  func.func @_repconv_kernel(%arg0: i32, %arg1: memref<1x16x16x4xf32, #tpu.memory_space<vmem>>, %arg2: memref<4x24xbf16, #tpu.memory_space<vmem>>, %arg3: memref<1x20xf32, #tpu.memory_space<vmem>>, %arg4: memref<9x20x20xbf16, #tpu.memory_space<vmem>>, %arg5: memref<1x16xf32, #tpu.memory_space<vmem>>, %arg6: memref<16x4xbf16, #tpu.memory_space<vmem>>, %arg7: memref<1x4xf32, #tpu.memory_space<vmem>>, %arg8: memref<1x16x16x4xf32, #tpu.memory_space<vmem>>, %arg9: memref<18x18x20xf32, #tpu.memory_space<vmem>>) attributes {dimension_semantics = [#tpu.dimension_semantics<parallel>], iteration_bounds = array<i64: 2>, scalar_prefetch = 0 : i64, scratch_operands = 1 : i64, tpu.core_type = #tpu.core_type<tc>, window_params = [{transform_indices = @transform_0, window_bounds = array<i64: 1, 16, 16, 4>}, {pipeline_mode = #tpu.pipeline_mode<synchronous>, transform_indices = @transform_1, window_bounds = array<i64: 4, 24>}, {pipeline_mode = #tpu.pipeline_mode<synchronous>, transform_indices = @transform_2, window_bounds = array<i64: 1, 20>}, {pipeline_mode = #tpu.pipeline_mode<synchronous>, transform_indices = @transform_3, window_bounds = array<i64: 9, 20, 20>}, {pipeline_mode = #tpu.pipeline_mode<synchronous>, transform_indices = @transform_4, window_bounds = array<i64: 1, 16>}, {pipeline_mode = #tpu.pipeline_mode<synchronous>, transform_indices = @transform_5, window_bounds = array<i64: 16, 4>}, {pipeline_mode = #tpu.pipeline_mode<synchronous>, transform_indices = @transform_6, window_bounds = array<i64: 1, 4>}, {transform_indices = @transform_7, window_bounds = array<i64: 1, 16, 16, 4>}]} {
    %c0 = arith.constant 0 : index
    %c0_0 = arith.constant 0 : index
    %c0_1 = arith.constant 0 : index
    %c0_2 = arith.constant 0 : index
    %0 = vector.load %arg1[%c0, %c0_0, %c0_1, %c0_2] : memref<1x16x16x4xf32, #tpu.memory_space<vmem>>, vector<1x16x16x4xf32>
    %1 = vector.shape_cast %0 : vector<1x16x16x4xf32> to vector<16x16x4xf32>
    %2 = vector.shape_cast %1 : vector<16x16x4xf32> to vector<256x4xf32>
    %3 = arith.truncf %2 : vector<256x4xf32> to vector<256x4xbf16>
    %c0_3 = arith.constant 0 : index
    %c0_4 = arith.constant 0 : index
    %4 = vector.load %arg2[%c0_3, %c0_4] : memref<4x24xbf16, #tpu.memory_space<vmem>>, vector<4x24xbf16>
    %cst = arith.constant dense<0.000000e+00> : vector<256x24xf32>
    %5 = tpu.matmul %3, %4, %cst {dimension_numbers = #tpu.dot_dimension_numbers<[1], [0], [0], [1], [0, 0, 1, 1], [], []>} : vector<256x4xbf16>, vector<4x24xbf16>, vector<256x24xf32> -> vector<256x24xf32>
    %6 = vector.extract_strided_slice %5 {offsets = [0, 0], sizes = [256, 4], strides = [1, 1]} : vector<256x24xf32> to vector<256x4xf32>
    %7 = vector.extract_strided_slice %5 {offsets = [0, 4], sizes = [256, 20], strides = [1, 1]} : vector<256x24xf32> to vector<256x20xf32>
    %c0_5 = arith.constant 0 : index
    %c0_6 = arith.constant 0 : index
    %8 = vector.load %arg3[%c0_5, %c0_6] : memref<1x20xf32, #tpu.memory_space<vmem>>, vector<1x20xf32>
    %9 = vector.shape_cast %8 : vector<1x20xf32> to vector<20xf32>
    %10 = vector.shape_cast %9 : vector<20xf32> to vector<1x20xf32>
    %11 = vector.broadcast %10 : vector<1x20xf32> to vector<256x20xf32>
    %12 = arith.addf %7, %11 : vector<256x20xf32>
    %c0_7 = arith.constant 0 : index
    %c0_8 = arith.constant 0 : index
    %13 = vector.load %arg3[%c0_7, %c0_8] : memref<1x20xf32, #tpu.memory_space<vmem>>, vector<1x20xf32>
    %14 = vector.shape_cast %13 : vector<1x20xf32> to vector<20xf32>
    %15 = vector.shape_cast %14 : vector<20xf32> to vector<1x1x20xf32>
    %16 = vector.shape_cast %15 : vector<1x1x20xf32> to vector<1x1x20xf32>
    %17 = vector.broadcast %16 : vector<1x1x20xf32> to vector<1x18x20xf32>
    %18 = vector.shape_cast %15 : vector<1x1x20xf32> to vector<1x1x20xf32>
    %19 = vector.broadcast %18 : vector<1x1x20xf32> to vector<18x1x20xf32>
    %c0_9 = arith.constant 0 : index
    %c0_10 = arith.constant 0 : index
    %c0_11 = arith.constant 0 : index
    %20 = vector.load %arg9[%c0_9, %c0_10, %c0_11] : memref<18x18x20xf32, #tpu.memory_space<vmem>>, vector<1x18x20xf32>
    tpu.vector_store %arg9[%c0_9, %c0_10, %c0_11], %17 {strides = array<i32>} : memref<18x18x20xf32, #tpu.memory_space<vmem>>, vector<1x18x20xf32>,
    %c17 = arith.constant 17 : index
    %c0_12 = arith.constant 0 : index
    %c0_13 = arith.constant 0 : index
    %21 = vector.load %arg9[%c17, %c0_12, %c0_13] : memref<18x18x20xf32, #tpu.memory_space<vmem>>, vector<1x18x20xf32>
    tpu.vector_store %arg9[%c17, %c0_12, %c0_13], %17 {strides = array<i32>} : memref<18x18x20xf32, #tpu.memory_space<vmem>>, vector<1x18x20xf32>,
    %c0_14 = arith.constant 0 : index
    %c0_15 = arith.constant 0 : index
    %c0_16 = arith.constant 0 : index
    %22 = vector.load %arg9[%c0_14, %c0_15, %c0_16] : memref<18x18x20xf32, #tpu.memory_space<vmem>>, vector<18x1x20xf32>
    tpu.vector_store %arg9[%c0_14, %c0_15, %c0_16], %19 {strides = array<i32>} : memref<18x18x20xf32, #tpu.memory_space<vmem>>, vector<18x1x20xf32>,
    %c0_17 = arith.constant 0 : index
    %c17_18 = arith.constant 17 : index
    %c0_19 = arith.constant 0 : index
    %23 = vector.load %arg9[%c0_17, %c17_18, %c0_19] : memref<18x18x20xf32, #tpu.memory_space<vmem>>, vector<18x1x20xf32>
    tpu.vector_store %arg9[%c0_17, %c17_18, %c0_19], %19 {strides = array<i32>} : memref<18x18x20xf32, #tpu.memory_space<vmem>>, vector<18x1x20xf32>,
    %24 = vector.shape_cast %12 : vector<256x20xf32> to vector<16x16x20xf32>
    %c1 = arith.constant 1 : index
    %c1_20 = arith.constant 1 : index
    %c0_21 = arith.constant 0 : index
    %25 = vector.load %arg9[%c1, %c1_20, %c0_21] : memref<18x18x20xf32, #tpu.memory_space<vmem>>, vector<16x16x20xf32>
    tpu.vector_store %arg9[%c1, %c1_20, %c0_21], %24 {strides = array<i32>} : memref<18x18x20xf32, #tpu.memory_space<vmem>>, vector<16x16x20xf32>,
    %c0_22 = arith.constant 0 : index
    %c0_23 = arith.constant 0 : index
    %c0_24 = arith.constant 0 : index
    %26 = vector.load %arg9[%c0_22, %c0_23, %c0_24] : memref<18x18x20xf32, #tpu.memory_space<vmem>>, vector<16x16x20xf32>
    %27 = vector.shape_cast %26 : vector<16x16x20xf32> to vector<256x20xf32>
    %28 = arith.truncf %27 : vector<256x20xf32> to vector<256x20xbf16>
    %c0_25 = arith.constant 0 : index
    %c0_26 = arith.constant 0 : index
    %c0_27 = arith.constant 0 : index
    %29 = vector.load %arg4[%c0_25, %c0_26, %c0_27] : memref<9x20x20xbf16, #tpu.memory_space<vmem>>, vector<1x20x20xbf16>
    %30 = vector.shape_cast %29 : vector<1x20x20xbf16> to vector<20x20xbf16>
    %cst_28 = arith.constant dense<0.000000e+00> : vector<256x20xf32>
    %31 = tpu.matmul %28, %30, %cst_28 {dimension_numbers = #tpu.dot_dimension_numbers<[1], [0], [0], [1], [0, 0, 1, 1], [], []>} : vector<256x20xbf16>, vector<20x20xbf16>, vector<256x20xf32> -> vector<256x20xf32>
    %c0_29 = arith.constant 0 : index
    %c1_30 = arith.constant 1 : index
    %c0_31 = arith.constant 0 : index
    %32 = vector.load %arg9[%c0_29, %c1_30, %c0_31] : memref<18x18x20xf32, #tpu.memory_space<vmem>>, vector<16x16x20xf32>
    %33 = vector.shape_cast %32 : vector<16x16x20xf32> to vector<256x20xf32>
    %34 = arith.truncf %33 : vector<256x20xf32> to vector<256x20xbf16>
    %c1_32 = arith.constant 1 : index
    %c0_33 = arith.constant 0 : index
    %c0_34 = arith.constant 0 : index
    %35 = vector.load %arg4[%c1_32, %c0_33, %c0_34] : memref<9x20x20xbf16, #tpu.memory_space<vmem>>, vector<1x20x20xbf16>
    %36 = vector.shape_cast %35 : vector<1x20x20xbf16> to vector<20x20xbf16>
    %cst_35 = arith.constant dense<0.000000e+00> : vector<256x20xf32>
    %37 = tpu.matmul %34, %36, %cst_35 {dimension_numbers = #tpu.dot_dimension_numbers<[1], [0], [0], [1], [0, 0, 1, 1], [], []>} : vector<256x20xbf16>, vector<20x20xbf16>, vector<256x20xf32> -> vector<256x20xf32>
    %38 = arith.addf %31, %37 : vector<256x20xf32>
    %c0_36 = arith.constant 0 : index
    %c2 = arith.constant 2 : index
    %c0_37 = arith.constant 0 : index
    %39 = vector.load %arg9[%c0_36, %c2, %c0_37] : memref<18x18x20xf32, #tpu.memory_space<vmem>>, vector<16x16x20xf32>
    %40 = vector.shape_cast %39 : vector<16x16x20xf32> to vector<256x20xf32>
    %41 = arith.truncf %40 : vector<256x20xf32> to vector<256x20xbf16>
    %c2_38 = arith.constant 2 : index
    %c0_39 = arith.constant 0 : index
    %c0_40 = arith.constant 0 : index
    %42 = vector.load %arg4[%c2_38, %c0_39, %c0_40] : memref<9x20x20xbf16, #tpu.memory_space<vmem>>, vector<1x20x20xbf16>
    %43 = vector.shape_cast %42 : vector<1x20x20xbf16> to vector<20x20xbf16>
    %cst_41 = arith.constant dense<0.000000e+00> : vector<256x20xf32>
    %44 = tpu.matmul %41, %43, %cst_41 {dimension_numbers = #tpu.dot_dimension_numbers<[1], [0], [0], [1], [0, 0, 1, 1], [], []>} : vector<256x20xbf16>, vector<20x20xbf16>, vector<256x20xf32> -> vector<256x20xf32>
    %45 = arith.addf %38, %44 : vector<256x20xf32>
    %c1_42 = arith.constant 1 : index
    %c0_43 = arith.constant 0 : index
    %c0_44 = arith.constant 0 : index
    %46 = vector.load %arg9[%c1_42, %c0_43, %c0_44] : memref<18x18x20xf32, #tpu.memory_space<vmem>>, vector<16x16x20xf32>
    %47 = vector.shape_cast %46 : vector<16x16x20xf32> to vector<256x20xf32>
    %48 = arith.truncf %47 : vector<256x20xf32> to vector<256x20xbf16>
    %c3 = arith.constant 3 : index
    %c0_45 = arith.constant 0 : index
    %c0_46 = arith.constant 0 : index
    %49 = vector.load %arg4[%c3, %c0_45, %c0_46] : memref<9x20x20xbf16, #tpu.memory_space<vmem>>, vector<1x20x20xbf16>
    %50 = vector.shape_cast %49 : vector<1x20x20xbf16> to vector<20x20xbf16>
    %cst_47 = arith.constant dense<0.000000e+00> : vector<256x20xf32>
    %51 = tpu.matmul %48, %50, %cst_47 {dimension_numbers = #tpu.dot_dimension_numbers<[1], [0], [0], [1], [0, 0, 1, 1], [], []>} : vector<256x20xbf16>, vector<20x20xbf16>, vector<256x20xf32> -> vector<256x20xf32>
    %52 = arith.addf %45, %51 : vector<256x20xf32>
    %c1_48 = arith.constant 1 : index
    %c1_49 = arith.constant 1 : index
    %c0_50 = arith.constant 0 : index
    %53 = vector.load %arg9[%c1_48, %c1_49, %c0_50] : memref<18x18x20xf32, #tpu.memory_space<vmem>>, vector<16x16x20xf32>
    %54 = vector.shape_cast %53 : vector<16x16x20xf32> to vector<256x20xf32>
    %55 = arith.truncf %54 : vector<256x20xf32> to vector<256x20xbf16>
    %c4 = arith.constant 4 : index
    %c0_51 = arith.constant 0 : index
    %c0_52 = arith.constant 0 : index
    %56 = vector.load %arg4[%c4, %c0_51, %c0_52] : memref<9x20x20xbf16, #tpu.memory_space<vmem>>, vector<1x20x20xbf16>
    %57 = vector.shape_cast %56 : vector<1x20x20xbf16> to vector<20x20xbf16>
    %cst_53 = arith.constant dense<0.000000e+00> : vector<256x20xf32>
    %58 = tpu.matmul %55, %57, %cst_53 {dimension_numbers = #tpu.dot_dimension_numbers<[1], [0], [0], [1], [0, 0, 1, 1], [], []>} : vector<256x20xbf16>, vector<20x20xbf16>, vector<256x20xf32> -> vector<256x20xf32>
    %59 = arith.addf %52, %58 : vector<256x20xf32>
    %c1_54 = arith.constant 1 : index
    %c2_55 = arith.constant 2 : index
    %c0_56 = arith.constant 0 : index
    %60 = vector.load %arg9[%c1_54, %c2_55, %c0_56] : memref<18x18x20xf32, #tpu.memory_space<vmem>>, vector<16x16x20xf32>
    %61 = vector.shape_cast %60 : vector<16x16x20xf32> to vector<256x20xf32>
    %62 = arith.truncf %61 : vector<256x20xf32> to vector<256x20xbf16>
    %c5 = arith.constant 5 : index
    %c0_57 = arith.constant 0 : index
    %c0_58 = arith.constant 0 : index
    %63 = vector.load %arg4[%c5, %c0_57, %c0_58] : memref<9x20x20xbf16, #tpu.memory_space<vmem>>, vector<1x20x20xbf16>
    %64 = vector.shape_cast %63 : vector<1x20x20xbf16> to vector<20x20xbf16>
    %cst_59 = arith.constant dense<0.000000e+00> : vector<256x20xf32>
    %65 = tpu.matmul %62, %64, %cst_59 {dimension_numbers = #tpu.dot_dimension_numbers<[1], [0], [0], [1], [0, 0, 1, 1], [], []>} : vector<256x20xbf16>, vector<20x20xbf16>, vector<256x20xf32> -> vector<256x20xf32>
    %66 = arith.addf %59, %65 : vector<256x20xf32>
    %c2_60 = arith.constant 2 : index
    %c0_61 = arith.constant 0 : index
    %c0_62 = arith.constant 0 : index
    %67 = vector.load %arg9[%c2_60, %c0_61, %c0_62] : memref<18x18x20xf32, #tpu.memory_space<vmem>>, vector<16x16x20xf32>
    %68 = vector.shape_cast %67 : vector<16x16x20xf32> to vector<256x20xf32>
    %69 = arith.truncf %68 : vector<256x20xf32> to vector<256x20xbf16>
    %c6 = arith.constant 6 : index
    %c0_63 = arith.constant 0 : index
    %c0_64 = arith.constant 0 : index
    %70 = vector.load %arg4[%c6, %c0_63, %c0_64] : memref<9x20x20xbf16, #tpu.memory_space<vmem>>, vector<1x20x20xbf16>
    %71 = vector.shape_cast %70 : vector<1x20x20xbf16> to vector<20x20xbf16>
    %cst_65 = arith.constant dense<0.000000e+00> : vector<256x20xf32>
    %72 = tpu.matmul %69, %71, %cst_65 {dimension_numbers = #tpu.dot_dimension_numbers<[1], [0], [0], [1], [0, 0, 1, 1], [], []>} : vector<256x20xbf16>, vector<20x20xbf16>, vector<256x20xf32> -> vector<256x20xf32>
    %73 = arith.addf %66, %72 : vector<256x20xf32>
    %c2_66 = arith.constant 2 : index
    %c1_67 = arith.constant 1 : index
    %c0_68 = arith.constant 0 : index
    %74 = vector.load %arg9[%c2_66, %c1_67, %c0_68] : memref<18x18x20xf32, #tpu.memory_space<vmem>>, vector<16x16x20xf32>
    %75 = vector.shape_cast %74 : vector<16x16x20xf32> to vector<256x20xf32>
    %76 = arith.truncf %75 : vector<256x20xf32> to vector<256x20xbf16>
    %c7 = arith.constant 7 : index
    %c0_69 = arith.constant 0 : index
    %c0_70 = arith.constant 0 : index
    %77 = vector.load %arg4[%c7, %c0_69, %c0_70] : memref<9x20x20xbf16, #tpu.memory_space<vmem>>, vector<1x20x20xbf16>
    %78 = vector.shape_cast %77 : vector<1x20x20xbf16> to vector<20x20xbf16>
    %cst_71 = arith.constant dense<0.000000e+00> : vector<256x20xf32>
    %79 = tpu.matmul %76, %78, %cst_71 {dimension_numbers = #tpu.dot_dimension_numbers<[1], [0], [0], [1], [0, 0, 1, 1], [], []>} : vector<256x20xbf16>, vector<20x20xbf16>, vector<256x20xf32> -> vector<256x20xf32>
    %80 = arith.addf %73, %79 : vector<256x20xf32>
    %c2_72 = arith.constant 2 : index
    %c2_73 = arith.constant 2 : index
    %c0_74 = arith.constant 0 : index
    %81 = vector.load %arg9[%c2_72, %c2_73, %c0_74] : memref<18x18x20xf32, #tpu.memory_space<vmem>>, vector<16x16x20xf32>
    %82 = vector.shape_cast %81 : vector<16x16x20xf32> to vector<256x20xf32>
    %83 = arith.truncf %82 : vector<256x20xf32> to vector<256x20xbf16>
    %c8 = arith.constant 8 : index
    %c0_75 = arith.constant 0 : index
    %c0_76 = arith.constant 0 : index
    %84 = vector.load %arg4[%c8, %c0_75, %c0_76] : memref<9x20x20xbf16, #tpu.memory_space<vmem>>, vector<1x20x20xbf16>
    %85 = vector.shape_cast %84 : vector<1x20x20xbf16> to vector<20x20xbf16>
    %cst_77 = arith.constant dense<0.000000e+00> : vector<256x20xf32>
    %86 = tpu.matmul %83, %85, %cst_77 {dimension_numbers = #tpu.dot_dimension_numbers<[1], [0], [0], [1], [0, 0, 1, 1], [], []>} : vector<256x20xbf16>, vector<20x20xbf16>, vector<256x20xf32> -> vector<256x20xf32>
    %87 = arith.addf %80, %86 : vector<256x20xf32>
    %88 = vector.extract_strided_slice %87 {offsets = [0, 0], sizes = [256, 4], strides = [1, 1]} : vector<256x20xf32> to vector<256x4xf32>
    %89 = vector.extract_strided_slice %87 {offsets = [0, 4], sizes = [256, 16], strides = [1, 1]} : vector<256x20xf32> to vector<256x16xf32>
    %c0_78 = arith.constant 0 : index
    %c0_79 = arith.constant 0 : index
    %90 = vector.load %arg5[%c0_78, %c0_79] : memref<1x16xf32, #tpu.memory_space<vmem>>, vector<1x16xf32>
    %91 = vector.shape_cast %90 : vector<1x16xf32> to vector<16xf32>
    %92 = vector.shape_cast %91 : vector<16xf32> to vector<1x16xf32>
    %93 = vector.broadcast %92 : vector<1x16xf32> to vector<256x16xf32>
    %94 = arith.addf %89, %93 : vector<256x16xf32>
    %95 = arith.truncf %94 : vector<256x16xf32> to vector<256x16xbf16>
    %c0_80 = arith.constant 0 : index
    %c0_81 = arith.constant 0 : index
    %96 = vector.load %arg6[%c0_80, %c0_81] : memref<16x4xbf16, #tpu.memory_space<vmem>>, vector<16x4xbf16>
    %cst_82 = arith.constant dense<0.000000e+00> : vector<256x4xf32>
    %97 = tpu.matmul %95, %96, %cst_82 {dimension_numbers = #tpu.dot_dimension_numbers<[1], [0], [0], [1], [0, 0, 1, 1], [], []>} : vector<256x16xbf16>, vector<16x4xbf16>, vector<256x4xf32> -> vector<256x4xf32>
    %98 = arith.addf %2, %6 : vector<256x4xf32>
    %99 = arith.addf %98, %88 : vector<256x4xf32>
    %100 = arith.addf %99, %97 : vector<256x4xf32>
    %c0_83 = arith.constant 0 : index
    %c0_84 = arith.constant 0 : index
    %101 = vector.load %arg7[%c0_83, %c0_84] : memref<1x4xf32, #tpu.memory_space<vmem>>, vector<1x4xf32>
    %102 = vector.shape_cast %101 : vector<1x4xf32> to vector<4xf32>
    %103 = vector.shape_cast %102 : vector<4xf32> to vector<1x4xf32>
    %104 = vector.broadcast %103 : vector<1x4xf32> to vector<256x4xf32>
    %105 = arith.addf %100, %104 : vector<256x4xf32>
    %106 = vector.shape_cast %105 : vector<256x4xf32> to vector<16x16x4xf32>
    %c0_85 = arith.constant 0 : index
    %c0_86 = arith.constant 0 : index
    %c0_87 = arith.constant 0 : index
    %c0_88 = arith.constant 0 : index
    %107 = vector.load %arg8[%c0_85, %c0_86, %c0_87, %c0_88] : memref<1x16x16x4xf32, #tpu.memory_space<vmem>>, vector<1x16x16x4xf32>
    %108 = vector.shape_cast %107 : vector<1x16x16x4xf32> to vector<16x16x4xf32>
    %109 = vector.shape_cast %106 : vector<16x16x4xf32> to vector<1x16x16x4xf32>
    tpu.vector_store %arg8[%c0_85, %c0_86, %c0_87, %c0_88], %109 {strides = array<i32>} : memref<1x16x16x4xf32, #tpu.memory_space<vmem>>, vector<1x16x16x4xf32>,
    return
  }
  func.func @transform_0(%arg0: i32) -> (i32, i32, i32, i32) {
    %c0_i32 = arith.constant 0 : i32
    %c0_i32_0 = arith.constant 0 : i32
    %c0_i32_1 = arith.constant 0 : i32
    %c0_i32_2 = arith.constant 0 : i32
    return %arg0, %c0_i32, %c0_i32_0, %c0_i32_1 : i32, i32, i32, i32
  }
  func.func @transform_1(%arg0: i32) -> (i32, i32) {
    %c0_i32 = arith.constant 0 : i32
    %c0_i32_0 = arith.constant 0 : i32
    %c0_i32_1 = arith.constant 0 : i32
    return %c0_i32, %c0_i32_0 : i32, i32
  }
  func.func @transform_2(%arg0: i32) -> (i32, i32) {
    %c0_i32 = arith.constant 0 : i32
    %c0_i32_0 = arith.constant 0 : i32
    %c0_i32_1 = arith.constant 0 : i32
    return %c0_i32, %c0_i32_0 : i32, i32
  }
  func.func @transform_3(%arg0: i32) -> (i32, i32, i32) {
    %c0_i32 = arith.constant 0 : i32
    %c0_i32_0 = arith.constant 0 : i32
    %c0_i32_1 = arith.constant 0 : i32
    %c0_i32_2 = arith.constant 0 : i32
    return %c0_i32, %c0_i32_0, %c0_i32_1 : i32, i32, i32
  }
  func.func @transform_4(%arg0: i32) -> (i32, i32) {
    %c0_i32 = arith.constant 0 : i32
    %c0_i32_0 = arith.constant 0 : i32
    %c0_i32_1 = arith.constant 0 : i32
    return %c0_i32, %c0_i32_0 : i32, i32
  }
  func.func @transform_5(%arg0: i32) -> (i32, i32) {
    %c0_i32 = arith.constant 0 : i32
    %c0_i32_0 = arith.constant 0 : i32
    %c0_i32_1 = arith.constant 0 : i32
    return %c0_i32, %c0_i32_0 : i32, i32
  }
  func.func @transform_6(%arg0: i32) -> (i32, i32) {
    %c0_i32 = arith.constant 0 : i32
    %c0_i32_0 = arith.constant 0 : i32
    %c0_i32_1 = arith.constant 0 : i32
    return %c0_i32, %c0_i32_0 : i32, i32
  }
  func.func @transform_7(%arg0: i32) -> (i32, i32, i32, i32) {
    %c0_i32 = arith.constant 0 : i32
    %c0_i32_0 = arith.constant 0 : i32
    %c0_i32_1 = arith.constant 0 : i32
    %c0_i32_2 = arith.constant 0 : i32
    return %arg0, %c0_i32, %c0_i32_0, %c0_i32_1 : i32, i32, i32, i32
  }
}

</mosaic_0001>

<bundles_post_ra>
// kernel: repconv_pallas.1
= control target key start
LH: loop header
LB: loop body
LE: loop exit
PB: predicated region body
PF: predicated region fallthrough
CT: control target
= control target key end

     0   :  { %s3580_s24 = smov 0   ;;  %s5055_s0 = inlined_call_operand.vmem [shape: f32[2,16,16,4], index: 0, kind: input, shape index: {}]   ;;  %s5056_s1 = inlined_call_operand.vmem [shape: bf16[4,24], index: 1, kind: input, shape index: {}]   ;;  %s5057_s2 = inlined_call_operand.vmem [shape: f32[1,20], index: 2, kind: input, shape index: {}]   ;;  %s5058_s3 = inlined_call_operand.vmem [shape: bf16[9,20,20], index: 3, kind: input, shape index: {}]   ;;  %s5059_s4 = inlined_call_operand.vmem [shape: f32[1,16], index: 4, kind: input, shape index: {}]   ;;  %s5060_s5 = inlined_call_operand.vmem [shape: bf16[16,4], index: 5, kind: input, shape index: {}]   ;;  %s5061_s6 = inlined_call_operand.vmem [shape: f32[1,4], index: 6, kind: input, shape index: {}]   ;;  %s5062_s7 = inlined_call_operand.vmem [shape: f32[2,16,16,4], index: 7, kind: output, shape index: {}]  }
   0x1 LB: > { %s3217_s25 = sadd.s32 4294967295, %s3536_s24   ;;  %p3221_p0 = scmp.ge.s32.totalorder %s3536_s24, 1  ;;  %s3536_s24 = sphi %s3580_s24, %s17_s24  }
   0x2   : > { %p237_p1 = scmp.lt.s32.totalorder %s3536_s24, 3 }
   0x4   : > { %p238_p2 = pnand %p3221_p0, %p237_p1 }
   0x6   : > { %241 = sbr.rel (%p238_p2) target bundleno = 1492 (0x5d4), region = 48 }
   0xb   : > { %v328_v0 = vld [vmem:[%s5056_s1] sm:$0x3]  ;;  %vm378_vm0 = vcmask 1041408   ;;  %p269_p3 = scmp.lt.s32.totalorder %s3217_s25, 1  ;;  %s3538_s30 = smov 4   ;;  %vm329_vm1 = vcmask 31744  }
   0xc   : > { %v380_v1 = vsel %vm378_vm0, %v328_v0, 0  ;;  %v3595_v2 = vld [vmem:[%s5057_s2] ss:$0 sm:$0xff]  ;;  %s3539_s12 = smov 124   ;;  %vm510_vm2 = vcmask 162816   ;;  %vm513_vm3 = vcmask 156672  }
   0xd   : > { %389 = vmatpush.bf16.msra.mxu0 %v380_v1  ;;  %s5215_s25 = smov (!%p269_p3, %s3217_s25), 1  ;;  %3480 = vmatpush.bf16.msra.mxu3 %v380_v1  ;;  %511 = vst.msk [vmem:[#allocation2] sm:$0xff] %vm510_vm2, %v3595_v2  ;;  %vm519_vm4 = vcmask 155648   ;;  %vm2860_vm5 = vcmask 130048  }
   0xe   : > { %474 = vrot.lane.b32.xlu0 %v3595_v2, %s3538_s30  ;;  %s3468_s8 = sshll.u32 %s5215_s25, 8  ;;  %512 = vst.msk [vmem:[#allocation2 + $0x8] sm:$0xff] %vm510_vm2, %v3595_v2 }
   0xf   : > { %s3607_s11 = scalar_lea.vmem %s5055_s0, %s3468_s8  ;;  %516 = vst.msk [vmem:[#allocation2 + $0x198] sm:$0xff] %vm510_vm2, %v3595_v2  ;;  %s4886_s26 = scalar_lea.vmem %s5062_s7, %s3468_s8 }
  0x10   : > { %v280_v3 = vld [vmem:[%s3607_s11] sm:$0xff]  ;;  %v281_v4 = vld [vmem:[%s3607_s11 + $0x8] sm:$0xff]  ;;  %v282_v6 = vld [vmem:[%s3607_s11 + $0x10] sm:$0xff]  ;;  %517 = vst.msk [vmem:[#allocation2 + $0x1a0] sm:$0xff] %vm510_vm2, %v3595_v2 }
  0x11   : > { %v312_v5 = vpack.c.bf16 %v281_v4, %v280_v3  ;;  %v283_v7 = vld [vmem:[%s3607_s11 + $0x18] sm:$0xff]  ;;  %v284_v9 = vld [vmem:[%s3607_s11 + $0x20] sm:$0xff]  ;;  %v285_v10 = vld [vmem:[%s3607_s11 + $0x28] sm:$0xff]  ;;  %514 = vst.msk [vmem:[#allocation2 + $0x10] sm:$0x3] %vm513_vm3, %v3595_v2 }
  0x12   : > { %v313_v8 = vpack.c.bf16 %v283_v7, %v282_v6  ;;  %v314_v11 = vpack.c.bf16 %v285_v10, %v284_v9  ;;  %v286_v12 = vld [vmem:[%s3607_s11 + $0x30] sm:$0xff]  ;;  %v287_v13 = vld [vmem:[%s3607_s11 + $0x38] sm:$0xff]  ;;  %v288_v15 = vld [vmem:[%s3607_s11 + $0x40] sm:$0xff]  ;;  %518 = vst.msk [vmem:[#allocation2 + $0x1a8] sm:$0x3] %vm513_vm3, %v3595_v2 }
  0x13   : > { %3226 = vmatmul.msk.bf16.vlgmr.msra.gmra.mxu0 %vm329_vm1, %v312_v5  ;;  %v315_v14 = vpack.c.bf16 %v287_v13, %v286_v12  ;;  %v289_v16 = vld [vmem:[%s3607_s11 + $0x48] sm:$0xff]  ;;  %v306_v18 = vld [vmem:[%s3607_s11 + $0xd0] sm:$0xff]  ;;  %v307_v19 = vld [vmem:[%s3607_s11 + $0xd8] sm:$0xff] }
  0x14   : > { %v316_v17 = vpack.c.bf16 %v289_v16, %v288_v15  ;;  %v325_v20 = vpack.c.bf16 %v307_v19, %v306_v18  ;;  %v290_v21 = vld [vmem:[%s3607_s11 + $0x50] sm:$0xff]  ;;  %v291_v22 = vld [vmem:[%s3607_s11 + $0x58] sm:$0xff]  ;;  %v308_v24 = vld [vmem:[%s3607_s11 + $0xe0] sm:$0xff] }
  0x15   : > { %v317_v23 = vpack.c.bf16 %v291_v22, %v290_v21  ;;  %v309_v25 = vld [vmem:[%s3607_s11 + $0xe8] sm:$0xff]  ;;  %v292_v27 = vld [vmem:[%s3607_s11 + $0x60] sm:$0xff]  ;;  %v310_v30 = vld [vmem:[%s3607_s11 + $0xf0] sm:$0xff] }
  0x16   : > { %3239 = vmatmul.msk.bf16.vlgmr.msra.gmra.mxu3 %vm329_vm1, %v325_v20  ;;  %v326_v26 = vpack.c.bf16 %v309_v25, %v308_v24  ;;  %v293_v28 = vld [vmem:[%s3607_s11 + $0x68] sm:$0xff]  ;;  %v311_v31 = vld [vmem:[%s3607_s11 + $0xf8] sm:$0xff]  ;;  %v294_v33 = vld [vmem:[%s3607_s11 + $0x70] sm:$0xff] }
  0x17   : > { %v318_v29 = vpack.c.bf16 %v293_v28, %v292_v27  ;;  %v327_v32 = vpack.c.bf16 %v311_v31, %v310_v30  ;;  %v295_v34 = vld [vmem:[%s3607_s11 + $0x78] sm:$0xff]  ;;  %v296_v36 = vld [vmem:[%s3607_s11 + $0x80] sm:$0xff]  ;;  %v297_v37 = vld [vmem:[%s3607_s11 + $0x88] sm:$0xff] }
  0x18   : > { %v319_v35 = vpack.c.bf16 %v295_v34, %v294_v33  ;;  %v320_v39 = vpack.c.bf16 %v297_v37, %v296_v36  ;;  %v298_v44 = vld [vmem:[%s3607_s11 + $0x90] sm:$0xff]  ;;  %v299_v45 = vld [vmem:[%s3607_s11 + $0x98] sm:$0xff]  ;;  %v300_v51 = vld [vmem:[%s3607_s11 + $0xa0] sm:$0xff] }
  0x19   : > { %v321_v46 = vpack.c.bf16 %v299_v45, %v298_v44  ;;  %v301_v52 = vld [vmem:[%s3607_s11 + $0xa8] sm:$0xff]  ;;  %v302_v58 = vld [vmem:[%s3607_s11 + $0xb0] sm:$0xff]  ;;  %v303_v59 = vld [vmem:[%s3607_s11 + $0xb8] sm:$0xff] }
  0x1a   : > { %v322_v53 = vpack.c.bf16 %v301_v52, %v300_v51  ;;  %v323_v60 = vpack.c.bf16 %v303_v59, %v302_v58  ;;  %v304_v0 = vld [vmem:[%s3607_s11 + $0xc0] sm:$0xff]  ;;  %v305_v1 = vld [vmem:[%s3607_s11 + $0xc8] sm:$0xff]  ;;  %v3244_v6 = vld [vmem:[%s5058_s3 + $0x14] sm:$0x3] }
  0x1b   : > { %v324_v3 = vpack.c.bf16 %v305_v1, %v304_v0  ;;  %v767_v7 = vld [vmem:[%s5058_s3 + $0x8] sm:$0x3]  ;;  %v3715_v12 = vld [vmem:[%s5057_s2] sm:$0x1]  ;;  %v3471_v16 = vld [vmem:[%s5058_s3 + $0xc] sm:$0xff] }
  0x1c   : > { %v974_v9 = vunpack.c.l.b16 %v767_v7  ;;  %538 = vst.msk [vmem:[#allocation2 + $0x11] sm:$0x1] %vm519_vm4, %v3715_v12  ;;  %v768_v18 = vld [vmem:[#allocation2 + $0x1] sm:$0xff]  ;;  %v769_v19 = vld [vmem:[#allocation2 + $0x9] sm:$0xff] }
  0x1d   : > { %520 = vst.msk [vmem:[#allocation2] sm:$0x1] %vm519_vm4, %v3715_v12  ;;  %v800_v20 = vpack.c.bf16 %v769_v19, %v768_v18  ;;  %v718_v21 = vld [vmem:[#allocation2 + $0x8] sm:$0xff] }
  0x1e   : > { %521 = vst.msk [vmem:[#allocation2 + $0x18] sm:$0x1] %vm519_vm4, %v3715_v12  ;;  %v3310_v24 = vld [vmem:[%s5058_s3 + $0x2c] sm:$0x3] }
  0x1f   : > { %522 = vst.msk [vmem:[#allocation2 + $0x30] sm:$0x1] %vm519_vm4, %v3715_v12  ;;  %v1408_v25 = vunpack.c.l.b16 %v3310_v24 }
  0x20   : > { %523 = vst.msk [vmem:[#allocation2 + $0x48] sm:$0x1] %vm519_vm4, %v3715_v12 }
  0x21   : > { %524 = vst.msk [vmem:[#allocation2 + $0x60] sm:$0x1] %vm519_vm4, %v3715_v12 }
  0x22   : > { %525 = vst.msk [vmem:[#allocation2 + $0x78] sm:$0x1] %vm519_vm4, %v3715_v12 }
  0x23   : > { %3227 = vmatmul.msk.bf16.gmra.mxu0 %vm329_vm1, %v313_v8  ;;  %v825_v8 = vunpack.c.l.b16 %v3244_v6  ;;  %526 = vst.msk [vmem:[#allocation2 + $0x90] sm:$0x1] %vm519_vm4, %v3715_v12 }
  0x24   : > { %527 = vst.msk [vmem:[#allocation2 + $0xa8] sm:$0x1] %vm519_vm4, %v3715_v12  ;;  %v717_v22 = vld [vmem:[#allocation2] sm:$0xff] }
  0x25   : > { %v827_v10 = vpack.c.b16 %v825_v8, %v825_v8  ;;  %528 = vst.msk [vmem:[#allocation2 + $0xc0] sm:$0x1] %vm519_vm4, %v3715_v12 }
  0x26   : > { %3240 = vmatmul.msk.bf16.gmra.mxu3 %vm329_vm1, %v326_v26  ;;  %529 = vst.msk [vmem:[#allocation2 + $0xd8] sm:$0x1] %vm519_vm4, %v3715_v12  ;;  %v1410_v26 = vpack.c.b16 %v1408_v25, %v1408_v25 }
  0x27   : > { %530 = vst.msk [vmem:[#allocation2 + $0xf0] sm:$0x1] %vm519_vm4, %v3715_v12 }
  0x28   : > { %531 = vst.msk [vmem:[#allocation2 + $0x108] sm:$0x1] %vm519_vm4, %v3715_v12  ;;  %v1461_v28 = vsel %vm378_vm0, %v1410_v26, 0 }
  0x29   : > { %532 = vst.msk [vmem:[#allocation2 + $0x120] sm:$0x1] %vm519_vm4, %v3715_v12  ;;  %1469 = vmatpush.bf16.msrb.mxu0 %v1461_v28 }
  0x2a   : > { %533 = vst.msk [vmem:[#allocation2 + $0x138] sm:$0x1] %vm519_vm4, %v3715_v12 }
  0x2b   : > { %534 = vst.msk [vmem:[#allocation2 + $0x150] sm:$0x1] %vm519_vm4, %v3715_v12 }
  0x2c   : > { %535 = vst.msk [vmem:[#allocation2 + $0x168] sm:$0x1] %vm519_vm4, %v3715_v12 }
  0x2d   : > { %536 = vst.msk [vmem:[#allocation2 + $0x180] sm:$0x1] %vm519_vm4, %v3715_v12 }
  0x2e   : > { %537 = vst.msk [vmem:[#allocation2 + $0x198] sm:$0x1] %vm519_vm4, %v3715_v12 }
  0x2f   : > { %539 = vst.msk [vmem:[#allocation2 + $0x29] sm:$0x1] %vm519_vm4, %v3715_v12 }
  0x30   : > { %540 = vst.msk [vmem:[#allocation2 + $0x41] sm:$0x1] %vm519_vm4, %v3715_v12 }
  0x31   : > { %541 = vst.msk [vmem:[#allocation2 + $0x59] sm:$0x1] %vm519_vm4, %v3715_v12 }
  0x32   : > { %542 = vst.msk [vmem:[#allocation2 + $0x71] sm:$0x1] %vm519_vm4, %v3715_v12 }
  0x33   : > { %3228 = vmatmul.msk.bf16.gmra.mxu0 %vm329_vm1, %v314_v11  ;;  %v976_v11 = vpack.c.b16 %v974_v9, %v974_v9  ;;  %543 = vst.msk [vmem:[#allocation2 + $0x89] sm:$0x1] %vm519_vm4, %v3715_v12 }
  0x34   : > { %544 = vst.msk [vmem:[#allocation2 + $0xa1] sm:$0x1] %vm519_vm4, %v3715_v12 }
  0x35   : > { %v1027_v15 = vsel %vm378_vm0, %v976_v11, 0  ;;  %545 = vst.msk [vmem:[#allocation2 + $0xb9] sm:$0x1] %vm519_vm4, %v3715_v12 }
  0x36   : > { %3241 = vmatmul.msk.bf16.gmra.mxu3 %vm329_vm1, %v327_v32  ;;  %1035 = vmatpush.bf16.msra.mxu2 %v1027_v15  ;;  %546 = vst.msk [vmem:[#allocation2 + $0xd1] sm:$0x1] %vm519_vm4, %v3715_v12 }
  0x37   : > { %547 = vst.msk [vmem:[#allocation2 + $0xe9] sm:$0x1] %vm519_vm4, %v3715_v12 }
  0x38   : > { %548 = vst.msk [vmem:[#allocation2 + $0x101] sm:$0x1] %vm519_vm4, %v3715_v12 }
  0x39   : > { %549 = vst.msk [vmem:[#allocation2 + $0x119] sm:$0x1] %vm519_vm4, %v3715_v12 }
  0x3a   : > { %550 = vst.msk [vmem:[#allocation2 + $0x131] sm:$0x1] %vm519_vm4, %v3715_v12 }
  0x3b   : > { %551 = vst.msk [vmem:[#allocation2 + $0x149] sm:$0x1] %vm519_vm4, %v3715_v12 }
  0x3c   : > { %552 = vst.msk [vmem:[#allocation2 + $0x161] sm:$0x1] %vm519_vm4, %v3715_v12 }
  0x3d   : > { %553 = vst.msk [vmem:[#allocation2 + $0x179] sm:$0x1] %vm519_vm4, %v3715_v12 }
  0x3e   : > { %554 = vst.msk [vmem:[#allocation2 + $0x191] sm:$0x1] %vm519_vm4, %v3715_v12 }
  0x3f   : > { %555 = vst.msk [vmem:[#allocation2 + $0x1a9] sm:$0x1] %vm519_vm4, %v3715_v12 }
  0x43   : > { %3229 = vmatmul.msk.bf16.gmra.mxu0 %vm329_vm1, %v315_v14  ;;  %v878_v14 = vsel %vm378_vm0, %v827_v10, 0 }
  0x44   : > { %886 = vmatpush.bf16.msra.mxu1 %v878_v14  ;;  %3481 = vmatpush.bf16.msrb.mxu3 %v878_v14 }
  0x48   : > { %887 = vmatpush.bf16.msra.mxu1 %v3471_v16  ;;  %3482 = vmatpush.bf16.msrb.mxu3 %v3471_v16 }
  0x4b   : > { %3249 = vmatmul.msk.bf16.vlgmr.msra.gmra.mxu1 %vm510_vm2, %v800_v20 }
  0x4c   : > { %3483 = vmatpush.bf16.msra.mxu3 %v1027_v15 }
  0x53   : > { %3230 = vmatmul.msk.bf16.gmra.mxu0 %vm329_vm1, %v316_v17  ;;  %v3470_v17 = vld [vmem:[%s5058_s3] sm:$0xff] }
  0x54   : > { %1036 = vmatpush.bf16.msra.mxu2 %v3470_v17  ;;  %3484 = vmatpush.bf16.msra.mxu3 %v3470_v17 }
  0x63   : > { %3231 = vmatmul.msk.bf16.gmra.mxu0 %vm329_vm1, %v317_v23  ;;  %v749_v23 = vpack.c.bf16 %v718_v21, %v717_v22 }
  0x65   : > { %3269 = vmatmul.msk.bf16.vlgmr.msra.gmra.mxu2 %vm510_vm2, %v749_v23 }
  0x73   : > { %3232 = vmatmul.msk.bf16.gmra.mxu0 %vm329_vm1, %v318_v29  ;;  %v3473_v29 = vld [vmem:[%s5058_s3 + $0x24] sm:$0xff] }
  0x74   : > { %1470 = vmatpush.bf16.msrb.mxu0 %v3473_v29 }
  0x80   : > { %v3644_v38 = vpop.permute.xlu0 %474 }
  0x83   : > { %3233 = vmatmul.msk.bf16.gmra.mxu0 %vm329_vm1, %v319_v35 }
  0x90   : > { %v3646_v40 = vpop.f32.mrf.mxu0 }
  0x91   : > { %5102 = vst [vmem:[#allocation3_spill] sm:$0xff] %v3646_v40  ;;  %v477_v41 = vadd.f32 %v3644_v38, %v3646_v40 }
  0x93   : > { %3234 = vmatmul.msk.bf16.gmra.mxu0 %vm329_vm1, %v320_v39  ;;  %588 = vrot.lane.b32.xlu0 %v477_v41, %s3539_s12 }
  0x98   : > { %v3652_v42 = vpop.f32.mrf.mxu0 }
  0x99   : > { %5103 = vst [vmem:[#allocation4_spill] sm:$0xff] %v3652_v42  ;;  %v478_v43 = vadd.f32 %v3644_v38, %v3652_v42  ;;  %v3870_v18 = vpop.f32.mrf.mxu3 }
  0x9a   : > { %5126 = vst [vmem:[#allocation27_spill] sm:$0xff] %v3870_v18 }
  0x9b   : > { %590 = vrot.lane.b32.xlu1 %v478_v43, %s3539_s12 }
  0xa0   : > { %v3659_v47 = vpop.f32.mrf.mxu0 }
  0xa1   : > { %5104 = vst [vmem:[#allocation5_spill] sm:$0xff] %v3659_v47  ;;  %v479_v48 = vadd.f32 %v3644_v38, %v3659_v47  ;;  %v3882_v22 = vpop.f32.mrf.mxu3 }
  0xa2   : > { %5128 = vst [vmem:[#allocation29_spill] sm:$0xff] %v3882_v22  ;;  %v504_v25 = vadd.f32 %v3644_v38, %v3882_v22 }
  0xa3   : > { %3235 = vmatmul.msk.bf16.gmra.mxu0 %vm329_vm1, %v321_v46  ;;  %592 = vrot.lane.b32.xlu1 %v479_v48, %s3539_s12 }
  0xa8   : > { %v3665_v49 = vpop.f32.mrf.mxu0 }
  0xa9   : > { %5105 = vst [vmem:[#allocation6_spill] sm:$0xff] %v3665_v49  ;;  %v480_v50 = vadd.f32 %v3644_v38, %v3665_v49  ;;  %v3895_v28 = vpop.f32.mrf.mxu3 }
  0xaa   : > { %5130 = vst [vmem:[#allocation31_spill] sm:$0xff] %v3895_v28 }
  0xab   : > { %594 = vrot.lane.b32.xlu2 %v480_v50, %s3539_s12 }
  0xb0   : > { %v3672_v54 = vpop.f32.mrf.mxu0 }
  0xb1   : > { %5106 = vst [vmem:[#allocation7_spill] sm:$0xff] %v3672_v54  ;;  %v481_v55 = vadd.f32 %v3644_v38, %v3672_v54 }
  0xb3   : > { %3236 = vmatmul.msk.bf16.gmra.mxu0 %vm329_vm1, %v322_v53  ;;  %596 = vrot.lane.b32.xlu2 %v481_v55, %s3539_s12 }
  0xb8   : > { %v3678_v56 = vpop.f32.mrf.mxu0 }
  0xb9   : > { %5107 = vst [vmem:[#allocation8_spill] sm:$0xff] %v3678_v56  ;;  %v482_v57 = vadd.f32 %v3644_v38, %v3678_v56 }
  0xbb   : > { %598 = vrot.lane.b32.xlu0 %v482_v57, %s3539_s12 }
  0xc0   : > { %v3685_v61 = vpop.f32.mrf.mxu0 }
  0xc1   : > { %5108 = vst [vmem:[#allocation9_spill] sm:$0xff] %v3685_v61  ;;  %v483_v62 = vadd.f32 %v3644_v38, %v3685_v61 }
  0xc3   : > { %3237 = vmatmul.msk.bf16.gmra.mxu0 %vm329_vm1, %v323_v60  ;;  %600 = vrot.lane.b32.xlu0 %v483_v62, %s3539_s12 }
  0xc8   : > { %v3691_v63 = vpop.f32.mrf.mxu0 }
  0xc9   : > { %5109 = vst [vmem:[#allocation10_spill] sm:$0xff] %v3691_v63  ;;  %v484_v16 = vadd.f32 %v3644_v38, %v3691_v63 }
  0xd0   : > { %v3695_v4 = vpop.f32.mrf.mxu0 }
  0xd1   : > { %5110 = vst [vmem:[#allocation11_spill] sm:$0xff] %v3695_v4  ;;  %v485_v20 = vadd.f32 %v3644_v38, %v3695_v4 }
  0xd3   : > { %3238 = vmatmul.msk.bf16.gmra.mxu0 %vm329_vm1, %v324_v3 }
  0xd8   : > { %v3698_v5 = vpop.f32.mrf.mxu0 }
  0xd9   : > { %5111 = vst [vmem:[#allocation12_spill] sm:$0xff] %v3698_v5  ;;  %v486_v24 = vadd.f32 %v3644_v38, %v3698_v5 }
  0xe0   : > { %v3717_v13 = vpop.f32.mrf.mxu0 }
  0xe1   : > { %5112 = vst [vmem:[#allocation13_spill] sm:$0xff] %v3717_v13  ;;  %v487_v29 = vadd.f32 %v3644_v38, %v3717_v13 }
  0xe8   : > { %v3741_v2 = vpop.f32.mrf.mxu0 }
  0xe9   : > { %5113 = vst [vmem:[#allocation14_spill] sm:$0xff] %v3741_v2 }
  0xf0   : > { %v3764_v27 = vpop.f32.mrf.mxu0 }
  0xf1   : > { %5114 = vst [vmem:[#allocation15_spill] sm:$0xff] %v3764_v27 }
  0xf8   : > { %v3786_v30 = vpop.f32.mrf.mxu0 }
  0xf9   : > { %5115 = vst [vmem:[#allocation16_spill] sm:$0xff] %v3786_v30 }
 0x100   : > { %v3804_v31 = vpop.f32.mrf.mxu0 }
 0x101   : > { %5116 = vst [vmem:[#allocation17_spill] sm:$0xff] %v3804_v31 }
 0x105   : > { %v589_v32 = vpop.permute.xlu0 %588  ;;  %v595_v33 = vpop.permute.xlu2 %594 }
 0x106   : > { %685 = vst.msk [vmem:[#allocation2 + $0x19] sm:$0xff] %vm510_vm2, %v589_v32  ;;  %v505_v32 = vadd.f32 %v3644_v38, %v3895_v28 }
 0x107   : > { %688 = vst.msk [vmem:[#allocation2 + $0x39] sm:$0xff] %vm510_vm2, %v595_v33  ;;  %v503_v33 = vadd.f32 %v3644_v38, %v3870_v18 }
 0x108   : > { %v3820_v34 = vpop.f32.mrf.mxu0 }
 0x109   : > { %5117 = vst [vmem:[#allocation18_spill] sm:$0xff] %v3820_v34 }
 0x10d   : > { %v591_v35 = vpop.permute.xlu1 %590  ;;  %v597_v36 = vpop.permute.xlu2 %596  ;;  %v770_v39 = vld [vmem:[#allocation2 + $0x19] sm:$0xff] }
 0x10e   : > { %686 = vst.msk [vmem:[#allocation2 + $0x21] sm:$0xff] %vm510_vm2, %v591_v35  ;;  %v719_v44 = vld [vmem:[#allocation2 + $0x18] sm:$0xff]  ;;  %v3906_v35 = vpop.f32.mrf.mxu3 }
 0x10f   : > { %689 = vst.msk [vmem:[#allocation2 + $0x49] sm:$0xff] %vm510_vm2, %v597_v36  ;;  %v773_v57 = vld [vmem:[#allocation2 + $0x39] sm:$0xff]  ;;  %v490_v36 = vadd.f32 %v3644_v38, %v3786_v30 }
 0x110   : > { %v3826_v37 = vpop.f32.mrf.mxu0  ;;  %5131 = vst [vmem:[#allocation32_spill] sm:$0xff] %v3906_v35  ;;  %v1820_v56 = vld [vmem:[#allocation2 + $0x3a] sm:$0xff] }
 0x111   : > { %5118 = vst [vmem:[#allocation19_spill] sm:$0xff] %v3826_v37 }
 0x115   : > { %v593_v41 = vpop.permute.xlu1 %592  ;;  %v771_v43 = vld [vmem:[#allocation2 + $0x21] sm:$0xff] }
 0x116   : > { %v720_v45 = vld [vmem:[#allocation2 + $0x20] sm:$0xff]  ;;  %687 = vst.msk [vmem:[#allocation2 + $0x31] sm:$0xff] %vm510_vm2, %v593_v41  ;;  %v3829_v46 = vpack.c.bf16 %v771_v43, %v770_v39  ;;  %v774_v1 = vld [vmem:[#allocation2 + $0x49] sm:$0xff]  ;;  %v506_v39 = vadd.f32 %v3644_v38, %v3906_v35  ;;  %v488_v41 = vadd.f32 %v3644_v38, %v3741_v2  ;;  %v3333_v43 = vld [vmem:[%s5058_s3 + $0x38] sm:$0x3] }
 0x117   : > { %v750_v48 = vpack.c.bf16 %v720_v45, %v719_v44  ;;  %v723_v7 = vld [vmem:[#allocation2 + $0x48] sm:$0xff]  ;;  %v1641_v44 = vunpack.c.l.b16 %v3333_v43 }
 0x118   : > { %v3831_v50 = vpop.f32.mrf.mxu0  ;;  %3250 = vmatmul.msk.bf16.gmra.mxu1 %vm510_vm2, %v3829_v46 }
 0x119   : > { %5119 = vst [vmem:[#allocation20_spill] sm:$0xff] %v3831_v50  ;;  %3270 = vmatmul.msk.bf16.gmra.mxu2 %vm510_vm2, %v750_v48  ;;  %3315 = vmatmul.msk.bf16.vlgmr.msrb.gmra.mxu0 %vm510_vm2, %v750_v48  ;;  %v1643_v45 = vpack.c.b16 %v1641_v44, %v1641_v44  ;;  %v491_v48 = vadd.f32 %v3644_v38, %v3804_v31 }
 0x11d   : > { %v772_v52 = vld [vmem:[#allocation2 + $0x31] sm:$0xff] }
 0x11e   : > { %v721_v53 = vld [vmem:[#allocation2 + $0x30] sm:$0xff]  ;;  %v722_v55 = vld [vmem:[#allocation2 + $0x38] sm:$0xff]  ;;  %v3839_v58 = vpack.c.bf16 %v773_v57, %v772_v52  ;;  %v493_v52 = vadd.f32 %v3644_v38, %v3826_v37  ;;  %v1694_v57 = vsel %vm378_vm0, %v1643_v45, 0 }
 0x11f   : > { %v751_v59 = vpack.c.bf16 %v722_v55, %v721_v53  ;;  %v889_v53 = vpop.f32.mrf.mxu1  ;;  %v1038_v55 = vpop.f32.mrf.mxu2  ;;  %1702 = vmatpush.bf16.msrb.mxu1 %v1694_v57 }
 0x120   : > { %v3837_v51 = vpop.f32.mrf.mxu0 }
 0x121   : > { %5120 = vst [vmem:[#allocation21_spill] sm:$0xff] %v3837_v51 }
 0x128   : > { %v3841_v60 = vpop.f32.mrf.mxu0  ;;  %3251 = vmatmul.msk.bf16.gmra.mxu1 %vm510_vm2, %v3839_v58 }
 0x129   : > { %5121 = vst [vmem:[#allocation22_spill] sm:$0xff] %v3841_v60  ;;  %3271 = vmatmul.msk.bf16.gmra.mxu2 %vm510_vm2, %v751_v59  ;;  %3316 = vmatmul.msk.bf16.gmra.mxu0 %vm510_vm2, %v751_v59  ;;  %v489_v59 = vadd.f32 %v3644_v38, %v3764_v27 }
 0x12d   : > { %v599_v62 = vpop.permute.xlu0 %598 }
 0x12e   : > { %690 = vst.msk [vmem:[#allocation2 + $0x51] sm:$0xff] %vm510_vm2, %v599_v62  ;;  %v3927_v62 = vadd.f32 %v1038_v55, %v889_v53 }
 0x130   : > { %v3848_v0 = vpop.f32.mrf.mxu0 }
 0x131   : > { %5122 = vst [vmem:[#allocation23_spill] sm:$0xff] %v3848_v0 }
 0x135   : > { %v601_v3 = vpop.permute.xlu0 %600  ;;  %v775_v6 = vld [vmem:[#allocation2 + $0x51] sm:$0xff] }
 0x136   : > { %v724_v8 = vld [vmem:[#allocation2 + $0x50] sm:$0xff]  ;;  %691 = vst.msk [vmem:[#allocation2 + $0x61] sm:$0xff] %vm510_vm2, %v601_v3  ;;  %v3851_v9 = vpack.c.bf16 %v775_v6, %v774_v1  ;;  %v494_v1 = vadd.f32 %v3644_v38, %v3831_v50  ;;  %v496_v3 = vadd.f32 %v3644_v38, %v3841_v60  ;;  %v492_v6 = vadd.f32 %v3644_v38, %v3820_v34 }
 0x137   : > { %v752_v10 = vpack.c.bf16 %v724_v8, %v723_v7  ;;  %v3940_v7 = vpop.f32.mrf.mxu3  ;;  %v1821_v28 = vld [vmem:[#allocation2 + $0x4a] sm:$0xff]  ;;  %v1822_v18 = vld [vmem:[#allocation2 + $0x52] sm:$0xff] }
 0x138   : > { %v3853_v11 = vpop.f32.mrf.mxu0  ;;  %3252 = vmatmul.msk.bf16.gmra.mxu1 %vm510_vm2, %v3851_v9  ;;  %5132 = vst [vmem:[#allocation33_spill] sm:$0xff] %v3940_v7  ;;  %v507_v8 = vadd.f32 %v3644_v38, %v3940_v7 }
 0x139   : > { %5123 = vst [vmem:[#allocation24_spill] sm:$0xff] %v3853_v11  ;;  %3272 = vmatmul.msk.bf16.gmra.mxu2 %vm510_vm2, %v752_v10  ;;  %3317 = vmatmul.msk.bf16.gmra.mxu0 %vm510_vm2, %v752_v10  ;;  %v497_v10 = vadd.f32 %v3644_v38, %v3848_v0 }
 0x140   : > { %v3859_v12 = vpop.f32.mrf.mxu0 }
 0x141   : > { %5124 = vst [vmem:[#allocation25_spill] sm:$0xff] %v3859_v12  ;;  %v499_v14 = vadd.f32 %v3644_v38, %v3859_v12 }
 0x143   : > { %632 = vrot.lane.b32.xlu1 %v499_v14, %s3539_s12  ;;  %v495_v14 = vadd.f32 %v3644_v38, %v3837_v51 }
 0x148   : > { %v3864_v15 = vpop.f32.mrf.mxu0 }
 0x149   : > { %5125 = vst [vmem:[#allocation26_spill] sm:$0xff] %v3864_v15  ;;  %v500_v17 = vadd.f32 %v3644_v38, %v3864_v15 }
 0x14b   : > { %602 = vrot.lane.b32.xlu1 %v484_v16, %s3539_s12  ;;  %634 = vrot.lane.b32.xlu2 %v500_v17, %s3539_s12  ;;  %v3952_v16 = vpop.f32.mrf.mxu3 }
 0x14c   : > { %5133 = vst [vmem:[#allocation34_spill] sm:$0xff] %v3952_v16  ;;  %v508_v17 = vadd.f32 %v3644_v38, %v3952_v16 }
 0x150   : > { %v3874_v19 = vpop.f32.mrf.mxu0 }
 0x151   : > { %5127 = vst [vmem:[#allocation28_spill] sm:$0xff] %v3874_v19  ;;  %v501_v21 = vadd.f32 %v3644_v38, %v3874_v19 }
 0x153   : > { %604 = vrot.lane.b32.xlu1 %v485_v20, %s3539_s12  ;;  %636 = vrot.lane.b32.xlu2 %v501_v21, %s3539_s12  ;;  %v498_v20 = vadd.f32 %v3644_v38, %v3853_v11  ;;  %v3959_v21 = vpop.f32.mrf.mxu1 }
 0x158   : > { %v3884_v23 = vpop.f32.mrf.mxu0 }
 0x159   : > { %5129 = vst [vmem:[#allocation30_spill] sm:$0xff] %v3884_v23  ;;  %v502_v26 = vadd.f32 %v3644_v38, %v3884_v23 }
 0x15b   : > { %642 = vrot.lane.b32.xlu1 %v504_v25, %s3539_s12  ;;  %606 = vrot.lane.b32.xlu2 %v486_v24, %s3539_s12  ;;  %v3962_v24 = vpop.f32.mrf.mxu2 }
 0x15c   : > { %638 = vrot.lane.b32.xlu0 %v502_v26, %s3539_s12 }
 0x163   : > { %644 = vrot.lane.b32.xlu1 %v505_v32, %s3539_s12  ;;  %608 = vrot.lane.b32.xlu2 %v487_v29, %s3539_s12 }
 0x164   : > { %640 = vrot.lane.b32.xlu0 %v503_v33, %s3539_s12 }
 0x16b   : > { %614 = vrot.lane.b32.xlu1 %v490_v36, %s3539_s12  ;;  %646 = vrot.lane.b32.xlu2 %v506_v39, %s3539_s12 }
 0x16c   : > { %610 = vrot.lane.b32.xlu0 %v488_v41, %s3539_s12 }
 0x173   : > { %620 = vrot.lane.b32.xlu1 %v493_v52, %s3539_s12  ;;  %616 = vrot.lane.b32.xlu2 %v491_v48, %s3539_s12 }
 0x174   : > { %612 = vrot.lane.b32.xlu0 %v489_v59, %s3539_s12 }
 0x17b   : > { %626 = vrot.lane.b32.xlu1 %v496_v3, %s3539_s12  ;;  %622 = vrot.lane.b32.xlu2 %v494_v1, %s3539_s12 }
 0x17c   : > { %618 = vrot.lane.b32.xlu0 %v492_v6, %s3539_s12 }
 0x183   : > { %648 = vrot.lane.b32.xlu1 %v507_v8, %s3539_s12  ;;  %628 = vrot.lane.b32.xlu2 %v497_v10, %s3539_s12  ;;  %v776_v10 = vld [vmem:[#allocation2 + $0x61] sm:$0xff] }
 0x184   : > { %624 = vrot.lane.b32.xlu0 %v495_v14, %s3539_s12 }
 0x18b   : > { %650 = vrot.lane.b32.xlu2 %v508_v17, %s3539_s12 }
 0x18c   : > { %630 = vrot.lane.b32.xlu0 %v498_v20, %s3539_s12  ;;  %v725_v20 = vld [vmem:[#allocation2 + $0x60] sm:$0xff] }
 0x195   : > { %v894_v25 = vpop.f32.mrf.mxu1 }
 0x19c   : > { %v1043_v26 = vpop.f32.mrf.mxu2 }
 0x19d   : > { %v3964_v29 = vadd.f32 %v1043_v26, %v894_v25  ;;  %v3966_v32 = vpop.f32.mrf.mxu1 }
 0x1a4   : > { %v3968_v33 = vpop.f32.mrf.mxu2 }
 0x1a5   : > { %v635_v36 = vpop.permute.xlu2 %634  ;;  %v899_v38 = vpop.f32.mrf.mxu1 }
 0x1a6   : > { %708 = vst.msk [vmem:[#allocation2 + $0x129] sm:$0xff] %vm510_vm2, %v635_v36 }
 0x1ac   : > { %v1048_v39 = vpop.f32.mrf.mxu2 }
 0x1ad   : > { %v3971_v41 = vadd.f32 %v1048_v39, %v899_v38  ;;  %v637_v43 = vpop.permute.xlu2 %636  ;;  %v3974_v44 = vpop.f32.mrf.mxu1  ;;  %v793_v3 = vld [vmem:[#allocation2 + $0x129] sm:$0xff] }
 0x1ae   : > { %709 = vst.msk [vmem:[#allocation2 + $0x139] sm:$0xff] %vm510_vm2, %v637_v43 }
 0x1b4   : > { %v3976_v45 = vpop.f32.mrf.mxu2 }
 0x1b5   : > { %v633_v48 = vpop.permute.xlu1 %632  ;;  %v607_v52 = vpop.permute.xlu2 %606 }
 0x1b6   : > { %707 = vst.msk [vmem:[#allocation2 + $0x121] sm:$0xff] %vm510_vm2, %v633_v48  ;;  %v904_v53 = vpop.f32.mrf.mxu1 }
 0x1b7   : > { %694 = vst.msk [vmem:[#allocation2 + $0x81] sm:$0xff] %vm510_vm2, %v607_v52  ;;  %v3474_v52 = vld [vmem:[%s5058_s3 + $0x30] sm:$0xff] }
 0x1b8   : > { %1703 = vmatpush.bf16.msrb.mxu1 %v3474_v52 }
 0x1bc   : > { %v1053_v55 = vpop.f32.mrf.mxu2 }
 0x1bd   : > { %v3980_v57 = vadd.f32 %v1053_v55, %v904_v53  ;;  %v603_v59 = vpop.permute.xlu1 %602  ;;  %v792_v1 = vld [vmem:[#allocation2 + $0x121] sm:$0xff]  ;;  %v609_v6 = vpop.permute.xlu2 %608 }
 0x1be   : > { %692 = vst.msk [vmem:[#allocation2 + $0x69] sm:$0xff] %vm510_vm2, %v603_v59  ;;  %v812_v8 = vpack.c.bf16 %v793_v3, %v792_v1  ;;  %v779_v3 = vld [vmem:[#allocation2 + $0x81] sm:$0xff] }
 0x1bf   : > { %695 = vst.msk [vmem:[#allocation2 + $0x91] sm:$0xff] %vm510_vm2, %v609_v6  ;;  %v1826_v42 = vld [vmem:[#allocation2 + $0x82] sm:$0xff] }
 0x1c0   : > { %3261 = vmatmul.msk.bf16.vlgmr.msrb.gmra.mxu3 %vm510_vm2, %v812_v8 }
 0x1c5   : > { %v605_v14 = vpop.permute.xlu1 %604  ;;  %v777_v17 = vld [vmem:[#allocation2 + $0x69] sm:$0xff]  ;;  %v647_v26 = vpop.permute.xlu2 %646 }
 0x1c6   : > { %v726_v25 = vld [vmem:[#allocation2 + $0x68] sm:$0xff]  ;;  %693 = vst.msk [vmem:[#allocation2 + $0x79] sm:$0xff] %vm510_vm2, %v605_v14  ;;  %v3986_v36 = vpack.c.bf16 %v777_v17, %v776_v10  ;;  %v794_v17 = vld [vmem:[#allocation2 + $0x139] sm:$0xff] }
 0x1c7   : > { %v753_v38 = vpack.c.bf16 %v726_v25, %v725_v20  ;;  %714 = vst.msk [vmem:[#allocation2 + $0x171] sm:$0xff] %vm510_vm2, %v647_v26  ;;  %v1823_v0 = vld [vmem:[#allocation2 + $0x62] sm:$0xff]  ;;  %v1824_v51 = vld [vmem:[#allocation2 + $0x6a] sm:$0xff] }
 0x1c8   : > { %3253 = vmatmul.msk.bf16.gmra.mxu1 %vm510_vm2, %v3986_v36  ;;  %v4180_v13 = vpack.c.bf16 %v1824_v51, %v1823_v0 }
 0x1c9   : > { %3273 = vmatmul.msk.bf16.gmra.mxu2 %vm510_vm2, %v753_v38  ;;  %3318 = vmatmul.msk.bf16.gmra.mxu0 %vm510_vm2, %v753_v38 }
 0x1ca   : > { %5137 = vst [vmem:[#allocation38_spill] sm:$0xff] %v4180_v13 }
 0x1cd   : > { %v643_v39 = vpop.permute.xlu1 %642  ;;  %v617_v43 = vpop.permute.xlu2 %616  ;;  %v778_v53 = vld [vmem:[#allocation2 + $0x79] sm:$0xff] }
 0x1ce   : > { %712 = vst.msk [vmem:[#allocation2 + $0x159] sm:$0xff] %vm510_vm2, %v643_v39  ;;  %v639_v48 = vpop.permute.xlu0 %638  ;;  %v727_v55 = vld [vmem:[#allocation2 + $0x78] sm:$0xff]  ;;  %v728_v59 = vld [vmem:[#allocation2 + $0x80] sm:$0xff]  ;;  %v4000_v10 = vpack.c.bf16 %v779_v3, %v778_v53 }
 0x1cf   : > { %699 = vst.msk [vmem:[#allocation2 + $0xc1] sm:$0xff] %vm510_vm2, %v617_v43  ;;  %v754_v14 = vpack.c.bf16 %v728_v59, %v727_v55  ;;  %v780_v55 = vld [vmem:[#allocation2 + $0x91] sm:$0xff]  ;;  %v1825_v54 = vld [vmem:[#allocation2 + $0x7a] sm:$0xff] }
 0x1d0   : > { %710 = vst.msk [vmem:[#allocation2 + $0x141] sm:$0xff] %vm510_vm2, %v639_v48  ;;  %v729_v59 = vld [vmem:[#allocation2 + $0x90] sm:$0xff] }
 0x1d5   : > { %v645_v1 = vpop.permute.xlu1 %644  ;;  %v623_v6 = vpop.permute.xlu2 %622  ;;  %v797_v3 = vld [vmem:[#allocation2 + $0x159] sm:$0xff] }
 0x1d6   : > { %713 = vst.msk [vmem:[#allocation2 + $0x169] sm:$0xff] %vm510_vm2, %v645_v1  ;;  %v641_v8 = vpop.permute.xlu0 %640 }
 0x1d7   : > { %702 = vst.msk [vmem:[#allocation2 + $0xe1] sm:$0xff] %vm510_vm2, %v623_v6  ;;  %v795_v20 = vld [vmem:[#allocation2 + $0x141] sm:$0xff] }
 0x1d8   : > { %711 = vst.msk [vmem:[#allocation2 + $0x151] sm:$0xff] %vm510_vm2, %v641_v8  ;;  %3254 = vmatmul.msk.bf16.gmra.mxu1 %vm510_vm2, %v4000_v10  ;;  %v813_v25 = vpack.c.bf16 %v795_v20, %v794_v17  ;;  %v3287_v20 = vld [vmem:[%s5058_s3 + $0x20] sm:$0x3] }
 0x1d9   : > { %3274 = vmatmul.msk.bf16.gmra.mxu2 %vm510_vm2, %v754_v14  ;;  %3319 = vmatmul.msk.bf16.gmra.mxu0 %vm510_vm2, %v754_v14 }
 0x1da   : > { %3262 = vmatmul.msk.bf16.gmra.mxu3 %vm510_vm2, %v813_v25  ;;  %v1175_v25 = vunpack.c.l.b16 %v3287_v20 }
 0x1dd   : > { %v615_v26 = vpop.permute.xlu1 %614  ;;  %v629_v38 = vpop.permute.xlu2 %628  ;;  %v747_v50 = vld [vmem:[#allocation2 + $0x168] sm:$0xff]  ;;  %v748_v34 = vld [vmem:[#allocation2 + $0x170] sm:$0xff] }
 0x1de   : > { %698 = vst.msk [vmem:[#allocation2 + $0xb1] sm:$0xff] %vm510_vm2, %v615_v26  ;;  %v611_v39 = vpop.permute.xlu0 %610 }
 0x1df   : > { %705 = vst.msk [vmem:[#allocation2 + $0x109] sm:$0xff] %vm510_vm2, %v629_v38  ;;  %v796_v48 = vld [vmem:[#allocation2 + $0x151] sm:$0xff] }
 0x1e0   : > { %696 = vst.msk [vmem:[#allocation2 + $0x99] sm:$0xff] %vm510_vm2, %v611_v39  ;;  %v814_v14 = vpack.c.bf16 %v797_v3, %v796_v48  ;;  %v1177_v39 = vpack.c.b16 %v1175_v25, %v1175_v25 }
 0x1e5   : > { %v621_v43 = vpop.permute.xlu1 %620  ;;  %v651_v52 = vpop.permute.xlu2 %650  ;;  %v783_v3 = vld [vmem:[#allocation2 + $0xb1] sm:$0xff] }
 0x1e6   : > { %701 = vst.msk [vmem:[#allocation2 + $0xd9] sm:$0xff] %vm510_vm2, %v621_v43  ;;  %v613_v53 = vpop.permute.xlu0 %612  ;;  %v1228_v43 = vsel %vm378_vm0, %v1177_v39, 0  ;;  %v742_v39 = vld [vmem:[#allocation2 + $0x128] sm:$0xff] }
 0x1e7   : > { %716 = vst.msk [vmem:[#allocation2 + $0x189] sm:$0xff] %vm510_vm2, %v651_v52  ;;  %v781_v1 = vld [vmem:[#allocation2 + $0x99] sm:$0xff]  ;;  %1236 = vmatpush.bf16.msrb.mxu3 %v1228_v43  ;;  %v790_v2 = vld [vmem:[#allocation2 + $0x109] sm:$0xff] }
 0x1e8   : > { %v730_v6 = vld [vmem:[#allocation2 + $0x98] sm:$0xff]  ;;  %697 = vst.msk [vmem:[#allocation2 + $0xa9] sm:$0xff] %vm510_vm2, %v613_v53  ;;  %v4015_v8 = vpack.c.bf16 %v781_v1, %v780_v55  ;;  %v798_v53 = vld [vmem:[#allocation2 + $0x169] sm:$0xff] }
 0x1e9   : > { %v755_v17 = vpack.c.bf16 %v730_v6, %v729_v59  ;;  %v799_v6 = vld [vmem:[#allocation2 + $0x171] sm:$0xff] }
 0x1ea   : > { %3255 = vmatmul.msk.bf16.gmra.mxu1 %vm510_vm2, %v4015_v8  ;;  %3263 = vmatmul.msk.bf16.gmra.mxu3 %vm510_vm2, %v814_v14 }
 0x1eb   : > { %3275 = vmatmul.msk.bf16.gmra.mxu2 %vm510_vm2, %v755_v17  ;;  %3320 = vmatmul.msk.bf16.gmra.mxu0 %vm510_vm2, %v755_v17  ;;  %v815_v17 = vpack.c.bf16 %v799_v6, %v798_v53  ;;  %v733_v53 = vld [vmem:[#allocation2 + $0xc0] sm:$0xff] }
 0x1ed   : > { %v627_v26 = vpop.permute.xlu1 %626  ;;  %v786_v6 = vld [vmem:[#allocation2 + $0xd9] sm:$0xff] }
 0x1ee   : > { %704 = vst.msk [vmem:[#allocation2 + $0xf9] sm:$0xff] %vm510_vm2, %v627_v26  ;;  %v619_v38 = vpop.permute.xlu0 %618 }
 0x1ef   : > { %700 = vst.msk [vmem:[#allocation2 + $0xc9] sm:$0xff] %vm510_vm2, %v619_v38  ;;  %v782_v52 = vld [vmem:[#allocation2 + $0xa9] sm:$0xff]  ;;  %v741_v38 = vld [vmem:[#allocation2 + $0x120] sm:$0xff] }
 0x1f0   : > { %v731_v59 = vld [vmem:[#allocation2 + $0xa8] sm:$0xff]  ;;  %v732_v1 = vld [vmem:[#allocation2 + $0xb0] sm:$0xff]  ;;  %v4030_v14 = vpack.c.bf16 %v783_v3, %v782_v52  ;;  %v4051_v3 = vpop.f32.mrf.mxu0 }
 0x1f1   : > { %v756_v20 = vpack.c.bf16 %v732_v1, %v731_v59  ;;  %v3472_v1 = vld [vmem:[%s5058_s3 + $0x18] sm:$0xff] }
 0x1f2   : > { %1237 = vmatpush.bf16.msrb.mxu3 %v3472_v1 }
 0x1f5   : > { %v649_v48 = vpop.permute.xlu1 %648  ;;  %v789_v22 = vld [vmem:[#allocation2 + $0xf9] sm:$0xff] }
 0x1f6   : > { %715 = vst.msk [vmem:[#allocation2 + $0x181] sm:$0xff] %vm510_vm2, %v649_v48  ;;  %v625_v55 = vpop.permute.xlu0 %624  ;;  %v785_v26 = vld [vmem:[#allocation2 + $0xc9] sm:$0xff]  ;;  %v784_v48 = vld [vmem:[#allocation2 + $0xc1] sm:$0xff] }
 0x1f7   : > { %703 = vst.msk [vmem:[#allocation2 + $0xf1] sm:$0xff] %vm510_vm2, %v625_v55  ;;  %v734_v43 = vld [vmem:[#allocation2 + $0xc8] sm:$0xff]  ;;  %v4038_v52 = vpack.c.bf16 %v785_v26, %v784_v48  ;;  %v4040_v55 = vpack.c.bf16 %v742_v39, %v741_v38  ;;  %v736_v26 = vld [vmem:[#allocation2 + $0xe0] sm:$0xff]  ;;  %v743_v39 = vld [vmem:[#allocation2 + $0x138] sm:$0xff] }
 0x1f8   : > { %v757_v59 = vpack.c.bf16 %v734_v43, %v733_v53  ;;  %v787_v38 = vld [vmem:[#allocation2 + $0xe1] sm:$0xff] }
 0x1f9   : > { %v4055_v43 = vpack.c.bf16 %v787_v38, %v786_v6 }
 0x1fa   : > { %3256 = vmatmul.msk.bf16.gmra.mxu1 %vm510_vm2, %v4030_v14  ;;  %3264 = vmatmul.msk.bf16.gmra.mxu3 %vm510_vm2, %v815_v17  ;;  %v744_v17 = vld [vmem:[#allocation2 + $0x140] sm:$0xff] }
 0x1fb   : > { %3276 = vmatmul.msk.bf16.gmra.mxu2 %vm510_vm2, %v756_v20  ;;  %3321 = vmatmul.msk.bf16.gmra.mxu0 %vm510_vm2, %v756_v20  ;;  %v4053_v20 = vpop.f32.mrf.mxu0  ;;  %v4057_v48 = vpack.c.bf16 %v744_v17, %v743_v39  ;;  %v746_v39 = vld [vmem:[#allocation2 + $0x158] sm:$0xff] }
 0x1fd   : > { %v1381_v4 = vld [vmem:[#allocation2 + $0x180] sm:$0xff]  ;;  %v1382_v61 = vld [vmem:[#allocation2 + $0x188] sm:$0xff] }
 0x1fe   : > { %v631_v25 = vpop.permute.xlu0 %630  ;;  %v737_v16 = vld [vmem:[#allocation2 + $0xf0] sm:$0xff]  ;;  %v738_v35 = vld [vmem:[#allocation2 + $0xf8] sm:$0xff]  ;;  %v1398_v40 = vpack.c.bf16 %v1382_v61, %v1381_v4 }
 0x1ff   : > { %706 = vst.msk [vmem:[#allocation2 + $0x111] sm:$0xff] %vm510_vm2, %v631_v25  ;;  %v735_v25 = vld [vmem:[#allocation2 + $0xd8] sm:$0xff] }
 0x200   : > { %v758_v53 = vpack.c.bf16 %v736_v26, %v735_v25  ;;  %v788_v25 = vld [vmem:[#allocation2 + $0xf1] sm:$0xff] }
 0x201   : > { %v745_v26 = vld [vmem:[#allocation2 + $0x150] sm:$0xff]  ;;  %v4074_v23 = vpack.c.bf16 %v789_v22, %v788_v25 }
 0x202   : > { %v4076_v15 = vpack.c.bf16 %v746_v39, %v745_v26  ;;  %v3379_v22 = vld [vmem:[%s5058_s3 + $0x50] sm:$0x3] }
 0x203   : > { %v4068_v38 = vpop.f32.mrf.mxu0 }
 0x206   : > { %v791_v60 = vld [vmem:[#allocation2 + $0x111] sm:$0xff] }
 0x207   : > { %v740_v30 = vld [vmem:[#allocation2 + $0x110] sm:$0xff] }
 0x20a   : > { %3257 = vmatmul.msk.bf16.gmra.mxu1 %vm510_vm2, %v4038_v52  ;;  %3281 = vmatmul.msk.bf16.vlgmr.msra.gmra.mxu3 %vm510_vm2, %v4040_v55 }
 0x20b   : > { %3277 = vmatmul.msk.bf16.gmra.mxu2 %vm510_vm2, %v757_v59  ;;  %3322 = vmatmul.msk.bf16.gmra.mxu0 %vm510_vm2, %v757_v59  ;;  %v3356_v59 = vld [vmem:[%s5058_s3 + $0x44] sm:$0x3] }
 0x20c   : > { %v1874_v1 = vunpack.c.l.b16 %v3356_v59  ;;  %v759_v59 = vpack.c.bf16 %v738_v35, %v737_v16  ;;  %v3402_v35 = vld [vmem:[%s5058_s3 + $0x5c] sm:$0x3]  ;;  %v3425_v16 = vld [vmem:[%s5058_s3 + $0x68] sm:$0x3] }
 0x20d   : > { %v2341_v25 = vunpack.c.l.b16 %v3402_v35  ;;  %v2574_v26 = vunpack.c.l.b16 %v3425_v16  ;;  %v4100_v35 = vpack.c.bf16 %v791_v60, %v790_v2  ;;  %v739_v16 = vld [vmem:[#allocation2 + $0x108] sm:$0xff]  ;;  %v4114_v2 = vpop.f32.mrf.mxu2 }
 0x20e   : > { %v1876_v6 = vpack.c.b16 %v1874_v1, %v1874_v1  ;;  %v4078_v1 = vpop.f32.mrf.mxu0  ;;  %v1118_v60 = vld [vmem:[#allocation2 + $0x2] sm:$0xff] }
 0x210   : > { %v1927_v17 = vsel %vm378_vm0, %v1876_v6, 0  ;;  %v2108_v6 = vunpack.c.l.b16 %v3379_v22 }
 0x211   : > { %1935 = vmatpush.bf16.msrb.mxu2 %v1927_v17 }
 0x212   : > { %v2110_v17 = vpack.c.b16 %v2108_v6, %v2108_v6 }
 0x214   : > { %v2161_v39 = vsel %vm378_vm0, %v2110_v17, 0  ;;  %v4102_v17 = vpack.c.bf16 %v748_v34, %v747_v50  ;;  %v1119_v34 = vld [vmem:[#allocation2 + $0xa] sm:$0xff] }
 0x215   : > { %2169 = vmatpush.bf16.msra.mxu3 %v2161_v39  ;;  %v1150_v39 = vpack.c.bf16 %v1119_v34, %v1118_v60 }
 0x216   : > { %v4098_v6 = vpop.f32.mrf.mxu0 }
 0x21a   : > { %3258 = vmatmul.msk.bf16.gmra.mxu1 %vm510_vm2, %v4055_v43  ;;  %3282 = vmatmul.msk.bf16.gmra.mxu3 %vm510_vm2, %v4057_v48 }
 0x21b   : > { %3278 = vmatmul.msk.bf16.gmra.mxu2 %vm510_vm2, %v758_v53  ;;  %3323 = vmatmul.msk.bf16.gmra.mxu0 %vm510_vm2, %v758_v53  ;;  %v3475_v53 = vld [vmem:[%s5058_s3 + $0x3c] sm:$0xff] }
 0x21c   : > { %1936 = vmatpush.bf16.msrb.mxu2 %v3475_v53  ;;  %v2343_v53 = vpack.c.b16 %v2341_v25, %v2341_v25  ;;  %v760_v25 = vpack.c.bf16 %v740_v30, %v739_v16 }
 0x21e   : > { %v2394_v11 = vsel %vm378_vm0, %v2343_v53, 0  ;;  %v1817_v53 = vld [vmem:[#allocation2 + $0x1a] sm:$0xff] }
 0x21f   : > { %2402 = vmatpush.bf16.msra.mxu0 %v2394_v11  ;;  %v4110_v11 = vpop.f32.mrf.mxu1 }
 0x22a   : > { %3259 = vmatmul.msk.bf16.gmra.mxu1 %vm510_vm2, %v4074_v23  ;;  %3283 = vmatmul.msk.bf16.gmra.mxu3 %vm510_vm2, %v4076_v15 }
 0x22b   : > { %3279 = vmatmul.msk.bf16.gmra.mxu2 %vm510_vm2, %v759_v59  ;;  %3324 = vmatmul.msk.bf16.gmra.mxu0 %vm510_vm2, %v759_v59  ;;  %v2576_v59 = vpack.c.b16 %v2574_v26, %v2574_v26  ;;  %v4112_v26 = vpop.f32.mrf.mxu0 }
 0x22d   : > { %v2627_v22 = vsel %vm378_vm0, %v2576_v59, 0  ;;  %v1818_v59 = vld [vmem:[#allocation2 + $0x22] sm:$0xff] }
 0x22e   : > { %2635 = vmatpush.bf16.msra.mxu1 %v2627_v22  ;;  %v1849_v22 = vpack.c.bf16 %v1818_v59, %v1817_v53 }
 0x23a   : > { %3260 = vmatmul.msk.bf16.gmra.mxu1 %vm510_vm2, %v4100_v35  ;;  %3284 = vmatmul.msk.bf16.gmra.mxu3 %vm510_vm2, %v4102_v17 }
 0x23b   : > { %3280 = vmatmul.msk.bf16.gmra.mxu2 %vm510_vm2, %v760_v25  ;;  %3325 = vmatmul.msk.bf16.gmra.mxu0 %vm510_vm2, %v760_v25 }
 0x243   : > { %v4121_v16 = vpop.f32.mrf.mxu3 }
 0x244   : > { %5134 = vst [vmem:[#allocation35_spill] sm:$0xff] %v4121_v16  ;;  %v4200_v16 = vpack.c.bf16 %v1826_v42, %v1825_v54 }
 0x245   : > { %v909_v50 = vpop.f32.mrf.mxu1 }
 0x246   : > { %v4116_v30 = vpop.f32.mrf.mxu0  ;;  %5140 = vst [vmem:[#allocation41_spill] sm:$0xff] %v4200_v16 }
 0x24a   : > { %3292 = vmatmul.msk.bf16.vlgmr.msrb.gmra.mxu3 %vm510_vm2, %v1150_v39  ;;  %3338 = vmatmul.msk.bf16.vlgmr.msrb.gmra.mxu1 %vm510_vm2, %v3829_v46  ;;  %v1819_v46 = vld [vmem:[#allocation2 + $0x32] sm:$0xff] }
 0x24b   : > { %3326 = vmatmul.msk.bf16.gmra.mxu0 %vm510_vm2, %v4040_v55  ;;  %3361 = vmatmul.msk.bf16.vlgmr.msrb.gmra.mxu2 %vm510_vm2, %v1849_v22  ;;  %v4132_v39 = vpop.f32.mrf.mxu3  ;;  %v4136_v7 = vpack.c.bf16 %v1820_v56, %v1819_v46 }
 0x24c   : > { %v1058_v25 = vpop.f32.mrf.mxu2 }
 0x24d   : > { %v4126_v5 = vadd.f32 %v1058_v25, %v909_v50  ;;  %v911_v63 = vpop.f32.mrf.mxu1  ;;  %5135 = vst [vmem:[#allocation36_spill] sm:$0xff] %v4136_v7 }
 0x24e   : > { %v4128_v60 = vpop.f32.mrf.mxu0 }
 0x254   : > { %v1060_v34 = vpop.f32.mrf.mxu2 }
 0x255   : > { %v4130_v53 = vadd.f32 %v1060_v34, %v911_v63  ;;  %v914_v59 = vpop.f32.mrf.mxu1 }
 0x256   : > { %v4134_v49 = vpop.f32.mrf.mxu0 }
 0x25a   : > { %3293 = vmatmul.msk.bf16.gmra.mxu3 %vm510_vm2, %v1849_v22  ;;  %3339 = vmatmul.msk.bf16.gmra.mxu1 %vm510_vm2, %v3839_v58 }
 0x25b   : > { %3327 = vmatmul.msk.bf16.gmra.mxu0 %vm510_vm2, %v4057_v48  ;;  %3362 = vmatmul.msk.bf16.gmra.mxu2 %vm510_vm2, %v4136_v7  ;;  %v4155_v48 = vpack.c.bf16 %v1822_v18, %v1821_v28 }
 0x25c   : > { %v1063_v63 = vpop.f32.mrf.mxu2 }
 0x25d   : > { %v4145_v55 = vadd.f32 %v1063_v63, %v914_v59  ;;  %v4147_v50 = vpop.f32.mrf.mxu3  ;;  %v916_v25 = vpop.f32.mrf.mxu1  ;;  %5136 = vst [vmem:[#allocation37_spill] sm:$0xff] %v4155_v48 }
 0x25e   : > { %v4149_v34 = vpop.f32.mrf.mxu0 }
 0x264   : > { %v1065_v56 = vpop.f32.mrf.mxu2 }
 0x265   : > { %v4151_v46 = vadd.f32 %v1065_v56, %v916_v25  ;;  %v4153_v22 = vpop.f32.mrf.mxu3 }
 0x267   : > { %v919_v19 = vpop.f32.mrf.mxu1 }
 0x268   : > { %v4165_v59 = vpop.f32.mrf.mxu0 }
 0x26a   : > { %3294 = vmatmul.msk.bf16.gmra.mxu3 %vm510_vm2, %v4136_v7  ;;  %3340 = vmatmul.msk.bf16.gmra.mxu1 %vm510_vm2, %v3851_v9  ;;  %v1828_v7 = vld [vmem:[#allocation2 + $0x9a] sm:$0xff] }
 0x26b   : > { %3328 = vmatmul.msk.bf16.gmra.mxu0 %vm510_vm2, %v4076_v15  ;;  %3363 = vmatmul.msk.bf16.gmra.mxu2 %vm510_vm2, %v4155_v48  ;;  %v3477_v15 = vld [vmem:[%s5058_s3 + $0x54] sm:$0xff] }
 0x26c   : > { %2403 = vmatpush.bf16.msra.mxu0 %v3477_v15 }
 0x26d   : > { %v4167_v63 = vpop.f32.mrf.mxu3 }
 0x26e   : > { %v1068_v25 = vpop.f32.mrf.mxu2 }
 0x26f   : > { %v4169_v56 = vadd.f32 %v1068_v25, %v919_v19  ;;  %v921_v18 = vpop.f32.mrf.mxu1 }
 0x270   : > { %v4176_v37 = vpop.f32.mrf.mxu0 }
 0x275   : > { %v4171_v28 = vpop.f32.mrf.mxu3 }
 0x276   : > { %v1070_v12 = vpop.f32.mrf.mxu2 }
 0x277   : > { %v4178_v31 = vadd.f32 %v1070_v12, %v921_v18  ;;  %v924_v27 = vpop.f32.mrf.mxu1 }
 0x278   : > { %v4194_v51 = vpop.f32.mrf.mxu0 }
 0x27a   : > { %3295 = vmatmul.msk.bf16.gmra.mxu3 %vm510_vm2, %v4155_v48  ;;  %3341 = vmatmul.msk.bf16.gmra.mxu1 %vm510_vm2, %v3986_v36  ;;  %v1827_v48 = vld [vmem:[#allocation2 + $0x92] sm:$0xff] }
 0x27b   : > { %3329 = vmatmul.msk.bf16.gmra.mxu0 %vm510_vm2, %v4102_v17  ;;  %3364 = vmatmul.msk.bf16.gmra.mxu2 %vm510_vm2, %v4180_v13 }
 0x27d   : > { %v4190_v19 = vpop.f32.mrf.mxu3 }
 0x27e   : > { %v1073_v12 = vpop.f32.mrf.mxu2 }
 0x27f   : > { %v4192_v25 = vadd.f32 %v1073_v12, %v924_v27  ;;  %v926_v18 = vpop.f32.mrf.mxu1 }
 0x280   : > { %v4206_v27 = vpop.f32.mrf.mxu0 }
 0x281   : > { %5138 = vst [vmem:[#allocation39_spill] sm:$0xff] %v4192_v25  ;;  %v4222_v25 = vpack.c.bf16 %v1828_v7, %v1827_v48 }
 0x283   : > { %5146 = vst [vmem:[#allocation47_spill] sm:$0xff] %v4222_v25 }
 0x285   : > { %v4196_v0 = vpop.f32.mrf.mxu3 }
 0x286   : > { %v1075_v15 = vpop.f32.mrf.mxu2 }
 0x287   : > { %v4198_v47 = vadd.f32 %v1075_v15, %v926_v18  ;;  %v929_v17 = vpop.f32.mrf.mxu1 }
 0x288   : > { %v4215_v54 = vpop.f32.mrf.mxu0 }
 0x289   : > { %5139 = vst [vmem:[#allocation40_spill] sm:$0xff] %v4198_v47 }
 0x28a   : > { %3296 = vmatmul.msk.bf16.gmra.mxu3 %vm510_vm2, %v4180_v13  ;;  %3342 = vmatmul.msk.bf16.gmra.mxu1 %vm510_vm2, %v4000_v10  ;;  %5143 = vst [vmem:[#allocation44_spill] sm:$0xff] %v4215_v54 }
 0x28b   : > { %3330 = vmatmul.msk.bf16.gmra.mxu0 %vm510_vm2, %v1398_v40  ;;  %3365 = vmatmul.msk.bf16.gmra.mxu2 %vm510_vm2, %v4200_v16 }
 0x28d   : > { %v4211_v12 = vpop.f32.mrf.mxu3 }
 0x28e   : > { %5141 = vst [vmem:[#allocation42_spill] sm:$0xff] %v4211_v12  ;;  %v1078_v18 = vpop.f32.mrf.mxu2  ;;  %v1829_v12 = vld [vmem:[#allocation2 + $0xaa] sm:$0xff] }
 0x28f   : > { %v4213_v15 = vadd.f32 %v1078_v18, %v929_v17  ;;  %v931_v42 = vpop.f32.mrf.mxu1 }
 0x291   : > { %5142 = vst [vmem:[#allocation43_spill] sm:$0xff] %v4213_v15 }
 0x295   : > { %v1100_v61 = vpop.f32.mrf.mxu3 }
 0x296   : > { %v1080_v4 = vpop.f32.mrf.mxu2  ;;  %v4218_v13 = vadd.f32 %v1100_v61, %v4132_v39 }
 0x297   : > { %v4220_v47 = vadd.f32 %v1080_v4, %v931_v42  ;;  %v934_v40 = vpop.f32.mrf.mxu1  ;;  %v4235_v42 = vpop.f32.mrf.mxu0 }
 0x298   : > { %5144 = vst [vmem:[#allocation45_spill] sm:$0xff] %v4218_v13 }
 0x299   : > { %5145 = vst [vmem:[#allocation46_spill] sm:$0xff] %v4220_v47 }
 0x29a   : > { %3297 = vmatmul.msk.bf16.gmra.mxu3 %vm510_vm2, %v4200_v16  ;;  %3343 = vmatmul.msk.bf16.gmra.mxu1 %vm510_vm2, %v4015_v8 }
 0x29b   : > { %3366 = vmatmul.msk.bf16.gmra.mxu2 %vm510_vm2, %v4222_v25  ;;  %3407 = vmatmul.msk.bf16.vlgmr.msra.gmra.mxu0 %vm510_vm2, %v3839_v58  ;;  %v1830_v58 = vld [vmem:[#allocation2 + $0xb2] sm:$0xff] }
 0x29c   : > { %v4246_v54 = vpack.c.bf16 %v1830_v58, %v1829_v12 }
 0x29d   : > { %v1103_v39 = vpop.f32.mrf.mxu3 }
 0x29e   : > { %v1083_v17 = vpop.f32.mrf.mxu2  ;;  %v4233_v18 = vadd.f32 %v1103_v39, %v4147_v50  ;;  %5149 = vst [vmem:[#allocation50_spill] sm:$0xff] %v4246_v54  ;;  %v3476_v50 = vld [vmem:[%s5058_s3 + $0x48] sm:$0xff] }
 0x29f   : > { %v4237_v7 = vadd.f32 %v1083_v17, %v934_v40  ;;  %v936_v48 = vpop.f32.mrf.mxu1  ;;  %v4244_v15 = vpop.f32.mrf.mxu0  ;;  %2170 = vmatpush.bf16.msra.mxu3 %v3476_v50  ;;  %v1832_v50 = vld [vmem:[#allocation2 + $0xca] sm:$0xff] }
 0x2a0   : > { %5147 = vst [vmem:[#allocation48_spill] sm:$0xff] %v4233_v18 }
 0x2a5   : > { %v1105_v61 = vpop.f32.mrf.mxu3 }
 0x2a6   : > { %v1085_v4 = vpop.f32.mrf.mxu2  ;;  %v4240_v13 = vadd.f32 %v1105_v61, %v4153_v22  ;;  %v3478_v61 = vld [vmem:[%s5058_s3 + $0x60] sm:$0xff] }
 0x2a7   : > { %v4242_v16 = vadd.f32 %v1085_v4, %v936_v48  ;;  %v939_v47 = vpop.f32.mrf.mxu1  ;;  %v4264_v48 = vpop.f32.mrf.mxu0  ;;  %2636 = vmatpush.bf16.msra.mxu1 %v3478_v61 }
 0x2a8   : > { %5148 = vst [vmem:[#allocation49_spill] sm:$0xff] %v4240_v13  ;;  %v1831_v13 = vld [vmem:[#allocation2 + $0xc2] sm:$0xff] }
 0x2aa   : > { %3298 = vmatmul.msk.bf16.gmra.mxu3 %vm510_vm2, %v4222_v25  ;;  %3344 = vmatmul.msk.bf16.gmra.mxu1 %vm510_vm2, %v4030_v14  ;;  %v1834_v25 = vld [vmem:[#allocation2 + $0xe2] sm:$0xff] }
 0x2ab   : > { %3367 = vmatmul.msk.bf16.gmra.mxu2 %vm510_vm2, %v4246_v54  ;;  %3408 = vmatmul.msk.bf16.gmra.mxu0 %vm510_vm2, %v3851_v9 }
 0x2ad   : > { %v1108_v22 = vpop.f32.mrf.mxu3 }
 0x2ae   : > { %v1088_v12 = vpop.f32.mrf.mxu2  ;;  %v4260_v40 = vadd.f32 %v1108_v22, %v4167_v63 }
 0x2af   : > { %v4262_v39 = vadd.f32 %v1088_v12, %v939_v47  ;;  %v941_v17 = vpop.f32.mrf.mxu1  ;;  %v4274_v47 = vpack.c.bf16 %v1832_v50, %v1831_v13 }
 0x2b0   : > { %5150 = vst [vmem:[#allocation51_spill] sm:$0xff] %v4260_v40 }
 0x2b1   : > { %5153 = vst [vmem:[#allocation54_spill] sm:$0xff] %v4274_v47 }
 0x2b5   : > { %v1110_v9 = vpop.f32.mrf.mxu3 }
 0x2b6   : > { %v1090_v4 = vpop.f32.mrf.mxu2  ;;  %v4270_v58 = vadd.f32 %v1110_v9, %v4171_v28  ;;  %v4284_v28 = vpop.f32.mrf.mxu0 }
 0x2b7   : > { %v4272_v18 = vadd.f32 %v1090_v4, %v941_v17  ;;  %v944_v63 = vpop.f32.mrf.mxu1 }
 0x2b8   : > { %5151 = vst [vmem:[#allocation52_spill] sm:$0xff] %v4270_v58  ;;  %v1833_v58 = vld [vmem:[#allocation2 + $0xda] sm:$0xff] }
 0x2b9   : > { %5152 = vst [vmem:[#allocation53_spill] sm:$0xff] %v4272_v18  ;;  %v4298_v18 = vpack.c.bf16 %v1834_v25, %v1833_v58 }
 0x2ba   : > { %3299 = vmatmul.msk.bf16.gmra.mxu3 %vm510_vm2, %v4246_v54  ;;  %3345 = vmatmul.msk.bf16.gmra.mxu1 %vm510_vm2, %v4038_v52 }
 0x2bb   : > { %3368 = vmatmul.msk.bf16.gmra.mxu2 %vm510_vm2, %v4274_v47  ;;  %3409 = vmatmul.msk.bf16.gmra.mxu0 %vm510_vm2, %v3986_v36 }
 0x2bd   : > { %v1113_v22 = vpop.f32.mrf.mxu3 }
 0x2be   : > { %v1093_v12 = vpop.f32.mrf.mxu2  ;;  %v4287_v17 = vadd.f32 %v1113_v22, %v4190_v19  ;;  %v4294_v40 = vpop.f32.mrf.mxu0 }
 0x2bf   : > { %v4289_v13 = vadd.f32 %v1093_v12, %v944_v63  ;;  %v946_v61 = vpop.f32.mrf.mxu1 }
 0x2c0   : > { %5154 = vst [vmem:[#allocation55_spill] sm:$0xff] %v4287_v17 }
 0x2c1   : > { %5155 = vst [vmem:[#allocation56_spill] sm:$0xff] %v4289_v13 }
 0x2c5   : > { %v1115_v9 = vpop.f32.mrf.mxu3 }
 0x2c6   : > { %v1095_v4 = vpop.f32.mrf.mxu2  ;;  %v4292_v50 = vadd.f32 %v1115_v9, %v4196_v0  ;;  %v4310_v58 = vpop.f32.mrf.mxu0 }
 0x2c7   : > { %v4296_v54 = vadd.f32 %v1095_v4, %v946_v61  ;;  %v1705_v36 = vpop.f32.mrf.mxu1  ;;  %v1041_v61 = vadd.f32 %v3962_v24, %v3959_v21 }
 0x2c8   : > { %5156 = vst [vmem:[#allocation57_spill] sm:$0xff] %v4292_v50 }
 0x2c9   : > { %5157 = vst [vmem:[#allocation58_spill] sm:$0xff] %v4296_v54 }
 0x2ca   : > { %3300 = vmatmul.msk.bf16.gmra.mxu3 %vm510_vm2, %v4274_v47  ;;  %3346 = vmatmul.msk.bf16.gmra.mxu1 %vm510_vm2, %v4055_v43  ;;  %v1835_v47 = vld [vmem:[#allocation2 + $0xf2] sm:$0xff] }
 0x2cb   : > { %3369 = vmatmul.msk.bf16.gmra.mxu2 %vm510_vm2, %v4298_v18  ;;  %3410 = vmatmul.msk.bf16.gmra.mxu0 %vm510_vm2, %v4000_v10 }
 0x2cd   : > { %v1239_v19 = vpop.f32.mrf.mxu3 }
 0x2ce   : > { %v1319_v0 = vadd.f32 %v1239_v19, %v3927_v62  ;;  %v1938_v63 = vpop.f32.mrf.mxu2  ;;  %v1836_v62 = vld [vmem:[#allocation2 + $0xfa] sm:$0xff]  ;;  %v4323_v21 = vpop.f32.mrf.mxu0 }
 0x2cf   : > { %v1707_v22 = vpop.f32.mrf.mxu1  ;;  %v4317_v19 = vpack.c.bf16 %v1836_v62, %v1835_v47 }
 0x2d0   : > { %v1552_v25 = vadd.f32 %v4051_v3, %v1319_v0  ;;  %v1046_v0 = vadd.f32 %v3968_v33, %v3966_v32 }
 0x2d2   : > { %v1785_v12 = vadd.f32 %v1705_v36, %v1552_v25 }
 0x2d4   : > { %v4314_v9 = vadd.f32 %v1938_v63, %v1785_v12 }
 0x2d5   : > { %v1241_v4 = vpop.f32.mrf.mxu3 }
 0x2d6   : > { %v1320_v50 = vadd.f32 %v1241_v4, %v1041_v61  ;;  %v1940_v17 = vpop.f32.mrf.mxu2 }
 0x2d7   : > { %v1710_v10 = vpop.f32.mrf.mxu1 }
 0x2d8   : > { %v1553_v54 = vadd.f32 %v4053_v20, %v1320_v50 }
 0x2da   : > { %v1786_v13 = vadd.f32 %v1707_v22, %v1553_v54  ;;  %3301 = vmatmul.msk.bf16.gmra.mxu3 %vm510_vm2, %v4298_v18  ;;  %3347 = vmatmul.msk.bf16.gmra.mxu1 %vm510_vm2, %v4074_v23  ;;  %v4337_v22 = vpop.f32.mrf.mxu0 }
 0x2db   : > { %3370 = vmatmul.msk.bf16.gmra.mxu2 %vm510_vm2, %v4317_v19  ;;  %3411 = vmatmul.msk.bf16.gmra.mxu0 %vm510_vm2, %v4015_v8 }
 0x2dc   : > { %v4329_v24 = vadd.f32 %v1940_v17, %v1786_v13  ;;  %v1837_v17 = vld [vmem:[#allocation2 + $0x10a] sm:$0xff]  ;;  %v1838_v13 = vld [vmem:[#allocation2 + $0x112] sm:$0xff] }
 0x2dd   : > { %v1244_v3 = vpop.f32.mrf.mxu3  ;;  %v4340_v4 = vpack.c.bf16 %v1838_v13, %v1837_v17  ;;  %v1607_v17 = vld [vmem:[#allocation2 + $0x129] sm:$0xff] }
 0x2de   : > { %v1321_v20 = vadd.f32 %v1244_v3, %v3964_v29  ;;  %v1943_v54 = vpop.f32.mrf.mxu2 }
 0x2df   : > { %v1712_v47 = vpop.f32.mrf.mxu1 }
 0x2e0   : > { %v1554_v50 = vadd.f32 %v4068_v38, %v1321_v20 }
 0x2e2   : > { %v1787_v36 = vadd.f32 %v1710_v10, %v1554_v50  ;;  %v4353_v10 = vpop.f32.mrf.mxu0 }
 0x2e4   : > { %v4335_v63 = vadd.f32 %v1943_v54, %v1787_v36 }
 0x2e5   : > { %v1246_v25 = vpop.f32.mrf.mxu3 }
 0x2e6   : > { %v1322_v12 = vadd.f32 %v1246_v25, %v1046_v0  ;;  %v1945_v8 = vpop.f32.mrf.mxu2  ;;  %v1606_v0 = vld [vmem:[#allocation2 + $0x121] sm:$0xff] }
 0x2e7   : > { %v1715_v61 = vpop.f32.mrf.mxu1  ;;  %v1839_v25 = vld [vmem:[#allocation2 + $0x122] sm:$0xff]  ;;  %v4361_v13 = vpack.c.bf16 %v1607_v17, %v1606_v0  ;;  %v1608_v17 = vld [vmem:[#allocation2 + $0x139] sm:$0xff] }
 0x2e8   : > { %v1555_v29 = vadd.f32 %v4078_v1, %v1322_v12  ;;  %v1609_v0 = vld [vmem:[#allocation2 + $0x141] sm:$0xff] }
 0x2ea   : > { %v1788_v62 = vadd.f32 %v1712_v47, %v1555_v29  ;;  %3302 = vmatmul.msk.bf16.gmra.mxu3 %vm510_vm2, %v4317_v19  ;;  %3348 = vmatmul.msk.bf16.gmra.mxu1 %vm510_vm2, %v4100_v35  ;;  %v1051_v47 = vadd.f32 %v3976_v45, %v3974_v44  ;;  %v1840_v29 = vld [vmem:[#allocation2 + $0x12a] sm:$0xff] }
 0x2eb   : > { %3371 = vmatmul.msk.bf16.gmra.mxu2 %vm510_vm2, %v4340_v4  ;;  %3412 = vmatmul.msk.bf16.gmra.mxu0 %vm510_vm2, %v4030_v14 }
 0x2ec   : > { %v4350_v32 = vadd.f32 %v1945_v8, %v1788_v62  ;;  %v4363_v62 = vpop.f32.mrf.mxu0 }
 0x2ed   : > { %v1249_v33 = vpop.f32.mrf.mxu3 }
 0x2ee   : > { %v1323_v38 = vadd.f32 %v1249_v33, %v3971_v41  ;;  %v1948_v1 = vpop.f32.mrf.mxu2 }
 0x2ef   : > { %v1717_v3 = vpop.f32.mrf.mxu1 }
 0x2f0   : > { %v1556_v20 = vadd.f32 %v4098_v6, %v1323_v38  ;;  %v4365_v6 = vpack.c.bf16 %v1840_v29, %v1839_v25  ;;  %v1842_v25 = vld [vmem:[#allocation2 + $0x142] sm:$0xff] }
 0x2f2   : > { %v1789_v54 = vadd.f32 %v1715_v61, %v1556_v20 }
 0x2f4   : > { %v4358_v50 = vadd.f32 %v1948_v1, %v1789_v54  ;;  %v4379_v20 = vpop.f32.mrf.mxu0  ;;  %v1056_v54 = vadd.f32 %v4114_v2, %v4110_v11 }
 0x2f5   : > { %v1251_v36 = vpop.f32.mrf.mxu3 }
 0x2f6   : > { %v1324_v14 = vadd.f32 %v1251_v36, %v1051_v47  ;;  %v1950_v12 = vpop.f32.mrf.mxu2 }
 0x2f7   : > { %v1720_v8 = vpop.f32.mrf.mxu1 }
 0x2f8   : > { %v1557_v41 = vadd.f32 %v4112_v26, %v1324_v14  ;;  %v1841_v14 = vld [vmem:[#allocation2 + $0x13a] sm:$0xff] }
 0x2fa   : > { %v1790_v61 = vadd.f32 %v1717_v3, %v1557_v41  ;;  %3303 = vmatmul.msk.bf16.gmra.mxu3 %vm510_vm2, %v4340_v4  ;;  %3349 = vmatmul.msk.bf16.gmra.mxu1 %vm510_vm2, %v4361_v13  ;;  %v4386_v41 = vpack.c.bf16 %v1609_v0, %v1608_v17  ;;  %v1611_v0 = vld [vmem:[#allocation2 + $0x159] sm:$0xff] }
 0x2fb   : > { %3372 = vmatmul.msk.bf16.gmra.mxu2 %vm510_vm2, %v4365_v6  ;;  %3413 = vmatmul.msk.bf16.gmra.mxu0 %vm510_vm2, %v4038_v52 }
 0x2fc   : > { %v4375_v44 = vadd.f32 %v1950_v12, %v1790_v61 }
 0x2fd   : > { %v1254_v45 = vpop.f32.mrf.mxu3 }
 0x2fe   : > { %v1325_v26 = vadd.f32 %v1254_v45, %v3980_v57  ;;  %v1953_v1 = vpop.f32.mrf.mxu2 }
 0x2ff   : > { %v1722_v33 = vpop.f32.mrf.mxu1 }
 0x300   : > { %v1558_v38 = vadd.f32 %v4116_v30, %v1325_v26  ;;  %v4388_v30 = vpack.c.bf16 %v1842_v25, %v1841_v14  ;;  %v1844_v25 = vld [vmem:[#allocation2 + $0x15a] sm:$0xff] }
 0x302   : > { %v1791_v3 = vadd.f32 %v1720_v8, %v1558_v38 }
 0x304   : > { %v4383_v47 = vadd.f32 %v1953_v1, %v1791_v3  ;;  %v1610_v1 = vld [vmem:[#allocation2 + $0x151] sm:$0xff] }
 0x305   : > { %v1256_v36 = vpop.f32.mrf.mxu3  ;;  %v4410_v14 = vpack.c.bf16 %v1611_v0, %v1610_v1 }
 0x306   : > { %v1326_v52 = vadd.f32 %v1256_v36, %v1056_v54  ;;  %v1955_v11 = vpop.f32.mrf.mxu2  ;;  %v1843_v54 = vld [vmem:[#allocation2 + $0x152] sm:$0xff] }
 0x307   : > { %v1725_v12 = vpop.f32.mrf.mxu1 }
 0x308   : > { %v1559_v57 = vadd.f32 %v4128_v60, %v1326_v52  ;;  %v4400_v60 = vpop.f32.mrf.mxu0 }
 0x30a   : > { %v1792_v8 = vadd.f32 %v1722_v33, %v1559_v57  ;;  %3304 = vmatmul.msk.bf16.gmra.mxu3 %vm510_vm2, %v4365_v6  ;;  %3350 = vmatmul.msk.bf16.gmra.mxu1 %vm510_vm2, %v4386_v41 }
 0x30b   : > { %3373 = vmatmul.msk.bf16.gmra.mxu2 %vm510_vm2, %v4388_v30  ;;  %3414 = vmatmul.msk.bf16.gmra.mxu0 %vm510_vm2, %v4055_v43 }
 0x30c   : > { %v4398_v2 = vadd.f32 %v1955_v11, %v1792_v8 }
 0x30d   : > { %v1259_v29 = vpop.f32.mrf.mxu3 }
 0x30e   : > { %v1327_v61 = vadd.f32 %v1259_v29, %v4126_v5  ;;  %v4412_v5 = vpack.c.bf16 %v1844_v25, %v1843_v54  ;;  %v1612_v29 = vld [vmem:[#allocation2 + $0x169] sm:$0xff]  ;;  %v3479_v25 = vld [vmem:[%s5060_s5] sm:$0xff] }
 0x30f   : > { %v1727_v45 = vpop.f32.mrf.mxu1  ;;  %2916 = vmatpush.bf16.msra.mxu2 %v3479_v25 }
 0x310   : > { %v1560_v26 = vadd.f32 %v4134_v49, %v1327_v61  ;;  %v4407_v36 = vpop.f32.mrf.mxu0 }
 0x312   : > { %v4404_v33 = vadd.f32 %v1725_v12, %v1560_v26 }
 0x315   : > { %v1261_v38 = vpop.f32.mrf.mxu3 }
 0x316   : > { %v1328_v3 = vadd.f32 %v1261_v38, %v4130_v53  ;;  %v1613_v38 = vld [vmem:[#allocation2 + $0x171] sm:$0xff] }
 0x317   : > { %v1730_v43 = vpop.f32.mrf.mxu1 }
 0x318   : > { %v1561_v52 = vadd.f32 %v4149_v34, %v1328_v3  ;;  %v4426_v57 = vpop.f32.mrf.mxu0  ;;  %v1846_v3 = vld [vmem:[#allocation2 + $0x172] sm:$0xff] }
 0x31a   : > { %v4414_v17 = vadd.f32 %v1727_v45, %v1561_v52  ;;  %3305 = vmatmul.msk.bf16.gmra.mxu3 %vm510_vm2, %v4388_v30  ;;  %3351 = vmatmul.msk.bf16.gmra.mxu1 %vm510_vm2, %v4410_v14  ;;  %v1845_v45 = vld [vmem:[#allocation2 + $0x16a] sm:$0xff] }
 0x31b   : > { %3374 = vmatmul.msk.bf16.gmra.mxu2 %vm510_vm2, %v4412_v5  ;;  %3415 = vmatmul.msk.bf16.gmra.mxu0 %vm510_vm2, %v4074_v23  ;;  %v4432_v23 = vpack.c.bf16 %v1613_v38, %v1612_v29  ;;  %v1615_v29 = vld [vmem:[#allocation2 + $0x189] sm:$0xff] }
 0x31d   : > { %v1264_v49 = vpop.f32.mrf.mxu3 }
 0x31e   : > { %v1329_v53 = vadd.f32 %v1264_v49, %v4145_v55  ;;  %v4434_v55 = vpack.c.bf16 %v1846_v3, %v1845_v45 }
 0x31f   : > { %v1732_v34 = vpop.f32.mrf.mxu1 }
 0x320   : > { %v1562_v12 = vadd.f32 %v4165_v59, %v1329_v53  ;;  %v4442_v59 = vpop.f32.mrf.mxu0 }
 0x322   : > { %v4428_v8 = vadd.f32 %v1730_v43, %v1562_v12 }
 0x325   : > { %v1266_v11 = vpop.f32.mrf.mxu3 }
 0x326   : > { %v1330_v61 = vadd.f32 %v1266_v11, %v4151_v46  ;;  %v1847_v11 = vld [vmem:[#allocation2 + $0x182] sm:$0xff] }
 0x327   : > { %v1735_v26 = vpop.f32.mrf.mxu1 }
 0x328   : > { %v1563_v1 = vadd.f32 %v4176_v37, %v1330_v61  ;;  %v4455_v49 = vpop.f32.mrf.mxu0 }
 0x32a   : > { %v4436_v54 = vadd.f32 %v1732_v34, %v1563_v1  ;;  %3306 = vmatmul.msk.bf16.gmra.mxu3 %vm510_vm2, %v4412_v5  ;;  %3352 = vmatmul.msk.bf16.gmra.mxu1 %vm510_vm2, %v4432_v23  ;;  %v1614_v34 = vld [vmem:[#allocation2 + $0x181] sm:$0xff] }
 0x32b   : > { %3375 = vmatmul.msk.bf16.gmra.mxu2 %vm510_vm2, %v4434_v55  ;;  %3416 = vmatmul.msk.bf16.gmra.mxu0 %vm510_vm2, %v4100_v35  ;;  %v4459_v61 = vpack.c.bf16 %v1615_v29, %v1614_v34  ;;  %v2052_v34 = vld [vmem:[#allocation2 + $0x38] sm:$0xff] }
 0x32d   : > { %v1269_v37 = vpop.f32.mrf.mxu3 }
 0x32e   : > { %v1331_v46 = vadd.f32 %v1269_v37, %v4169_v56  ;;  %v5159_v37 = vld [vmem:[#allocation44_spill] sm:$0xff] }
 0x32f   : > { %v1737_v43 = vpop.f32.mrf.mxu1 }
 0x330   : > { %v1564_v0 = vadd.f32 %v4194_v51, %v1331_v46  ;;  %v1848_v51 = vld [vmem:[#allocation2 + $0x18a] sm:$0xff]  ;;  %v4474_v1 = vpop.f32.mrf.mxu0 }
 0x331   : > { %v4461_v45 = vpack.c.bf16 %v1848_v51, %v1847_v11 }
 0x332   : > { %v4450_v52 = vadd.f32 %v1735_v26, %v1564_v0 }
 0x335   : > { %v1271_v53 = vpop.f32.mrf.mxu3 }
 0x336   : > { %v1332_v12 = vadd.f32 %v1271_v53, %v4178_v31  ;;  %v2051_v53 = vld [vmem:[#allocation2 + $0x30] sm:$0xff] }
 0x337   : > { %v1740_v35 = vpop.f32.mrf.mxu1 }
 0x338   : > { %v1565_v56 = vadd.f32 %v4206_v27, %v1332_v12  ;;  %v5158_v27 = vld [vmem:[#allocation39_spill] sm:$0xff]  ;;  %v4485_v51 = vpop.f32.mrf.mxu0 }
 0x33a   : > { %v4463_v26 = vadd.f32 %v1737_v43, %v1565_v56  ;;  %3307 = vmatmul.msk.bf16.gmra.mxu3 %vm510_vm2, %v4434_v55  ;;  %3353 = vmatmul.msk.bf16.gmra.mxu1 %vm510_vm2, %v4459_v61  ;;  %v3496_v43 = vld [vmem:[%s5059_s4] ss:$0 sm:$0xff]  ;;  %v2083_v56 = vpack.c.bf16 %v2052_v34, %v2051_v53  ;;  %v2054_v53 = vld [vmem:[#allocation2 + $0x50] sm:$0xff]  ;;  %v5163_v34 = vld [vmem:[#allocation46_spill] sm:$0xff] }
 0x33b   : > { %3376 = vmatmul.msk.bf16.gmra.mxu2 %vm510_vm2, %v4461_v45  ;;  %3417 = vmatmul.msk.bf16.gmra.mxu0 %vm510_vm2, %v4361_v13  ;;  %v5160_v13 = vld [vmem:[#allocation40_spill] sm:$0xff] }
 0x33c   : > { %2753 = vrot.lane.b32.xlu0 %v3496_v43, %s3538_s30 }
 0x33d   : > { %v1274_v31 = vpop.f32.mrf.mxu3 }
 0x33e   : > { %v1333_v38 = vadd.f32 %v1274_v31, %v5158_v27  ;;  %v5161_v27 = vld [vmem:[#allocation36_spill] sm:$0xff] }
 0x33f   : > { %v1742_v3 = vpop.f32.mrf.mxu1 }
 0x340   : > { %v1566_v46 = vadd.f32 %v5159_v37, %v1333_v38  ;;  %v5162_v38 = vld [vmem:[#allocation43_spill] sm:$0xff] }
 0x342   : > { %v4480_v0 = vadd.f32 %v1740_v35, %v1566_v46 }
 0x345   : > { %v1276_v25 = vpop.f32.mrf.mxu3 }
 0x346   : > { %v1334_v12 = vadd.f32 %v1276_v25, %v5160_v13  ;;  %v4498_v25 = vpop.f32.mrf.mxu0 }
 0x347   : > { %v1745_v11 = vpop.f32.mrf.mxu1 }
 0x348   : > { %v1567_v29 = vadd.f32 %v4235_v42, %v1334_v12 }
 0x34a   : > { %v4487_v31 = vadd.f32 %v1742_v3, %v1567_v29  ;;  %3384 = vmatmul.msk.bf16.vlgmr.msra.gmra.mxu3 %vm510_vm2, %v2083_v56  ;;  %3430 = vmatmul.msk.bf16.vlgmr.msra.gmra.mxu1 %vm510_vm2, %v5161_v27  ;;  %v2053_v29 = vld [vmem:[#allocation2 + $0x48] sm:$0xff] }
 0x34b   : > { %3418 = vmatmul.msk.bf16.gmra.mxu0 %vm510_vm2, %v4386_v41  ;;  %v2084_v27 = vpack.c.bf16 %v2054_v53, %v2053_v29  ;;  %v2055_v29 = vld [vmem:[#allocation2 + $0x60] sm:$0xff] }
 0x34d   : > { %v1279_v35 = vpop.f32.mrf.mxu3 }
 0x34e   : > { %v1335_v37 = vadd.f32 %v1279_v35, %v5162_v38  ;;  %v5164_v35 = vld [vmem:[#allocation37_spill] sm:$0xff] }
 0x34f   : > { %v1747_v46 = vpop.f32.mrf.mxu1 }
 0x350   : > { %v1568_v43 = vadd.f32 %v4244_v15, %v1335_v37  ;;  %v4509_v15 = vpop.f32.mrf.mxu0 }
 0x352   : > { %v4496_v42 = vadd.f32 %v1745_v11, %v1568_v43 }
 0x355   : > { %v1281_v3 = vpop.f32.mrf.mxu3 }
 0x356   : > { %v1336_v13 = vadd.f32 %v1281_v3, %v5163_v34  ;;  %v2056_v3 = vld [vmem:[#allocation2 + $0x68] sm:$0xff] }
 0x357   : > { %v1750_v12 = vpop.f32.mrf.mxu1 }
 0x358   : > { %v1569_v56 = vadd.f32 %v4264_v48, %v1336_v13  ;;  %v4516_v34 = vpop.f32.mrf.mxu0 }
 0x35a   : > { %v4502_v41 = vadd.f32 %v1747_v46, %v1569_v56  ;;  %3385 = vmatmul.msk.bf16.gmra.mxu3 %vm510_vm2, %v2084_v27  ;;  %3431 = vmatmul.msk.bf16.gmra.mxu1 %vm510_vm2, %v5164_v35  ;;  %v2085_v56 = vpack.c.bf16 %v2056_v3, %v2055_v29 }
 0x35b   : > { %3419 = vmatmul.msk.bf16.gmra.mxu0 %vm510_vm2, %v4410_v14 }
 0x35d   : > { %v1284_v11 = vpop.f32.mrf.mxu3 }
 0x35e   : > { %v1337_v38 = vadd.f32 %v1284_v11, %v4237_v7  ;;  %v5165_v7 = vld [vmem:[#allocation38_spill] sm:$0xff] }
 0x35f   : > { %v1752_v37 = vpop.f32.mrf.mxu1 }
 0x360   : > { %v1570_v43 = vadd.f32 %v4284_v28, %v1337_v38  ;;  %v4528_v11 = vpop.f32.mrf.mxu0 }
 0x362   : > { %v4513_v48 = vadd.f32 %v1750_v12, %v1570_v43  ;;  %v2058_v43 = vld [vmem:[#allocation2 + $0x80] sm:$0xff] }
 0x365   : > { %v1286_v46 = vpop.f32.mrf.mxu3 }
 0x366   : > { %v1338_v53 = vadd.f32 %v1286_v46, %v4242_v16  ;;  %v5166_v46 = vld [vmem:[#allocation53_spill] sm:$0xff] }
 0x367   : > { %v1755_v13 = vpop.f32.mrf.mxu1 }
 0x368   : > { %v1571_v14 = vadd.f32 %v4294_v40, %v1338_v53 }
 0x36a   : > { %v4519_v27 = vadd.f32 %v1752_v37, %v1571_v14  ;;  %3386 = vmatmul.msk.bf16.gmra.mxu3 %vm510_vm2, %v2085_v56  ;;  %3432 = vmatmul.msk.bf16.gmra.mxu1 %vm510_vm2, %v5165_v7  ;;  %v2057_v37 = vld [vmem:[#allocation2 + $0x78] sm:$0xff] }
 0x36b   : > { %3420 = vmatmul.msk.bf16.gmra.mxu0 %vm510_vm2, %v4432_v23  ;;  %v2086_v14 = vpack.c.bf16 %v2058_v43, %v2057_v37  ;;  %v5168_v56 = vld [vmem:[#allocation56_spill] sm:$0xff] }
 0x36d   : > { %v1289_v28 = vpop.f32.mrf.mxu3 }
 0x36e   : > { %v1339_v16 = vadd.f32 %v1289_v28, %v4262_v39  ;;  %v5167_v39 = vld [vmem:[#allocation41_spill] sm:$0xff] }
 0x36f   : > { %v1757_v12 = vpop.f32.mrf.mxu1 }
 0x370   : > { %v1572_v35 = vadd.f32 %v4310_v58, %v1339_v16  ;;  %v4539_v58 = vpop.f32.mrf.mxu0 }
 0x372   : > { %v4530_v40 = vadd.f32 %v1755_v13, %v1572_v35  ;;  %v2060_v35 = vld [vmem:[#allocation2 + $0x98] sm:$0xff] }
 0x375   : > { %v1291_v38 = vpop.f32.mrf.mxu3 }
 0x376   : > { %v1340_v3 = vadd.f32 %v1291_v38, %v5166_v46  ;;  %v5169_v38 = vld [vmem:[#allocation58_spill] sm:$0xff]  ;;  %v2059_v46 = vld [vmem:[#allocation2 + $0x90] sm:$0xff] }
 0x377   : > { %v1760_v53 = vpop.f32.mrf.mxu1 }
 0x378   : > { %v1573_v29 = vadd.f32 %v4323_v21, %v1340_v3 }
 0x37a   : > { %v4534_v23 = vadd.f32 %v1757_v12, %v1573_v29  ;;  %3387 = vmatmul.msk.bf16.gmra.mxu3 %vm510_vm2, %v2086_v14  ;;  %3433 = vmatmul.msk.bf16.gmra.mxu1 %vm510_vm2, %v5167_v39  ;;  %v2087_v29 = vpack.c.bf16 %v2060_v35, %v2059_v46  ;;  %v5171_v39 = vld [vmem:[#allocation35_spill] sm:$0xff] }
 0x37b   : > { %3421 = vmatmul.msk.bf16.gmra.mxu0 %vm510_vm2, %v4459_v61  ;;  %v5170_v61 = vld [vmem:[#allocation47_spill] sm:$0xff] }
 0x37c   : > { %v2062_v35 = vld [vmem:[#allocation2 + $0xb0] sm:$0xff] }
 0x37d   : > { %v1294_v13 = vpop.f32.mrf.mxu3 }
 0x37e   : > { %v1341_v7 = vadd.f32 %v1294_v13, %v5168_v56 }
 0x37f   : > { %v1762_v28 = vpop.f32.mrf.mxu1 }
 0x380   : > { %v1574_v16 = vadd.f32 %v4337_v22, %v1341_v7  ;;  %v5172_v22 = vld [vmem:[#allocation42_spill] sm:$0xff] }
 0x382   : > { %v4545_v21 = vadd.f32 %v1760_v53, %v1574_v16  ;;  %v1099_v53 = vadd.f32 %v5172_v22, %v5171_v39  ;;  %v5174_v39 = vld [vmem:[#allocation50_spill] sm:$0xff] }
 0x385   : > { %v1296_v12 = vpop.f32.mrf.mxu3 }
 0x386   : > { %v1342_v37 = vadd.f32 %v1296_v12, %v5169_v38 }
 0x387   : > { %v1765_v43 = vpop.f32.mrf.mxu1 }
 0x388   : > { %v1575_v3 = vadd.f32 %v4353_v10, %v1342_v37  ;;  %v2061_v10 = vld [vmem:[#allocation2 + $0xa8] sm:$0xff] }
 0x38a   : > { %v4549_v14 = vadd.f32 %v1762_v28, %v1575_v3  ;;  %3388 = vmatmul.msk.bf16.gmra.mxu3 %vm510_vm2, %v2087_v29  ;;  %3434 = vmatmul.msk.bf16.gmra.mxu1 %vm510_vm2, %v5170_v61  ;;  %v5173_v28 = vld [vmem:[#allocation45_spill] sm:$0xff]  ;;  %v2088_v29 = vpack.c.bf16 %v2062_v35, %v2061_v10 }
 0x38d   : > { %v1299_v13 = vpop.f32.mrf.mxu3 }
 0x38e   : > { %v1343_v56 = vadd.f32 %v1299_v13, %v1099_v53 }
 0x38f   : > { %v1767_v7 = vpop.f32.mrf.mxu1 }
 0x390   : > { %v1576_v16 = vadd.f32 %v4363_v62, %v1343_v56  ;;  %v5175_v62 = vld [vmem:[#allocation48_spill] sm:$0xff] }
 0x392   : > { %v4557_v12 = vadd.f32 %v1765_v43, %v1576_v16 }
 0x395   : > { %v1301_v38 = vpop.f32.mrf.mxu3 }
 0x396   : > { %v1344_v37 = vadd.f32 %v1301_v38, %v5173_v28  ;;  %v2064_v38 = vld [vmem:[#allocation2 + $0xc8] sm:$0xff]  ;;  %v5176_v28 = vld [vmem:[#allocation49_spill] sm:$0xff] }
 0x397   : > { %v1770_v46 = vpop.f32.mrf.mxu1 }
 0x398   : > { %v1577_v3 = vadd.f32 %v4379_v20, %v1344_v37 }
 0x39a   : > { %v4561_v61 = vadd.f32 %v1767_v7, %v1577_v3  ;;  %3389 = vmatmul.msk.bf16.gmra.mxu3 %vm510_vm2, %v2088_v29  ;;  %3435 = vmatmul.msk.bf16.gmra.mxu1 %vm510_vm2, %v5174_v39  ;;  %v2063_v7 = vld [vmem:[#allocation2 + $0xc0] sm:$0xff]  ;;  %v5177_v29 = vld [vmem:[#allocation54_spill] sm:$0xff] }
 0x39b   : > { %v2089_v37 = vpack.c.bf16 %v2064_v38, %v2063_v7 }
 0x39d   : > { %v1304_v22 = vpop.f32.mrf.mxu3 }
 0x39e   : > { %v1345_v43 = vadd.f32 %v1304_v22, %v5175_v62 }
 0x39f   : > { %v1772_v53 = vpop.f32.mrf.mxu1 }
 0x3a0   : > { %v1578_v13 = vadd.f32 %v4400_v60, %v1345_v43  ;;  %v5178_v60 = vld [vmem:[#allocation51_spill] sm:$0xff] }
 0x3a2   : > { %v4568_v56 = vadd.f32 %v1770_v46, %v1578_v13 }
 0x3a5   : > { %v1306_v16 = vpop.f32.mrf.mxu3 }
 0x3a6   : > { %v1346_v20 = vadd.f32 %v1306_v16, %v5176_v28  ;;  %v2065_v16 = vld [vmem:[#allocation2 + $0xd8] sm:$0xff]  ;;  %v2066_v28 = vld [vmem:[#allocation2 + $0xe0] sm:$0xff] }
 0x3a7   : > { %v1775_v10 = vpop.f32.mrf.mxu1  ;;  %v2090_v7 = vpack.c.bf16 %v2066_v28, %v2065_v16 }
 0x3a8   : > { %v1579_v35 = vadd.f32 %v4407_v36, %v1346_v20  ;;  %v5179_v36 = vld [vmem:[#allocation52_spill] sm:$0xff] }
 0x3aa   : > { %v4572_v3 = vadd.f32 %v1772_v53, %v1579_v35  ;;  %3390 = vmatmul.msk.bf16.gmra.mxu3 %vm510_vm2, %v2089_v37  ;;  %3436 = vmatmul.msk.bf16.gmra.mxu1 %vm510_vm2, %v5177_v29 }
 0x3ad   : > { %v1309_v39 = vpop.f32.mrf.mxu3 }
 0x3ae   : > { %v1347_v46 = vadd.f32 %v1309_v39, %v5178_v60 }
 0x3af   : > { %v1777_v22 = vpop.f32.mrf.mxu1 }
 0x3b0   : > { %v1580_v62 = vadd.f32 %v4426_v57, %v1347_v46  ;;  %v5180_v57 = vld [vmem:[#allocation55_spill] sm:$0xff] }
 0x3b2   : > { %v4579_v43 = vadd.f32 %v1775_v10, %v1580_v62  ;;  %v2067_v62 = vld [vmem:[#allocation2 + $0xf0] sm:$0xff] }
 0x3b5   : > { %v1311_v13 = vpop.f32.mrf.mxu3 }
 0x3b6   : > { %v1348_v38 = vadd.f32 %v1311_v13, %v5179_v36  ;;  %v5181_v13 = vld [vmem:[#allocation57_spill] sm:$0xff] }
 0x3b7   : > { %v1780_v53 = vpop.f32.mrf.mxu1 }
 0x3b8   : > { %v1581_v20 = vadd.f32 %v4442_v59, %v1348_v38  ;;  %v2068_v59 = vld [vmem:[#allocation2 + $0xf8] sm:$0xff] }
 0x3b9   : > { %v2091_v36 = vpack.c.bf16 %v2068_v59, %v2067_v62  ;;  %v2069_v59 = vld [vmem:[#allocation2 + $0x108] sm:$0xff] }
 0x3ba   : > { %v4583_v35 = vadd.f32 %v1777_v22, %v1581_v20  ;;  %3391 = vmatmul.msk.bf16.gmra.mxu3 %vm510_vm2, %v2090_v7  ;;  %3437 = vmatmul.msk.bf16.gmra.mxu1 %vm510_vm2, %v4298_v18 }
 0x3bd   : > { %v1314_v37 = vpop.f32.mrf.mxu3 }
 0x3be   : > { %v1349_v10 = vadd.f32 %v1314_v37, %v5180_v57  ;;  %v3498_v37 = vld [vmem:[%s3607_s11] sm:$0xff]  ;;  %v5182_v57 = vld [vmem:[#allocation3_spill] sm:$0xff] }
 0x3bf   : > { %v1782_v29 = vpop.f32.mrf.mxu1 }
 0x3c0   : > { %v1582_v39 = vadd.f32 %v4455_v49, %v1349_v10 }
 0x3c2   : > { %v4590_v60 = vadd.f32 %v1780_v53, %v1582_v39  ;;  %v4600_v53 = vpop.f32.mrf.mxu0 }
 0x3c5   : > { %v1316_v46 = vpop.f32.mrf.mxu3 }
 0x3c6   : > { %v1350_v22 = vadd.f32 %v1316_v46, %v5181_v13  ;;  %v2070_v46 = vld [vmem:[#allocation2 + $0x110] sm:$0xff] }
 0x3c7   : > { %v2638_v16 = vpop.f32.mrf.mxu1  ;;  %v2092_v13 = vpack.c.bf16 %v2070_v46, %v2069_v59  ;;  %v3500_v46 = vld [vmem:[%s3607_s11 + $0x10] sm:$0xff] }
 0x3c8   : > { %v1583_v28 = vadd.f32 %v4474_v1, %v1350_v22  ;;  %v2998_v1 = vadd.f32 %v3498_v37, %v5182_v57 }
 0x3ca   : > { %v4594_v38 = vadd.f32 %v1782_v29, %v1583_v28  ;;  %3392 = vmatmul.msk.bf16.gmra.mxu3 %vm510_vm2, %v2091_v36  ;;  %3438 = vmatmul.msk.bf16.gmra.mxu1 %vm510_vm2, %v4317_v19  ;;  %v4609_v22 = vpop.f32.mrf.mxu0  ;;  %v4611_v28 = vpop.permute.xlu0 %2753  ;;  %v5183_v36 = vld [vmem:[#allocation4_spill] sm:$0xff] }
 0x3cd   : > { %v2172_v18 = vpop.f32.mrf.mxu3 }
 0x3ce   : > { %v2252_v49 = vadd.f32 %v2172_v18, %v4314_v9 }
 0x3cf   : > { %v2640_v20 = vpop.f32.mrf.mxu1 }
 0x3d0   : > { %v2485_v7 = vadd.f32 %v4485_v51, %v2252_v49  ;;  %v3499_v51 = vld [vmem:[%s3607_s11 + $0x8] sm:$0xff] }
 0x3d1   : > { %v2999_v18 = vadd.f32 %v3499_v51, %v5183_v36  ;;  %v2071_v51 = vld [vmem:[#allocation2 + $0x120] sm:$0xff]  ;;  %v2072_v36 = vld [vmem:[#allocation2 + $0x128] sm:$0xff] }
 0x3d2   : > { %v2718_v10 = vadd.f32 %v2638_v16, %v2485_v7  ;;  %v4622_v7 = vpop.f32.mrf.mxu2 }
 0x3d4   : > { %v4605_v29 = vadd.f32 %v2998_v1, %v2718_v10 }
 0x3d5   : > { %v2174_v39 = vpop.f32.mrf.mxu3 }
 0x3d6   : > { %v2253_v62 = vadd.f32 %v2174_v39, %v4329_v24  ;;  %v2756_v24 = vadd.f32 %v4611_v28, %v2718_v10  ;;  %v4629_v10 = vpop.f32.mrf.mxu0 }
 0x3d7   : > { %v2643_v19 = vpop.f32.mrf.mxu1 }
 0x3d8   : > { %v2486_v9 = vadd.f32 %v4498_v25, %v2253_v62  ;;  %v5184_v62 = vld [vmem:[#allocation5_spill] sm:$0xff] }
 0x3da   : > { %v2719_v16 = vadd.f32 %v2640_v20, %v2486_v9  ;;  %3393 = vmatmul.msk.bf16.gmra.mxu3 %vm510_vm2, %v2092_v13  ;;  %3439 = vmatmul.msk.bf16.gmra.mxu1 %vm510_vm2, %v4340_v4  ;;  %v3000_v4 = vadd.f32 %v3500_v46, %v5184_v62  ;;  %v3501_v62 = vld [vmem:[%s3607_s11 + $0x20] sm:$0xff] }
 0x3dc   : > { %v2757_v49 = vadd.f32 %v4611_v28, %v2719_v16  ;;  %v4620_v25 = vadd.f32 %v2999_v18, %v2719_v16 }
 0x3dd   : > { %v2177_v37 = vpop.f32.mrf.mxu3 }
 0x3de   : > { %v2254_v57 = vadd.f32 %v2177_v37, %v4335_v63  ;;  %v2788_v1 = vpack.c.bf16 %v2757_v49, %v2756_v24  ;;  %v4634_v63 = vpop.f32.mrf.mxu2  ;;  %v2093_v24 = vpack.c.bf16 %v2072_v36, %v2071_v51  ;;  %v2074_v36 = vld [vmem:[#allocation2 + $0x140] sm:$0xff] }
 0x3df   : > { %v2645_v39 = vpop.f32.mrf.mxu1 }
 0x3e0   : > { %v2487_v20 = vadd.f32 %v4509_v15, %v2254_v57  ;;  %2822 = vrot.lane.b32.xlu1 %v2788_v1, %s3539_s12 }
 0x3e2   : > { %v2720_v59 = vadd.f32 %v2643_v19, %v2487_v20 }
 0x3e4   : > { %v4631_v9 = vadd.f32 %v3000_v4, %v2720_v59  ;;  %v2758_v19 = vadd.f32 %v4611_v28, %v2720_v59 }
 0x3e5   : > { %v2179_v13 = vpop.f32.mrf.mxu3 }
 0x3e6   : > { %v2255_v18 = vadd.f32 %v2179_v13, %v4350_v32  ;;  %v4645_v32 = vpop.f32.mrf.mxu0  ;;  %v4650_v46 = vpop.f32.mrf.mxu2 }
 0x3e7   : > { %v2648_v16 = vpop.f32.mrf.mxu1 }
 0x3e8   : > { %v2488_v15 = vadd.f32 %v4516_v34, %v2255_v18 }
 0x3ea   : > { %v4637_v49 = vadd.f32 %v2645_v39, %v2488_v15  ;;  %3394 = vmatmul.msk.bf16.gmra.mxu3 %vm510_vm2, %v2093_v24  ;;  %3440 = vmatmul.msk.bf16.gmra.mxu1 %vm510_vm2, %v4365_v6  ;;  %v5185_v6 = vld [vmem:[#allocation7_spill] sm:$0xff]  ;;  %v2073_v24 = vld [vmem:[#allocation2 + $0x138] sm:$0xff] }
 0x3eb   : > { %v3002_v4 = vadd.f32 %v3501_v62, %v5185_v6  ;;  %v3502_v6 = vld [vmem:[%s3607_s11 + $0x30] sm:$0xff] }
 0x3ec   : > { %v2759_v37 = vadd.f32 %v4611_v28, %v4637_v49 }
 0x3ed   : > { %v2182_v57 = vpop.f32.mrf.mxu3 }
 0x3ee   : > { %v2256_v1 = vadd.f32 %v2182_v57, %v4358_v50  ;;  %v2789_v20 = vpack.c.bf16 %v2759_v37, %v2758_v19  ;;  %v4657_v15 = vpop.f32.mrf.mxu0  ;;  %v2094_v19 = vpack.c.bf16 %v2074_v36, %v2073_v24  ;;  %v2075_v24 = vld [vmem:[#allocation2 + $0x150] sm:$0xff] }
 0x3ef   : > { %v2650_v34 = vpop.f32.mrf.mxu1 }
 0x3f0   : > { %v2489_v39 = vadd.f32 %v4528_v11, %v2256_v1  ;;  %2824 = vrot.lane.b32.xlu2 %v2789_v20, %s3539_s12 }
 0x3f2   : > { %v2722_v59 = vadd.f32 %v2648_v16, %v2489_v39  ;;  %v4665_v16 = vpop.f32.mrf.mxu2 }
 0x3f4   : > { %v4654_v13 = vadd.f32 %v3002_v4, %v2722_v59  ;;  %v2760_v57 = vadd.f32 %v4611_v28, %v2722_v59 }
 0x3f5   : > { %v2184_v51 = vpop.f32.mrf.mxu3 }
 0x3f6   : > { %v2257_v18 = vadd.f32 %v2184_v51, %v4375_v44  ;;  %v4673_v62 = vpop.f32.mrf.mxu0 }
 0x3f7   : > { %v2653_v50 = vpop.f32.mrf.mxu1 }
 0x3f8   : > { %v2490_v11 = vadd.f32 %v4539_v58, %v2257_v18 }
 0x3fa   : > { %v4660_v37 = vadd.f32 %v2650_v34, %v2490_v11  ;;  %3395 = vmatmul.msk.bf16.gmra.mxu3 %vm510_vm2, %v2094_v19  ;;  %3441 = vmatmul.msk.bf16.gmra.mxu1 %vm510_vm2, %v4388_v30  ;;  %v5186_v30 = vld [vmem:[#allocation9_spill] sm:$0xff]  ;;  %v4679_v59 = vpop.f32.mrf.mxu2  ;;  %v2076_v11 = vld [vmem:[#allocation2 + $0x158] sm:$0xff] }
 0x3fb   : > { %v3004_v4 = vadd.f32 %v3502_v6, %v5186_v30 }
 0x3fc   : > { %v2761_v44 = vadd.f32 %v4611_v28, %v4660_v37 }
 0x3fd   : > { %v2187_v1 = vpop.f32.mrf.mxu3 }
 0x3fe   : > { %v2258_v20 = vadd.f32 %v2187_v1, %v4383_v47  ;;  %v2790_v39 = vpack.c.bf16 %v2761_v44, %v2760_v57  ;;  %v2095_v57 = vpack.c.bf16 %v2076_v11, %v2075_v24  ;;  %v2026_v1 = vadd.f32 %v4622_v7, %v4404_v33 }
 0x3ff   : > { %v2655_v58 = vpop.f32.mrf.mxu1  ;;  %v2027_v33 = vadd.f32 %v4634_v63, %v4414_v17  ;;  %v2314_v17 = vld [vmem:[#allocation2 + $0x199] sm:$0xff]  ;;  %v2315_v63 = vld [vmem:[#allocation2 + $0x1a1] sm:$0xff] }
 0x400   : > { %v2491_v34 = vadd.f32 %v4600_v53, %v2258_v20  ;;  %2826 = vrot.lane.b32.xlu0 %v2790_v39, %s3539_s12 }
 0x402   : > { %v2724_v51 = vadd.f32 %v2653_v50, %v2491_v34  ;;  %v4688_v50 = vpop.f32.mrf.mxu0 }
 0x404   : > { %v4677_v36 = vadd.f32 %v3004_v4, %v2724_v51  ;;  %v2762_v20 = vadd.f32 %v4611_v28, %v2724_v51  ;;  %v5187_v4 = vld [vmem:[#allocation11_spill] sm:$0xff] }
 0x405   : > { %v2189_v18 = vpop.f32.mrf.mxu3 }
 0x406   : > { %v2259_v47 = vadd.f32 %v2189_v18, %v4398_v2 }
 0x407   : > { %v2658_v19 = vpop.f32.mrf.mxu1 }
 0x408   : > { %v2492_v53 = vadd.f32 %v4609_v22, %v2259_v47  ;;  %v2077_v47 = vld [vmem:[#allocation2 + $0x168] sm:$0xff] }
 0x40a   : > { %v4683_v44 = vadd.f32 %v2655_v58, %v2492_v53  ;;  %3396 = vmatmul.msk.bf16.gmra.mxu3 %vm510_vm2, %v2095_v57  ;;  %3442 = vmatmul.msk.bf16.gmra.mxu1 %vm510_vm2, %v4412_v5  ;;  %v4695_v58 = vpop.f32.mrf.mxu2  ;;  %v3503_v5 = vld [vmem:[%s3607_s11 + $0x40] sm:$0xff]  ;;  %v4705_v51 = vpop.f32.mrf.mxu0  ;;  %v2078_v53 = vld [vmem:[#allocation2 + $0x170] sm:$0xff] }
 0x40b   : > { %v3006_v18 = vadd.f32 %v3503_v5, %v5187_v4 }
 0x40c   : > { %v2763_v2 = vadd.f32 %v4611_v28, %v4683_v44 }
 0x40d   : > { %v2192_v22 = vpop.f32.mrf.mxu3 }
 0x40e   : > { %v2260_v39 = vadd.f32 %v2192_v22, %v2026_v1  ;;  %v2791_v34 = vpack.c.bf16 %v2763_v2, %v2762_v20  ;;  %v2096_v20 = vpack.c.bf16 %v2078_v53, %v2077_v47  ;;  %v2029_v47 = vadd.f32 %v4665_v16, %v4436_v54 }
 0x40f   : > { %v2660_v6 = vpop.f32.mrf.mxu1  ;;  %v2030_v54 = vadd.f32 %v4679_v59, %v4450_v52  ;;  %v2082_v59 = vld [vmem:[#allocation2 + $0x1a0] sm:$0xff] }
 0x410   : > { %v2493_v30 = vadd.f32 %v4629_v10, %v2260_v39  ;;  %2828 = vrot.lane.b32.xlu1 %v2791_v34, %s3539_s12  ;;  %v2331_v34 = vpack.c.bf16 %v2315_v63, %v2314_v17 }
 0x412   : > { %v2726_v24 = vadd.f32 %v2658_v19, %v2493_v30  ;;  %v4708_v2 = vpop.f32.mrf.mxu2  ;;  %v2028_v19 = vadd.f32 %v4650_v46, %v4428_v8  ;;  %3422 = vmatmul.msk.bf16.gmra.mxu0 %vm510_vm2, %v2331_v34  ;;  %v2440_v4 = vpop.f32.mrf.mxu0 }
 0x414   : > { %v4703_v7 = vadd.f32 %v3006_v18, %v2726_v24  ;;  %v2764_v39 = vadd.f32 %v4611_v28, %v2726_v24 }
 0x415   : > { %v2194_v11 = vpop.f32.mrf.mxu3 }
 0x416   : > { %v2261_v57 = vadd.f32 %v2194_v11, %v2027_v33  ;;  %v3504_v33 = vld [vmem:[%s3607_s11 + $0x50] sm:$0xff]  ;;  %v5188_v11 = vld [vmem:[#allocation13_spill] sm:$0xff] }
 0x417   : > { %v2663_v1 = vpop.f32.mrf.mxu1  ;;  %v3008_v8 = vadd.f32 %v3504_v33, %v5188_v11  ;;  %v5189_v33 = vld [vmem:[#allocation15_spill] sm:$0xff] }
 0x418   : > { %v2494_v10 = vadd.f32 %v4645_v32, %v2261_v57 }
 0x41a   : > { %v4710_v22 = vadd.f32 %v2660_v6, %v2494_v10  ;;  %3397 = vmatmul.msk.bf16.gmra.mxu3 %vm510_vm2, %v2096_v20  ;;  %3443 = vmatmul.msk.bf16.gmra.mxu1 %vm510_vm2, %v4434_v55  ;;  %v1975_v24 = vpop.f32.mrf.mxu2  ;;  %v2079_v10 = vld [vmem:[#allocation2 + $0x180] sm:$0xff]  ;;  %v2080_v20 = vld [vmem:[#allocation2 + $0x188] sm:$0xff] }
 0x41c   : > { %v2765_v32 = vadd.f32 %v4611_v28, %v4710_v22 }
 0x41d   : > { %v2197_v30 = vpop.f32.mrf.mxu3 }
 0x41e   : > { %v2262_v6 = vadd.f32 %v2197_v30, %v2028_v19  ;;  %v2792_v5 = vpack.c.bf16 %v2765_v32, %v2764_v39  ;;  %v2442_v39 = vpop.f32.mrf.mxu0 }
 0x41f   : > { %v2665_v18 = vpop.f32.mrf.mxu1 }
 0x420   : > { %v2495_v55 = vadd.f32 %v4657_v15, %v2262_v6  ;;  %2830 = vrot.lane.b32.xlu2 %v2792_v5, %s3539_s12  ;;  %v2097_v15 = vpack.c.bf16 %v2080_v20, %v2079_v10 }
 0x422   : > { %v2728_v46 = vadd.f32 %v2663_v1, %v2495_v55  ;;  %v1978_v34 = vpop.f32.mrf.mxu2  ;;  %v3505_v55 = vld [vmem:[%s3607_s11 + $0x60] sm:$0xff] }
 0x424   : > { %v4727_v53 = vadd.f32 %v3008_v8, %v2728_v46  ;;  %v2766_v16 = vadd.f32 %v4611_v28, %v2728_v46  ;;  %v2081_v8 = vld [vmem:[#allocation2 + $0x198] sm:$0xff] }
 0x425   : > { %v2199_v57 = vpop.f32.mrf.mxu3  ;;  %v2547_v46 = vld [vmem:[#allocation2 + $0x19a] sm:$0xff] }
 0x426   : > { %v2263_v17 = vadd.f32 %v2199_v57, %v2029_v47  ;;  %v2445_v52 = vpop.f32.mrf.mxu0  ;;  %v2548_v47 = vld [vmem:[#allocation2 + $0x1a2] sm:$0xff]  ;;  %v2031_v57 = vadd.f32 %v4695_v58, %v4463_v26  ;;  %v2032_v26 = vadd.f32 %v4708_v2, %v4480_v0  ;;  %v2033_v0 = vadd.f32 %v1975_v24, %v4487_v31 }
 0x427   : > { %v2668_v63 = vpop.f32.mrf.mxu1 }
 0x428   : > { %v2496_v19 = vadd.f32 %v4673_v62, %v2263_v17 }
 0x42a   : > { %v4730_v32 = vadd.f32 %v2665_v18, %v2496_v19  ;;  %3398 = vmatmul.msk.bf16.gmra.mxu3 %vm510_vm2, %v2097_v15  ;;  %3444 = vmatmul.msk.bf16.gmra.mxu1 %vm510_vm2, %v4461_v45  ;;  %v3010_v45 = vadd.f32 %v3505_v55, %v5189_v33  ;;  %v2098_v19 = vpack.c.bf16 %v2082_v59, %v2081_v8  ;;  %v1980_v15 = vpop.f32.mrf.mxu2  ;;  %v3506_v33 = vld [vmem:[%s3607_s11 + $0x70] sm:$0xff] }
 0x42c   : > { %v2767_v1 = vadd.f32 %v4611_v28, %v4730_v32 }
 0x42d   : > { %v2202_v62 = vpop.f32.mrf.mxu3 }
 0x42e   : > { %v2264_v30 = vadd.f32 %v2202_v62, %v2030_v54  ;;  %v2793_v6 = vpack.c.bf16 %v2767_v1, %v2766_v16  ;;  %v2447_v62 = vpop.f32.mrf.mxu0 }
 0x42f   : > { %v2670_v5 = vpop.f32.mrf.mxu1 }
 0x430   : > { %v2497_v18 = vadd.f32 %v4688_v50, %v2264_v30  ;;  %2832 = vrot.lane.b32.xlu0 %v2793_v6, %s3539_s12  ;;  %v2564_v50 = vpack.c.bf16 %v2548_v47, %v2547_v46 }
 0x432   : > { %v2730_v11 = vadd.f32 %v2668_v63, %v2497_v18 }
 0x434   : > { %v4746_v10 = vadd.f32 %v3010_v45, %v2730_v11  ;;  %v2768_v58 = vadd.f32 %v4611_v28, %v2730_v11  ;;  %v5190_v45 = vld [vmem:[#allocation17_spill] sm:$0xff] }
 0x435   : > { %v2204_v20 = vpop.f32.mrf.mxu3  ;;  %v3012_v8 = vadd.f32 %v3506_v33, %v5190_v45 }
 0x436   : > { %v2265_v17 = vadd.f32 %v2204_v20, %v2031_v57  ;;  %v2450_v47 = vpop.f32.mrf.mxu0 }
 0x437   : > { %v2673_v54 = vpop.f32.mrf.mxu1 }
 0x438   : > { %v2498_v16 = vadd.f32 %v4705_v51, %v2265_v17 }
 0x43a   : > { %v4749_v63 = vadd.f32 %v2670_v5, %v2498_v16  ;;  %3399 = vmatmul.msk.bf16.gmra.mxu3 %vm510_vm2, %v2098_v19  ;;  %3445 = vmatmul.msk.bf16.gmra.mxu1 %vm510_vm2, %v2564_v50  ;;  %v1983_v5 = vpop.f32.mrf.mxu2  ;;  %v2034_v19 = vadd.f32 %v1978_v34, %v4496_v42  ;;  %v2035_v42 = vadd.f32 %v1980_v15, %v4502_v41 }
 0x43c   : > { %v2769_v1 = vadd.f32 %v4611_v28, %v4749_v63 }
 0x43d   : > { %v2207_v30 = vpop.f32.mrf.mxu3 }
 0x43e   : > { %v2266_v6 = vadd.f32 %v2207_v30, %v2032_v26  ;;  %v2794_v18 = vpack.c.bf16 %v2769_v1, %v2768_v58  ;;  %v2452_v1 = vpop.f32.mrf.mxu0  ;;  %v5191_v30 = vld [vmem:[#allocation19_spill] sm:$0xff] }
 0x43f   : > { %v2675_v55 = vpop.f32.mrf.mxu1 }
 0x440   : > { %v2499_v51 = vadd.f32 %v2440_v4, %v2266_v6  ;;  %2834 = vrot.lane.b32.xlu1 %v2794_v18, %s3539_s12 }
 0x442   : > { %v2732_v59 = vadd.f32 %v2673_v54, %v2499_v51  ;;  %v1985_v4 = vpop.f32.mrf.mxu2 }
 0x444   : > { %v4762_v2 = vadd.f32 %v3012_v8, %v2732_v59  ;;  %v2770_v50 = vadd.f32 %v4611_v28, %v2732_v59 }
 0x445   : > { %v2209_v11 = vpop.f32.mrf.mxu3 }
 0x446   : > { %v2267_v46 = vadd.f32 %v2209_v11, %v2033_v0  ;;  %v2455_v0 = vpop.f32.mrf.mxu0  ;;  %v2036_v11 = vadd.f32 %v1983_v5, %v4513_v48  ;;  %v2037_v48 = vadd.f32 %v1985_v4, %v4519_v27 }
 0x447   : > { %v2678_v57 = vpop.f32.mrf.mxu1 }
 0x448   : > { %v2500_v20 = vadd.f32 %v2442_v39, %v2267_v46  ;;  %v3507_v39 = vld [vmem:[%s3607_s11 + $0x80] sm:$0xff] }
 0x449   : > { %v3014_v6 = vadd.f32 %v3507_v39, %v5191_v30 }
 0x44a   : > { %v4764_v17 = vadd.f32 %v2675_v55, %v2500_v20  ;;  %v1988_v51 = vpop.f32.mrf.mxu2 }
 0x44c   : > { %v2771_v54 = vadd.f32 %v4611_v28, %v4764_v17 }
 0x44d   : > { %v2212_v16 = vpop.f32.mrf.mxu3 }
 0x44e   : > { %v2268_v31 = vadd.f32 %v2212_v16, %v2034_v19  ;;  %v2795_v24 = vpack.c.bf16 %v2771_v54, %v2770_v50  ;;  %v3508_v16 = vld [vmem:[%s3607_s11 + $0x90] sm:$0xff] }
 0x44f   : > { %v2680_v26 = vpop.f32.mrf.mxu1 }
 0x450   : > { %v2501_v58 = vadd.f32 %v2445_v52, %v2268_v31  ;;  %2836 = vrot.lane.b32.xlu2 %v2795_v24, %s3539_s12  ;;  %v2825_v24 = vpop.permute.xlu2 %2824 }
 0x452   : > { %v2734_v18 = vadd.f32 %v2678_v57, %v2501_v58  ;;  %v2823_v55 = vpop.permute.xlu1 %2822  ;;  %v1990_v19 = vpop.f32.mrf.mxu2 }
 0x453   : > { %3450 = vmatmul.msk.bf16.vlgmr.msra.gmra.mxu2 %vm2860_vm5, %v2823_v55  ;;  %v2457_v58 = vpop.f32.mrf.mxu0 }
 0x454   : > { %v4775_v34 = vadd.f32 %v3014_v6, %v2734_v18  ;;  %v2772_v46 = vadd.f32 %v4611_v28, %v2734_v18 }
 0x455   : > { %v2214_v33 = vpop.f32.mrf.mxu3 }
 0x456   : > { %v2269_v45 = vadd.f32 %v2214_v33, %v2035_v42  ;;  %v2038_v42 = vadd.f32 %v1988_v51, %v4530_v40  ;;  %v2039_v40 = vadd.f32 %v1990_v19, %v4534_v23 }
 0x457   : > { %v2683_v52 = vpop.f32.mrf.mxu1 }
 0x458   : > { %v2502_v8 = vadd.f32 %v2447_v62, %v2269_v45  ;;  %v5192_v62 = vld [vmem:[#allocation21_spill] sm:$0xff] }
 0x459   : > { %v3016_v31 = vadd.f32 %v3508_v16, %v5192_v62 }
 0x45a   : > { %v4777_v59 = vadd.f32 %v2680_v26, %v2502_v8 }
 0x45b   : > { %v2460_v8 = vpop.f32.mrf.mxu0 }
 0x45c   : > { %v2773_v57 = vadd.f32 %v4611_v28, %v4777_v59 }
 0x45d   : > { %v2217_v20 = vpop.f32.mrf.mxu3 }
 0x45e   : > { %v2270_v41 = vadd.f32 %v2217_v20, %v2036_v11  ;;  %v2796_v15 = vpack.c.bf16 %v2773_v57, %v2772_v46  ;;  %v3509_v57 = vld [vmem:[%s3607_s11 + $0xa0] sm:$0xff] }
 0x45f   : > { %v2685_v50 = vpop.f32.mrf.mxu1 }
 0x460   : > { %v2503_v54 = vadd.f32 %v2450_v47, %v2270_v41  ;;  %2838 = vrot.lane.b32.xlu0 %v2796_v15, %s3539_s12  ;;  %v1993_v47 = vpop.f32.mrf.mxu2 }
 0x462   : > { %v2736_v26 = vadd.f32 %v2683_v52, %v2503_v54 }
 0x463   : > { %3451 = vmatmul.msk.bf16.gmra.mxu2 %vm2860_vm5, %v2825_v24 }
 0x464   : > { %v4788_v5 = vadd.f32 %v3016_v31, %v2736_v26  ;;  %v2774_v33 = vadd.f32 %v4611_v28, %v2736_v26  ;;  %v2040_v26 = vadd.f32 %v1993_v47, %v4545_v21 }
 0x465   : > { %v2219_v39 = vpop.f32.mrf.mxu3 }
 0x466   : > { %v2271_v30 = vadd.f32 %v2219_v39, %v2037_v48 }
 0x467   : > { %v2688_v6 = vpop.f32.mrf.mxu1 }
 0x468   : > { %v2504_v18 = vadd.f32 %v2452_v1, %v2271_v30  ;;  %v5193_v1 = vld [vmem:[#allocation23_spill] sm:$0xff] }
 0x469   : > { %v3018_v20 = vadd.f32 %v3509_v57, %v5193_v1 }
 0x46a   : > { %v4790_v55 = vadd.f32 %v2685_v50, %v2504_v18  ;;  %v1995_v50 = vpop.f32.mrf.mxu2 }
 0x46b   : > { %v2041_v21 = vadd.f32 %v1995_v50, %v4549_v14 }
 0x46c   : > { %v2775_v45 = vadd.f32 %v4611_v28, %v4790_v55 }
 0x46d   : > { %v2222_v52 = vpop.f32.mrf.mxu3 }
 0x46e   : > { %v2272_v27 = vadd.f32 %v2222_v52, %v2038_v42  ;;  %v2797_v4 = vpack.c.bf16 %v2775_v45, %v2774_v33  ;;  %v3510_v33 = vld [vmem:[%s3607_s11 + $0xb0] sm:$0xff] }
 0x46f   : > { %v2690_v11 = vpop.f32.mrf.mxu1 }
 0x470   : > { %v2505_v46 = vadd.f32 %v2455_v0, %v2272_v27  ;;  %2840 = vrot.lane.b32.xlu1 %v2797_v4, %s3539_s12  ;;  %v2462_v0 = vpop.f32.mrf.mxu0 }
 0x472   : > { %v2738_v41 = vadd.f32 %v2688_v6, %v2505_v46  ;;  %v2827_v15 = vpop.permute.xlu0 %2826  ;;  %v1998_v30 = vpop.f32.mrf.mxu2 }
 0x473   : > { %3452 = vmatmul.msk.bf16.gmra.mxu2 %vm2860_vm5, %v2827_v15 }
 0x474   : > { %v4801_v51 = vadd.f32 %v3018_v20, %v2738_v41  ;;  %v2776_v48 = vadd.f32 %v4611_v28, %v2738_v41  ;;  %v2042_v41 = vadd.f32 %v1998_v30, %v4557_v12 }
 0x475   : > { %v2224_v54 = vpop.f32.mrf.mxu3 }
 0x476   : > { %v2273_v16 = vadd.f32 %v2224_v54, %v2039_v40 }
 0x477   : > { %v2693_v62 = vpop.f32.mrf.mxu1 }
 0x478   : > { %v2506_v31 = vadd.f32 %v2457_v58, %v2273_v16  ;;  %v5194_v58 = vld [vmem:[#allocation25_spill] sm:$0xff]  ;;  %v2465_v4 = vpop.f32.mrf.mxu0 }
 0x479   : > { %v3020_v45 = vadd.f32 %v3510_v33, %v5194_v58 }
 0x47a   : > { %v4803_v24 = vadd.f32 %v2690_v11, %v2506_v31  ;;  %v2000_v57 = vpop.f32.mrf.mxu2 }
 0x47b   : > { %v2043_v12 = vadd.f32 %v2000_v57, %v4561_v61 }
 0x47c   : > { %v2777_v39 = vadd.f32 %v4611_v28, %v4803_v24 }
 0x47d   : > { %v2227_v6 = vpop.f32.mrf.mxu3 }
 0x47e   : > { %v2274_v23 = vadd.f32 %v2227_v6, %v2040_v26  ;;  %v2798_v19 = vpack.c.bf16 %v2777_v39, %v2776_v48  ;;  %v3511_v48 = vld [vmem:[%s3607_s11 + $0xc0] sm:$0xff]  ;;  %v2831_v6 = vpop.permute.xlu2 %2830 }
 0x47f   : > { %v2695_v18 = vpop.f32.mrf.mxu1 }
 0x480   : > { %v2507_v42 = vadd.f32 %v2460_v8, %v2274_v23  ;;  %2842 = vrot.lane.b32.xlu2 %v2798_v19, %s3539_s12  ;;  %v2467_v54 = vpop.f32.mrf.mxu0 }
 0x482   : > { %v2740_v52 = vadd.f32 %v2693_v62, %v2507_v42  ;;  %v2829_v27 = vpop.permute.xlu1 %2828  ;;  %v2003_v26 = vpop.f32.mrf.mxu2 }
 0x483   : > { %3453 = vmatmul.msk.bf16.gmra.mxu2 %vm2860_vm5, %v2829_v27  ;;  %v2044_v27 = vadd.f32 %v2003_v26, %v4568_v56 }
 0x484   : > { %v4814_v47 = vadd.f32 %v3020_v45, %v2740_v52  ;;  %v2778_v15 = vadd.f32 %v4611_v28, %v2740_v52 }
 0x485   : > { %v2229_v11 = vpop.f32.mrf.mxu3 }
 0x486   : > { %v2275_v46 = vadd.f32 %v2229_v11, %v2041_v21 }
 0x487   : > { %v2698_v1 = vpop.f32.mrf.mxu1 }
 0x488   : > { %v2508_v8 = vadd.f32 %v2462_v0, %v2275_v46  ;;  %v5195_v0 = vld [vmem:[#allocation28_spill] sm:$0xff]  ;;  %v2470_v42 = vpop.f32.mrf.mxu0 }
 0x489   : > { %v3022_v39 = vadd.f32 %v3511_v48, %v5195_v0 }
 0x48a   : > { %v4816_v20 = vadd.f32 %v2695_v18, %v2508_v8  ;;  %v2005_v52 = vpop.f32.mrf.mxu2  ;;  %v3512_v8 = vld [vmem:[%s3607_s11 + $0xd0] sm:$0xff] }
 0x48b   : > { %v2045_v56 = vadd.f32 %v2005_v52, %v4572_v3  ;;  %v5197_v52 = vld [vmem:[#allocation31_spill] sm:$0xff] }
 0x48c   : > { %v2779_v40 = vadd.f32 %v4611_v28, %v4816_v20 }
 0x48d   : > { %v2232_v16 = vpop.f32.mrf.mxu3 }
 0x48e   : > { %v2276_v14 = vadd.f32 %v2232_v16, %v2042_v41  ;;  %v2799_v50 = vpack.c.bf16 %v2779_v40, %v2778_v15  ;;  %v5196_v41 = vld [vmem:[#allocation27_spill] sm:$0xff] }
 0x48f   : > { %v2700_v62 = vpop.f32.mrf.mxu1  ;;  %v3024_v15 = vadd.f32 %v3512_v8, %v5196_v41 }
 0x490   : > { %v2509_v31 = vadd.f32 %v2465_v4, %v2276_v14  ;;  %2844 = vrot.lane.b32.xlu0 %v2799_v50, %s3539_s12 }
 0x492   : > { %v2742_v23 = vadd.f32 %v2698_v1, %v2509_v31  ;;  %v2472_v1 = vpop.f32.mrf.mxu0  ;;  %v2008_v50 = vpop.f32.mrf.mxu2 }
 0x493   : > { %3454 = vmatmul.msk.bf16.gmra.mxu2 %vm2860_vm5, %v2831_v6 }
 0x494   : > { %v4827_v30 = vadd.f32 %v3022_v39, %v2742_v23  ;;  %v2780_v4 = vadd.f32 %v4611_v28, %v2742_v23  ;;  %v2046_v39 = vadd.f32 %v2008_v50, %v4579_v43 }
 0x495   : > { %v2234_v19 = vpop.f32.mrf.mxu3 }
 0x496   : > { %v2277_v18 = vadd.f32 %v2234_v19, %v2043_v12 }
 0x497   : > { %v2703_v58 = vpop.f32.mrf.mxu1 }
 0x498   : > { %v2510_v33 = vadd.f32 %v2467_v54, %v2277_v18 }
 0x49a   : > { %v4829_v45 = vadd.f32 %v2700_v62, %v2510_v33  ;;  %v2475_v0 = vpop.f32.mrf.mxu0 }
 0x49c   : > { %v2781_v21 = vadd.f32 %v4611_v28, %v4829_v45 }
 0x49d   : > { %v2237_v11 = vpop.f32.mrf.mxu3 }
 0x49e   : > { %v2278_v61 = vadd.f32 %v2237_v11, %v2044_v27  ;;  %v2800_v46 = vpack.c.bf16 %v2781_v21, %v2780_v4 }
 0x49f   : > { %v2705_v16 = vpop.f32.mrf.mxu1 }
 0x4a0   : > { %v2511_v57 = vadd.f32 %v2470_v42, %v2278_v61  ;;  %2846 = vrot.lane.b32.xlu1 %v2800_v46, %s3539_s12  ;;  %v2010_v42 = vpop.f32.mrf.mxu2 }
 0x4a1   : > { %v2047_v43 = vadd.f32 %v2010_v42, %v4583_v35 }
 0x4a2   : > { %v2744_v40 = vadd.f32 %v2703_v58, %v2511_v57  ;;  %v2833_v54 = vpop.permute.xlu0 %2832  ;;  %v3513_v58 = vld [vmem:[%s3607_s11 + $0xe0] sm:$0xff]  ;;  %v2477_v61 = vpop.f32.mrf.mxu0 }
 0x4a3   : > { %3455 = vmatmul.msk.bf16.gmra.mxu2 %vm2860_vm5, %v2833_v54  ;;  %v3026_v27 = vadd.f32 %v3513_v58, %v5197_v52 }
 0x4a4   : > { %v4840_v14 = vadd.f32 %v3024_v15, %v2744_v40  ;;  %v2782_v6 = vadd.f32 %v4611_v28, %v2744_v40 }
 0x4a5   : > { %v2239_v62 = vpop.f32.mrf.mxu3 }
 0x4a6   : > { %v2279_v31 = vadd.f32 %v2239_v62, %v2045_v56 }
 0x4a7   : > { %v2708_v12 = vpop.f32.mrf.mxu1 }
 0x4a8   : > { %v2512_v26 = vadd.f32 %v2472_v1, %v2279_v31  ;;  %v2013_v41 = vpop.f32.mrf.mxu2 }
 0x4a9   : > { %v2048_v40 = vadd.f32 %v2013_v41, %v4590_v60 }
 0x4aa   : > { %v4842_v48 = vadd.f32 %v2705_v16, %v2512_v26  ;;  %v2480_v56 = vpop.f32.mrf.mxu0 }
 0x4ac   : > { %v2783_v23 = vadd.f32 %v4611_v28, %v4842_v48 }
 0x4ad   : > { %v2242_v19 = vpop.f32.mrf.mxu3 }
 0x4ae   : > { %v2280_v3 = vadd.f32 %v2242_v19, %v2046_v39  ;;  %v2801_v18 = vpack.c.bf16 %v2783_v23, %v2782_v6  ;;  %v5198_v39 = vld [vmem:[#allocation33_spill] sm:$0xff]  ;;  %v2837_v23 = vpop.permute.xlu2 %2836 }
 0x4af   : > { %v2710_v1 = vpop.f32.mrf.mxu1 }
 0x4b0   : > { %v2513_v33 = vadd.f32 %v2475_v0, %v2280_v3  ;;  %2848 = vrot.lane.b32.xlu2 %v2801_v18, %s3539_s12  ;;  %v3514_v0 = vld [vmem:[%s3607_s11 + $0xf0] sm:$0xff]  ;;  %v2015_v19 = vpop.f32.mrf.mxu2 }
 0x4b1   : > { %v3028_v6 = vadd.f32 %v3514_v0, %v5198_v39  ;;  %v2049_v60 = vadd.f32 %v2015_v19, %v4594_v38  ;;  %v4878_v38 = vld [vmem:[%s5061_s6] ss:$0 sm:$0xff] }
 0x4b2   : > { %v2746_v4 = vadd.f32 %v2708_v12, %v2513_v33  ;;  %v2835_v21 = vpop.permute.xlu1 %2834  ;;  %v2482_v33 = vpop.f32.mrf.mxu0 }
 0x4b3   : > { %3456 = vmatmul.msk.bf16.gmra.mxu2 %vm2860_vm5, %v2835_v21 }
 0x4b4   : > { %v4853_v11 = vadd.f32 %v3026_v27, %v2746_v4  ;;  %v2784_v54 = vadd.f32 %v4611_v28, %v2746_v4 }
 0x4b5   : > { %v2244_v46 = vpop.f32.mrf.mxu3 }
 0x4b6   : > { %v2281_v57 = vadd.f32 %v2244_v46, %v2047_v43 }
 0x4b7   : > { %v2713_v31 = vpop.f32.mrf.mxu1 }
 0x4b8   : > { %v2514_v8 = vadd.f32 %v2477_v61, %v2281_v57 }
 0x4ba   : > { %v4855_v15 = vadd.f32 %v2710_v1, %v2514_v8 }
 0x4bc   : > { %v2785_v16 = vadd.f32 %v4611_v28, %v4855_v15 }
 0x4bd   : > { %v2247_v35 = vpop.f32.mrf.mxu3 }
 0x4be   : > { %v2282_v50 = vadd.f32 %v2247_v35, %v2048_v40  ;;  %v2802_v62 = vpack.c.bf16 %v2785_v16, %v2784_v54  ;;  %v5199_v35 = vld [vmem:[#allocation6_spill] sm:$0xff] }
 0x4bf   : > { %v2715_v52 = vpop.f32.mrf.mxu1 }
 0x4c0   : > { %v2515_v26 = vadd.f32 %v2480_v56, %v2282_v50  ;;  %2850 = vrot.lane.b32.xlu0 %v2802_v62, %s3539_s12  ;;  %v3515_v56 = vld [vmem:[%s3607_s11 + $0x18] sm:$0xff] }
 0x4c1   : > { %v3001_v50 = vadd.f32 %v3515_v56, %v5199_v35 }
 0x4c2   : > { %v2748_v12 = vadd.f32 %v2713_v31, %v2515_v26 }
 0x4c3   : > { %3457 = vmatmul.msk.bf16.gmra.mxu2 %vm2860_vm5, %v2837_v23  ;;  %v3516_v23 = vld [vmem:[%s3607_s11 + $0x28] sm:$0xff] }
 0x4c4   : > { %v4866_v3 = vadd.f32 %v3028_v6, %v2748_v12  ;;  %v2786_v4 = vadd.f32 %v4611_v28, %v2748_v12  ;;  %v5200_v12 = vld [vmem:[#allocation8_spill] sm:$0xff] }
 0x4c5   : > { %v2249_v18 = vpop.f32.mrf.mxu3 }
 0x4c6   : > { %v2283_v42 = vadd.f32 %v2249_v18, %v2049_v60 }
 0x4c8   : > { %v2516_v58 = vadd.f32 %v2482_v33, %v2283_v42 }
 0x4ca   : > { %v4868_v27 = vadd.f32 %v2715_v52, %v2516_v58 }
 0x4cc   : > { %v2787_v21 = vadd.f32 %v4611_v28, %v4868_v27 }
 0x4ce   : > { %v2803_v43 = vpack.c.bf16 %v2787_v21, %v2786_v4  ;;  %v3517_v4 = vld [vmem:[%s3607_s11 + $0x38] sm:$0xff]  ;;  %v5201_v21 = vld [vmem:[#allocation10_spill] sm:$0xff] }
 0x4d0   : > { %2852 = vrot.lane.b32.xlu1 %v2803_v43, %s3539_s12 }
 0x4d2   : > { %v2839_v61 = vpop.permute.xlu0 %2838 }
 0x4d3   : > { %3458 = vmatmul.msk.bf16.gmra.mxu2 %vm2860_vm5, %v2839_v61 }
 0x4d6   : > { %v2918_v46 = vpop.f32.mrf.mxu2 }
 0x4d7   : > { %v3062_v57 = vadd.f32 %v4605_v29, %v2918_v46 }
 0x4d9   : > { %v3098_v28 = vadd.f32 %v4878_v38, %v3062_v57 }
 0x4da   : > { %v2843_v0 = vpop.permute.xlu2 %2842 }
 0x4db   : > { %3130 = vst.msk [vmem:[%s4886_s26] sm:$0xff] %vm329_vm1, %v3098_v28 }
 0x4de   : > { %v2920_v1 = vpop.f32.mrf.mxu2 }
 0x4df   : > { %v3063_v8 = vadd.f32 %v4620_v25, %v2920_v1  ;;  %v3033_v25 = vadd.f32 %v3001_v50, %v4637_v49  ;;  %v3003_v49 = vadd.f32 %v3516_v23, %v5200_v12 }
 0x4e1   : > { %v3099_v41 = vadd.f32 %v4878_v38, %v3063_v8  ;;  %v3035_v19 = vadd.f32 %v3003_v49, %v4660_v37  ;;  %v3005_v37 = vadd.f32 %v3517_v4, %v5201_v21  ;;  %v3520_v49 = vld [vmem:[%s3607_s11 + $0x68] sm:$0xff]  ;;  %v3521_v4 = vld [vmem:[%s3607_s11 + $0x78] sm:$0xff] }
 0x4e2   : > { %v2841_v29 = vpop.permute.xlu1 %2840  ;;  %v5205_v21 = vld [vmem:[#allocation18_spill] sm:$0xff] }
 0x4e3   : > { %3131 = vst.msk [vmem:[%s4886_s26 + $0x8] sm:$0xff] %vm329_vm1, %v3099_v41  ;;  %3459 = vmatmul.msk.bf16.gmra.mxu2 %vm2860_vm5, %v2841_v29  ;;  %v3037_v43 = vadd.f32 %v3005_v37, %v4683_v44  ;;  %v3518_v41 = vld [vmem:[%s3607_s11 + $0x48] sm:$0xff]  ;;  %v5202_v29 = vld [vmem:[#allocation12_spill] sm:$0xff] }
 0x4e4   : > { %v3007_v44 = vadd.f32 %v3518_v41, %v5202_v29 }
 0x4e6   : > { %v2923_v40 = vpop.f32.mrf.mxu2 }
 0x4e7   : > { %v3064_v54 = vadd.f32 %v4631_v9, %v2923_v40  ;;  %v3039_v40 = vadd.f32 %v3007_v44, %v4710_v22 }
 0x4e9   : > { %v3100_v16 = vadd.f32 %v4878_v38, %v3064_v54 }
 0x4eb   : > { %3132 = vst.msk [vmem:[%s4886_s26 + $0x10] sm:$0xff] %vm329_vm1, %v3100_v16 }
 0x4ee   : > { %v2925_v62 = vpop.f32.mrf.mxu2 }
 0x4ef   : > { %v3065_v31 = vadd.f32 %v3033_v25, %v2925_v62  ;;  %v3519_v62 = vld [vmem:[%s3607_s11 + $0x58] sm:$0xff] }
 0x4f1   : > { %v3101_v26 = vadd.f32 %v4878_v38, %v3065_v31  ;;  %v5203_v31 = vld [vmem:[#allocation14_spill] sm:$0xff] }
 0x4f2   : > { %v3009_v22 = vadd.f32 %v3519_v62, %v5203_v31 }
 0x4f3   : > { %3133 = vst.msk [vmem:[%s4886_s26 + $0x18] sm:$0xff] %vm329_vm1, %v3101_v26  ;;  %3460 = vmatmul.msk.bf16.gmra.mxu2 %vm2860_vm5, %v2843_v0 }
 0x4f4   : > { %v3041_v26 = vadd.f32 %v3009_v22, %v4730_v32  ;;  %v3524_v22 = vld [vmem:[%s3607_s11 + $0xa8] sm:$0xff] }
 0x4f6   : > { %v2928_v9 = vpop.f32.mrf.mxu2 }
 0x4f7   : > { %v3066_v39 = vadd.f32 %v4654_v13, %v2928_v9 }
 0x4f9   : > { %v3102_v6 = vadd.f32 %v4878_v38, %v3066_v39 }
 0x4fb   : > { %3134 = vst.msk [vmem:[%s4886_s26 + $0x20] sm:$0xff] %vm329_vm1, %v3102_v6 }
 0x4fe   : > { %v2930_v60 = vpop.f32.mrf.mxu2 }
 0x4ff   : > { %v3067_v18 = vadd.f32 %v3035_v19, %v2930_v60  ;;  %v5204_v19 = vld [vmem:[#allocation16_spill] sm:$0xff] }
 0x500   : > { %v3011_v32 = vadd.f32 %v3520_v49, %v5204_v19  ;;  %v5209_v49 = vld [vmem:[#allocation26_spill] sm:$0xff] }
 0x501   : > { %v3103_v42 = vadd.f32 %v4878_v38, %v3067_v18 }
 0x502   : > { %v2845_v33 = vpop.permute.xlu0 %2844  ;;  %v3043_v60 = vadd.f32 %v3011_v32, %v4749_v63  ;;  %v3013_v63 = vadd.f32 %v3521_v4, %v5205_v21 }
 0x503   : > { %3135 = vst.msk [vmem:[%s4886_s26 + $0x28] sm:$0xff] %vm329_vm1, %v3103_v42  ;;  %3461 = vmatmul.msk.bf16.gmra.mxu2 %vm2860_vm5, %v2845_v33 }
 0x504   : > { %v3045_v37 = vadd.f32 %v3013_v63, %v4764_v17 }
 0x506   : > { %v2933_v13 = vpop.f32.mrf.mxu2 }
 0x507   : > { %v3068_v58 = vadd.f32 %v4677_v36, %v2933_v13 }
 0x509   : > { %v3104_v52 = vadd.f32 %v4878_v38, %v3068_v58 }
 0x50a   : > { %v2849_v35 = vpop.permute.xlu2 %2848 }
 0x50b   : > { %3136 = vst.msk [vmem:[%s4886_s26 + $0x30] sm:$0xff] %vm329_vm1, %v3104_v52 }
 0x50e   : > { %v2935_v61 = vpop.f32.mrf.mxu2 }
 0x50f   : > { %v3069_v46 = vadd.f32 %v3037_v43, %v2935_v61 }
 0x511   : > { %v3105_v57 = vadd.f32 %v4878_v38, %v3069_v46 }
 0x512   : > { %v2847_v28 = vpop.permute.xlu1 %2846 }
 0x513   : > { %3137 = vst.msk [vmem:[%s4886_s26 + $0x38] sm:$0xff] %vm329_vm1, %v3105_v57  ;;  %3462 = vmatmul.msk.bf16.gmra.mxu2 %vm2860_vm5, %v2847_v28 }
 0x516   : > { %v2938_v36 = vpop.f32.mrf.mxu2 }
 0x517   : > { %v3070_v1 = vadd.f32 %v4703_v7, %v2938_v36  ;;  %v3522_v36 = vld [vmem:[%s3607_s11 + $0x88] sm:$0xff] }
 0x519   : > { %v3106_v8 = vadd.f32 %v4878_v38, %v3070_v1  ;;  %v5206_v1 = vld [vmem:[#allocation20_spill] sm:$0xff] }
 0x51b   : > { %3138 = vst.msk [vmem:[%s4886_s26 + $0x40] sm:$0xff] %vm329_vm1, %v3106_v8  ;;  %v3015_v8 = vadd.f32 %v3522_v36, %v5206_v1 }
 0x51d   : > { %v3047_v17 = vadd.f32 %v3015_v8, %v4777_v59  ;;  %v3528_v8 = vld [vmem:[%s3607_s11 + $0xe8] sm:$0xff] }
 0x51e   : > { %v2940_v54 = vpop.f32.mrf.mxu2 }
 0x51f   : > { %v3071_v16 = vadd.f32 %v3039_v40, %v2940_v54 }
 0x521   : > { %v3107_v56 = vadd.f32 %v4878_v38, %v3071_v16  ;;  %v3523_v16 = vld [vmem:[%s3607_s11 + $0x98] sm:$0xff] }
 0x523   : > { %3139 = vst.msk [vmem:[%s4886_s26 + $0x48] sm:$0xff] %vm329_vm1, %v3107_v56  ;;  %3463 = vmatmul.msk.bf16.gmra.mxu2 %vm2860_vm5, %v2849_v35  ;;  %v5207_v56 = vld [vmem:[#allocation22_spill] sm:$0xff] }
 0x524   : > { %v3017_v35 = vadd.f32 %v3523_v16, %v5207_v56  ;;  %v3529_v16 = vld [vmem:[%s3607_s11 + $0xf8] sm:$0xff]  ;;  %v5213_v56 = vld [vmem:[#allocation34_spill] sm:$0xff] }
 0x526   : > { %v2943_v7 = vpop.f32.mrf.mxu2  ;;  %v3049_v59 = vadd.f32 %v3017_v35, %v4790_v55  ;;  %v3029_v35 = vadd.f32 %v3529_v16, %v5213_v56 }
 0x527   : > { %v3072_v50 = vadd.f32 %v4727_v53, %v2943_v7 }
 0x529   : > { %v3108_v25 = vadd.f32 %v4878_v38, %v3072_v50 }
 0x52b   : > { %3140 = vst.msk [vmem:[%s4886_s26 + $0x50] sm:$0xff] %vm329_vm1, %v3108_v25 }
 0x52e   : > { %v2945_v0 = vpop.f32.mrf.mxu2 }
 0x52f   : > { %v3073_v9 = vadd.f32 %v3041_v26, %v2945_v0  ;;  %v5208_v26 = vld [vmem:[#allocation24_spill] sm:$0xff] }
 0x530   : > { %v3019_v0 = vadd.f32 %v3524_v22, %v5208_v26 }
 0x531   : > { %v3109_v39 = vadd.f32 %v4878_v38, %v3073_v9 }
 0x532   : > { %v2851_v6 = vpop.permute.xlu0 %2850  ;;  %v3051_v55 = vadd.f32 %v3019_v0, %v4803_v24 }
 0x533   : > { %3141 = vst.msk [vmem:[%s4886_s26 + $0x58] sm:$0xff] %vm329_vm1, %v3109_v39  ;;  %3464 = vmatmul.msk.bf16.gmra.mxu2 %vm2860_vm5, %v2851_v6 }
 0x536   : > { %v2948_v53 = vpop.f32.mrf.mxu2 }
 0x537   : > { %v3074_v23 = vadd.f32 %v4746_v10, %v2948_v53 }
 0x539   : > { %v3110_v12 = vadd.f32 %v4878_v38, %v3074_v23 }
 0x53b   : > { %3142 = vst.msk [vmem:[%s4886_s26 + $0x60] sm:$0xff] %vm329_vm1, %v3110_v12  ;;  %v3525_v12 = vld [vmem:[%s3607_s11 + $0xb8] sm:$0xff] }
 0x53c   : > { %v3021_v19 = vadd.f32 %v3525_v12, %v5209_v49 }
 0x53e   : > { %v2950_v18 = vpop.f32.mrf.mxu2  ;;  %v3053_v24 = vadd.f32 %v3021_v19, %v4816_v20 }
 0x53f   : > { %v3075_v42 = vadd.f32 %v3043_v60, %v2950_v18 }
 0x541   : > { %v3111_v33 = vadd.f32 %v4878_v38, %v3075_v42 }
 0x542   : > { %v2853_v13 = vpop.permute.xlu1 %2852 }
 0x543   : > { %3143 = vst.msk [vmem:[%s4886_s26 + $0x68] sm:$0xff] %vm329_vm1, %v3111_v33  ;;  %3465 = vmatmul.msk.bf16.gmra.mxu2 %vm2860_vm5, %v2853_v13  ;;  %v3526_v13 = vld [vmem:[%s3607_s11 + $0xc8] sm:$0xff] }
 0x546   : > { %v2953_v10 = vpop.f32.mrf.mxu2 }
 0x547   : > { %v3076_v58 = vadd.f32 %v4762_v2, %v2953_v10  ;;  %v5210_v10 = vld [vmem:[#allocation30_spill] sm:$0xff] }
 0x549   : > { %v3112_v52 = vadd.f32 %v4878_v38, %v3076_v58  ;;  %v3023_v58 = vadd.f32 %v3526_v13, %v5210_v10 }
 0x54b   : > { %3144 = vst.msk [vmem:[%s4886_s26 + $0x70] sm:$0xff] %vm329_vm1, %v3112_v52  ;;  %v3055_v20 = vadd.f32 %v3023_v58, %v4829_v45 }
 0x54e   : > { %v2955_v43 = vpop.f32.mrf.mxu2 }
 0x54f   : > { %v3077_v61 = vadd.f32 %v3045_v37, %v2955_v43  ;;  %v3527_v43 = vld [vmem:[%s3607_s11 + $0xd8] sm:$0xff] }
 0x551   : > { %v3113_v46 = vadd.f32 %v4878_v38, %v3077_v61  ;;  %v5211_v61 = vld [vmem:[#allocation29_spill] sm:$0xff] }
 0x553   : > { %3145 = vst.msk [vmem:[%s4886_s26 + $0x78] sm:$0xff] %vm329_vm1, %v3113_v46  ;;  %v3025_v46 = vadd.f32 %v3527_v43, %v5211_v61 }
 0x555   : > { %v3057_v45 = vadd.f32 %v3025_v46, %v4842_v48 }
 0x556   : > { %v2958_v57 = vpop.f32.mrf.mxu2 }
 0x557   : > { %v3078_v2 = vadd.f32 %v4775_v34, %v2958_v57 }
 0x559   : > { %v3114_v28 = vadd.f32 %v4878_v38, %v3078_v2 }
 0x55b   : > { %3146 = vst.msk [vmem:[%s4886_s26 + $0x80] sm:$0xff] %vm329_vm1, %v3114_v28 }
 0x55e   : > { %v2960_v41 = vpop.f32.mrf.mxu2 }
 0x55f   : > { %v3079_v29 = vadd.f32 %v3047_v17, %v2960_v41  ;;  %v5212_v17 = vld [vmem:[#allocation32_spill] sm:$0xff] }
 0x560   : > { %v3027_v41 = vadd.f32 %v3528_v8, %v5212_v17 }
 0x561   : > { %v3115_v44 = vadd.f32 %v4878_v38, %v3079_v29 }
 0x562   : > { %v3059_v48 = vadd.f32 %v3027_v41, %v4855_v15 }
 0x563   : > { %3147 = vst.msk [vmem:[%s4886_s26 + $0x88] sm:$0xff] %vm329_vm1, %v3115_v44 }
 0x566   : > { %v2963_v40 = vpop.f32.mrf.mxu2 }
 0x567   : > { %v3080_v34 = vadd.f32 %v4788_v5, %v2963_v40 }
 0x569   : > { %v3116_v54 = vadd.f32 %v4878_v38, %v3080_v34 }
 0x56b   : > { %3148 = vst.msk [vmem:[%s4886_s26 + $0x90] sm:$0xff] %vm329_vm1, %v3116_v54 }
 0x56e   : > { %v2965_v7 = vpop.f32.mrf.mxu2 }
 0x56f   : > { %v3081_v50 = vadd.f32 %v3049_v59, %v2965_v7  ;;  %v3061_v59 = vadd.f32 %v3029_v35, %v4868_v27 }
 0x571   : > { %v3117_v25 = vadd.f32 %v4878_v38, %v3081_v50 }
 0x573   : > { %3149 = vst.msk [vmem:[%s4886_s26 + $0x98] sm:$0xff] %vm329_vm1, %v3117_v25 }
 0x576   : > { %v2968_v62 = vpop.f32.mrf.mxu2 }
 0x577   : > { %v3082_v5 = vadd.f32 %v4801_v51, %v2968_v62 }
 0x579   : > { %v3118_v31 = vadd.f32 %v4878_v38, %v3082_v5 }
 0x57b   : > { %3150 = vst.msk [vmem:[%s4886_s26 + $0xa0] sm:$0xff] %vm329_vm1, %v3118_v31 }
 0x57e   : > { %v2970_v9 = vpop.f32.mrf.mxu2 }
 0x57f   : > { %v3083_v39 = vadd.f32 %v3051_v55, %v2970_v9 }
 0x581   : > { %v3119_v6 = vadd.f32 %v4878_v38, %v3083_v39 }
 0x583   : > { %3151 = vst.msk [vmem:[%s4886_s26 + $0xa8] sm:$0xff] %vm329_vm1, %v3119_v6 }
 0x586   : > { %v2973_v53 = vpop.f32.mrf.mxu2 }
 0x587   : > { %v3084_v51 = vadd.f32 %v4814_v47, %v2973_v53 }
 0x589   : > { %v3120_v23 = vadd.f32 %v4878_v38, %v3084_v51 }
 0x58b   : > { %3152 = vst.msk [vmem:[%s4886_s26 + $0xb0] sm:$0xff] %vm329_vm1, %v3120_v23 }
 0x58e   : > { %v2975_v32 = vpop.f32.mrf.mxu2 }
 0x58f   : > { %v3085_v60 = vadd.f32 %v3053_v24, %v2975_v32 }
 0x591   : > { %v3121_v18 = vadd.f32 %v4878_v38, %v3085_v60 }
 0x593   : > { %3153 = vst.msk [vmem:[%s4886_s26 + $0xb8] sm:$0xff] %vm329_vm1, %v3121_v18 }
 0x596   : > { %v2978_v42 = vpop.f32.mrf.mxu2 }
 0x597   : > { %v3086_v47 = vadd.f32 %v4827_v30, %v2978_v42 }
 0x599   : > { %v3122_v33 = vadd.f32 %v4878_v38, %v3086_v47 }
 0x59b   : > { %3154 = vst.msk [vmem:[%s4886_s26 + $0xc0] sm:$0xff] %vm329_vm1, %v3122_v33 }
 0x59e   : > { %v2980_v52 = vpop.f32.mrf.mxu2 }
 0x59f   : > { %v3087_v4 = vadd.f32 %v3055_v20, %v2980_v52 }
 0x5a1   : > { %v3123_v21 = vadd.f32 %v4878_v38, %v3087_v4 }
 0x5a3   : > { %3155 = vst.msk [vmem:[%s4886_s26 + $0xc8] sm:$0xff] %vm329_vm1, %v3123_v21 }
 0x5a6   : > { %v2983_v63 = vpop.f32.mrf.mxu2 }
 0x5a7   : > { %v3088_v30 = vadd.f32 %v4840_v14, %v2983_v63 }
 0x5a9   : > { %v3124_v37 = vadd.f32 %v4878_v38, %v3088_v30 }
 0x5ab   : > { %3156 = vst.msk [vmem:[%s4886_s26 + $0xd0] sm:$0xff] %vm329_vm1, %v3124_v37 }
 0x5ae   : > { %v2985_v57 = vpop.f32.mrf.mxu2 }
 0x5af   : > { %v3089_v2 = vadd.f32 %v3057_v45, %v2985_v57 }
 0x5b1   : > { %v3125_v28 = vadd.f32 %v4878_v38, %v3089_v2 }
 0x5b3   : > { %3157 = vst.msk [vmem:[%s4886_s26 + $0xd8] sm:$0xff] %vm329_vm1, %v3125_v28 }
 0x5b6   : > { %v2988_v36 = vpop.f32.mrf.mxu2 }
 0x5b7   : > { %v3090_v14 = vadd.f32 %v4853_v11, %v2988_v36 }
 0x5b9   : > { %v3126_v1 = vadd.f32 %v4878_v38, %v3090_v14 }
 0x5bb   : > { %3158 = vst.msk [vmem:[%s4886_s26 + $0xe0] sm:$0xff] %vm329_vm1, %v3126_v1 }
 0x5be   : > { %v2990_v29 = vpop.f32.mrf.mxu2 }
 0x5bf   : > { %v3091_v44 = vadd.f32 %v3059_v48, %v2990_v29 }
 0x5c1   : > { %v3127_v40 = vadd.f32 %v4878_v38, %v3091_v44 }
 0x5c3   : > { %3159 = vst.msk [vmem:[%s4886_s26 + $0xe8] sm:$0xff] %vm329_vm1, %v3127_v40 }
 0x5c6   : > { %v2993_v34 = vpop.f32.mrf.mxu2 }
 0x5c7   : > { %v3092_v54 = vadd.f32 %v4866_v3, %v2993_v34 }
 0x5c9   : > { %v3128_v11 = vadd.f32 %v4878_v38, %v3092_v54 }
 0x5cb   : > { %3160 = vst.msk [vmem:[%s4886_s26 + $0xf0] sm:$0xff] %vm329_vm1, %v3128_v11 }
 0x5ce   : > { %v2995_v7 = vpop.f32.mrf.mxu2 }
 0x5cf   : > { %v3093_v15 = vadd.f32 %v3061_v59, %v2995_v7 }
 0x5d1   : > { %v3129_v50 = vadd.f32 %v4878_v38, %v3093_v15 }
 0x5d3   : > { %3161 = vst.msk [vmem:[%s4886_s26 + $0xf8] sm:$0xff] %vm329_vm1, %v3129_v50 }
 0x5d4 PF: > { %s17_s24 = sadd.s32 1, %s3536_s24  }
 0x5d5   : > { %p14_p4 = scmp.ge.s32.totalorder %s17_s24, 4  }
 0x5d7   :  { %16 = sbr.rel (!%p14_p4) target bundleno = 1 (0x1), region = 89 }

</bundles_post_ra>
